<compile_context>
chip_gen: v5e
topology: v5e:2x2
jax: 0.10.0
libtpu: 0.0.40
codegen_flags: <defaults>
</compile_context>

<pallas_src>
import functools

import jax
import jax.numpy as jnp
from jax import lax
from jax.experimental import pallas as pl
from jax.experimental.pallas import tpu as pltpu

KSIZE = 7
PAD = (KSIZE - 1) // 2  # 3


def _spatial_gate_kernel(x_ref, w_ref, bias_ref, out_ref, *, C, H, W, TB_INNER):
    """One batch tile (TB images) per grid step.

    x_ref    : (TB, C, H*W)  VMEM  input feature maps, lane-dense spatial axis
    w_ref    : (2*7*7,)      SMEM  BN-folded conv weights (scalar reads)
    bias_ref : (1,)          SMEM  BN-folded bias
    out_ref  : (TB, C, H*W)  VMEM  gated output
    """
    TB = x_ref.shape[0]
    HW = H * W
    # zero-extension on each side of the flattened pooled map; >= PAD*(W+1), rounded up to a
    # multiple of 128 so the concatenation boundaries are lane-tile aligned.
    EPAD = ((PAD * (W + 1) + 127) // 128) * 128
    W_EXT = HW + 2 * PAD  # width of the row-shifted conv accumulators

    # Per-kx column-validity masks built in-kernel (iota + compares; no extra input DMA).
    xcol = lax.broadcasted_iota(jnp.int32, (1, HW), 1) % W
    masks = []
    for kx in range(KSIZE):
        p = xcol + (kx - PAD)
        masks.append(((p >= 0) & (p < W)).astype(jnp.float32))

    bias = bias_ref[0]

    def process(t0, tb):
        # --- ChannelPool: dense whole-chunk load, fused sublane max & mean over C ----------
        xf = x_ref[pl.ds(t0, tb)].astype(jnp.float32)          # (tb, C, HW)
        cmax = jnp.max(xf, axis=1)                             # (tb, HW)
        cmean = jnp.sum(xf, axis=1) * (1.0 / C)                # (tb, HW)

        # --- zero-extend the pooled maps in registers (no VMEM scratch) --------------------
        zpad = jnp.zeros((tb, EPAD), jnp.float32)
        padded = (jnp.concatenate([zpad, cmax, zpad], axis=1),     # (tb, HW + 2*EPAD)
                  jnp.concatenate([zpad, cmean, zpad], axis=1))

        # --- shift-factored 7x7 conv (2 in-ch -> 1 out-ch) ---------------------------------
        # For each (ci, ky): one unaligned row-shifted slice; accumulate its 7 horizontal
        # weights into 7 per-kx accumulators (pure VALU).  Afterwards one small lane shift
        # per kx (offsets 0..6) + the column mask removes row-wrap taps.
        accs = [jnp.zeros((tb, W_EXT), jnp.float32) for _ in range(KSIZE)]
        for ci in range(2):
            pc = padded[ci]
            for ky in range(KSIZE):
                base = EPAD + (ky - PAD) * W - PAD
                row = pc[:, base:base + W_EXT]                 # 1 of 14 unaligned lane slices
                for kx in range(KSIZE):
                    w = w_ref[ci * (KSIZE * KSIZE) + ky * KSIZE + kx]   # scalar (SMEM)
                    accs[kx] = accs[kx] + w * row              # VALU multiply-accumulate

        y = jnp.zeros((tb, HW), jnp.float32) + bias            # accumulator init = folded BN bias
        for kx in range(KSIZE):
            y = y + masks[kx] * accs[kx][:, kx:kx + HW]        # 1 small lane shift per kx

        # --- sigmoid (exp on the EUP) --------------------------------------------------------
        scale = 1.0 / (1.0 + jnp.exp(-y))                      # (tb, HW)

        # --- gate: broadcast multiply across C, dense lane store -----------------------------
        xg = x_ref[pl.ds(t0, tb)]                              # cheap VMEM re-read for the gate
        if xg.dtype == jnp.bfloat16:
            # bf16 VALU on v6e/v7x halves vreg traffic & store bytes.
            # (On v5e an f32 upcast would be preferable - no bf16 VALU there.)
            gated = xg * scale.astype(jnp.bfloat16)[:, None, :]
        else:
            gated = xg.astype(jnp.float32) * scale[:, None, :]
        out_ref[pl.ds(t0, tb)] = gated.astype(out_ref.dtype)

    n_chunks = TB // TB_INNER
    if n_chunks == 1:
        process(0, TB)
    else:
        def body(c, carry):
            process(c * TB_INNER, TB_INNER)
            return carry
        lax.fori_loop(0, n_chunks, body, 0)


def _vmem_capacity_bytes():
    try:
        return int(pltpu.get_tpu_info().vmem_capacity_bytes)
    except Exception:
        return 64 << 20   # conservative (v7x per-core VMEM)


def _choose_tiles(N, C, HW, itemsize):
    """Images per grid step (TB) and in-kernel sub-chunk size (TB_INNER).

    TB targets ~4 MiB of x per step (mem-bound kernel), bounded by a generation-aware VMEM
    budget for the 2x-input + 2x-output pipeline buffers, while keeping ~8 grid steps when N
    allows (several pipelined steps per TensorCore, incl. v7x megacore).  TB_INNER bounds the
    in-register pool/conv working set (~2K f32 lanes per chunk)."""
    per_image = C * HW * itemsize
    vmem_cap = _vmem_capacity_bytes()
    vmem_budget = (int(vmem_cap * 0.55)) // 4          # per pipeline buffer (2 in + 2 out)
    tb = min(N,
             max(1, (4 << 20) // max(per_image, 1)),   # ~4 MiB of x per grid step
             max(1, vmem_budget // max(per_image, 1)))
    target_steps = 8 if N >= 8 else N                  # enough steps per core for pipelining
    if target_steps > 1:
        tb = min(tb, max(1, N // target_steps))
    tb = max(tb, 1)
    while N % tb:                                      # even blocks only
        tb -= 1
    tb_inner = max(1, min(tb, 2048 // max(HW, 1)))     # vreg-bound chunk inside the kernel
    while tb % tb_inner:
        tb_inner -= 1
    return tb, tb_inner


def spatial_gate(x, conv_w, bn_gamma, bn_beta, bn_mean, bn_var, eps=1e-5):
    """x: (N, C, H, W).  conv_w: (1, 2, 7, 7).  BN params: shape (1,)."""
    N, C, H, W = x.shape
    HW = H * W

    # Fold inference-mode BatchNorm into the (bias-free) conv:
    #   bn(conv(p)) = conv(p)*s + t,  s = gamma/sqrt(var+eps),  t = beta - mean*s
    s = bn_gamma / jnp.sqrt(bn_var + eps)                               # (1,)
    t = bn_beta - bn_mean * s                                           # (1,)
    w_folded = (conv_w[0] * s[0]).reshape(-1).astype(jnp.float32)       # (2*7*7,)
    bias = t.astype(jnp.float32)                                        # (1,)

    x3 = x.reshape(N, C, HW)                                            # lane-dense spatial axis

    TB, TB_INNER = _choose_tiles(N, C, HW, x.dtype.itemsize)
    grid = (N // TB,)

    block_bytes = TB * C * HW * x.dtype.itemsize
    vmem_cap = _vmem_capacity_bytes()
    # Cover 2x input + 2x output pipeline buffers plus slack, clamped below physical VMEM.
    vmem_limit = int(min(max(4 * block_bytes + (8 << 20), 32 << 20), vmem_cap - (4 << 20)))

    kernel = functools.partial(_spatial_gate_kernel, C=C, H=H, W=W, TB_INNER=TB_INNER)

    grid_spec = pltpu.PrefetchScalarGridSpec(
        num_scalar_prefetch=0,
        grid=grid,
        in_specs=[
            pl.BlockSpec((TB, C, HW), lambda b: (b, 0, 0)),
            pl.BlockSpec(memory_space=pltpu.MemorySpace.SMEM),
            pl.BlockSpec(memory_space=pltpu.MemorySpace.SMEM),
        ],
        out_specs=pl.BlockSpec((TB, C, HW), lambda b: (b, 0, 0)),
    )

    out3 = pl.pallas_call(
        kernel,
        out_shape=jax.ShapeDtypeStruct((N, C, HW), x.dtype),
        grid_spec=grid_spec,
        compiler_params=pltpu.CompilerParams(
            dimension_semantics=("parallel",),
            vmem_limit_bytes=vmem_limit,
        ),
    )(x3, w_folded, bias)

    return out3.reshape(N, C, H, W)


def spatial_gate_ref(x, conv_w, bn_gamma, bn_beta, bn_mean, bn_var, eps=1e-5):
    """Pure-JAX reference (mirrors the PyTorch forward, BN in eval mode)."""
    cmax = jnp.max(x, axis=1, keepdims=True)
    cmean = jnp.mean(x, axis=1, keepdims=True)
    pooled = jnp.concatenate([cmax, cmean], axis=1)
    y = lax.conv_general_dilated(
        pooled, conv_w, window_strides=(1, 1), padding=[(PAD, PAD), (PAD, PAD)],
        dimension_numbers=("NCHW", "OIHW", "NCHW"))
    y = (y - bn_mean.reshape(1, -1, 1, 1)) / jnp.sqrt(bn_var.reshape(1, -1, 1, 1) + eps)
    y = y * bn_gamma.reshape(1, -1, 1, 1) + bn_beta.reshape(1, -1, 1, 1)
    return x * jax.nn.sigmoid(y)


if __name__ == "__main__":
    key = jax.random.PRNGKey(0)
    k_x, k_w, k_g, k_b, k_m, k_v = jax.random.split(key, 6)

    # Deterministic synthetic parameters (Conv2d(2,1,7,7,bias=False) + BatchNorm2d(1)).
    conv_w = jax.random.normal(k_w, (1, 2, KSIZE, KSIZE), dtype=jnp.float32) * 0.1
    bn_gamma = 1.0 + 0.1 * jax.random.normal(k_g, (1,), dtype=jnp.float32)
    bn_beta = 0.1 * jax.random.normal(k_b, (1,), dtype=jnp.float32)
    bn_mean = 0.1 * jax.random.normal(k_m, (1,), dtype=jnp.float32)
    bn_var = jnp.abs(jax.random.normal(k_v, (1,), dtype=jnp.float32)) + 0.5

    # Primary small shape, plus two shapes exercising the multi-image block and the
    # in-kernel chunk loop paths (all tiny).
    shapes = [(2, 4, 16, 16), (16, 4, 16, 16), (128, 4, 16, 16)]
    for (N, C, H, W) in shapes:
        kx = jax.random.fold_in(k_x, N)
        x = jax.random.normal(kx, (N, C, H, W), dtype=jnp.float32)

        out = spatial_gate(x, conv_w, bn_gamma, bn_beta, bn_mean, bn_var)
        out = jax.block_until_ready(out)

        ref = spatial_gate_ref(x, conv_w, bn_gamma, bn_beta, bn_mean, bn_var)
        assert out.shape == (N, C, H, W)
        err = float(jnp.max(jnp.abs(out - ref)))
        assert jnp.allclose(out, ref, atol=1e-4, rtol=1e-4), (N, C, H, W, err)

    print("KERNEL_OK")
</pallas_src>

<mosaic_0001>
module attributes {stable_mosaic.version = 11 : i64} {
  func.func @_spatial_gate_kernel(%arg0: i32, %arg1: memref<1x4x256xf32, #tpu.memory_space<vmem>>, %arg2: memref<98xf32, #tpu.memory_space<smem>>, %arg3: memref<1xf32, #tpu.memory_space<smem>>, %arg4: memref<1x4x256xf32, #tpu.memory_space<vmem>>) attributes {dimension_semantics = [#tpu.dimension_semantics<parallel>], iteration_bounds = array<i64: 2>, scalar_prefetch = 0 : i64, scratch_operands = 0 : i64, tpu.core_type = #tpu.core_type<tc>, window_params = [{transform_indices = @transform_0, window_bounds = array<i64: 1, 4, 256>}, {transform_indices = @transform_1, window_bounds = array<i64: 98>}, {transform_indices = @transform_2, window_bounds = array<i64: 1>}, {transform_indices = @transform_3, window_bounds = array<i64: 1, 4, 256>}]} {
    %0 = tpu.iota {dimensions = array<i32: 1>} : vector<1x256xi32>
    %c16_i32 = arith.constant 16 : i32
    %c0_i32 = arith.constant 0 : i32
    %1 = arith.cmpi eq, %c16_i32, %c0_i32 : i32
    %c1_i32 = arith.constant 1 : i32
    %2 = arith.select %1, %c1_i32, %c16_i32 : i32
    %3 = vector.broadcast %2 : i32 to vector<1x256xi32>
    %4 = arith.remsi %0, %3 : vector<1x256xi32>
    %c0_i32_0 = arith.constant 0 : i32
    %5 = vector.broadcast %c0_i32_0 : i32 to vector<1x256xi32>
    %6 = arith.cmpi ne, %4, %5 : vector<1x256xi32>
    %c0_i32_1 = arith.constant 0 : i32
    %7 = vector.broadcast %c0_i32_1 : i32 to vector<1x256xi32>
    %8 = arith.cmpi slt, %4, %7 : vector<1x256xi32>
    %c0_i32_2 = arith.constant 0 : i32
    %9 = arith.cmpi slt, %2, %c0_i32_2 : i32
    %10 = vector.broadcast %9 : i1 to vector<1x256xi1>
    %11 = vector.broadcast %10 : vector<1x256xi1> to vector<1x256xi1>
    %12 = arith.xori %8, %11 : vector<1x256xi1>
    %13 = arith.andi %12, %6 : vector<1x256xi1>
    %14 = vector.broadcast %2 : i32 to vector<1x256xi32>
    %15 = arith.addi %4, %14 : vector<1x256xi32>
    %16 = arith.select %13, %15, %4 : vector<1x256xi1>, vector<1x256xi32>
    %c-3_i32 = arith.constant -3 : i32
    %17 = vector.broadcast %c-3_i32 : i32 to vector<1x256xi32>
    %18 = arith.addi %16, %17 : vector<1x256xi32>
    %c0_i32_3 = arith.constant 0 : i32
    %19 = vector.broadcast %c0_i32_3 : i32 to vector<1x256xi32>
    %20 = arith.cmpi sge, %18, %19 : vector<1x256xi32>
    %c16_i32_4 = arith.constant 16 : i32
    %21 = vector.broadcast %c16_i32_4 : i32 to vector<1x256xi32>
    %22 = arith.cmpi slt, %18, %21 : vector<1x256xi32>
    %23 = arith.andi %20, %22 : vector<1x256xi1>
    %24 = arith.extui %23 : vector<1x256xi1> to vector<1x256xi32>
    %25 = arith.sitofp %24 : vector<1x256xi32> to vector<1x256xf32>
    %c-2_i32 = arith.constant -2 : i32
    %26 = vector.broadcast %c-2_i32 : i32 to vector<1x256xi32>
    %27 = arith.addi %16, %26 : vector<1x256xi32>
    %c0_i32_5 = arith.constant 0 : i32
    %28 = vector.broadcast %c0_i32_5 : i32 to vector<1x256xi32>
    %29 = arith.cmpi sge, %27, %28 : vector<1x256xi32>
    %c16_i32_6 = arith.constant 16 : i32
    %30 = vector.broadcast %c16_i32_6 : i32 to vector<1x256xi32>
    %31 = arith.cmpi slt, %27, %30 : vector<1x256xi32>
    %32 = arith.andi %29, %31 : vector<1x256xi1>
    %33 = arith.extui %32 : vector<1x256xi1> to vector<1x256xi32>
    %34 = arith.sitofp %33 : vector<1x256xi32> to vector<1x256xf32>
    %c-1_i32 = arith.constant -1 : i32
    %35 = vector.broadcast %c-1_i32 : i32 to vector<1x256xi32>
    %36 = arith.addi %16, %35 : vector<1x256xi32>
    %c0_i32_7 = arith.constant 0 : i32
    %37 = vector.broadcast %c0_i32_7 : i32 to vector<1x256xi32>
    %38 = arith.cmpi sge, %36, %37 : vector<1x256xi32>
    %c16_i32_8 = arith.constant 16 : i32
    %39 = vector.broadcast %c16_i32_8 : i32 to vector<1x256xi32>
    %40 = arith.cmpi slt, %36, %39 : vector<1x256xi32>
    %41 = arith.andi %38, %40 : vector<1x256xi1>
    %42 = arith.extui %41 : vector<1x256xi1> to vector<1x256xi32>
    %43 = arith.sitofp %42 : vector<1x256xi32> to vector<1x256xf32>
    %c0_i32_9 = arith.constant 0 : i32
    %44 = vector.broadcast %c0_i32_9 : i32 to vector<1x256xi32>
    %45 = arith.addi %16, %44 : vector<1x256xi32>
    %c0_i32_10 = arith.constant 0 : i32
    %46 = vector.broadcast %c0_i32_10 : i32 to vector<1x256xi32>
    %47 = arith.cmpi sge, %45, %46 : vector<1x256xi32>
    %c16_i32_11 = arith.constant 16 : i32
    %48 = vector.broadcast %c16_i32_11 : i32 to vector<1x256xi32>
    %49 = arith.cmpi slt, %45, %48 : vector<1x256xi32>
    %50 = arith.andi %47, %49 : vector<1x256xi1>
    %51 = arith.extui %50 : vector<1x256xi1> to vector<1x256xi32>
    %52 = arith.sitofp %51 : vector<1x256xi32> to vector<1x256xf32>
    %c1_i32_12 = arith.constant 1 : i32
    %53 = vector.broadcast %c1_i32_12 : i32 to vector<1x256xi32>
    %54 = arith.addi %16, %53 : vector<1x256xi32>
    %c0_i32_13 = arith.constant 0 : i32
    %55 = vector.broadcast %c0_i32_13 : i32 to vector<1x256xi32>
    %56 = arith.cmpi sge, %54, %55 : vector<1x256xi32>
    %c16_i32_14 = arith.constant 16 : i32
    %57 = vector.broadcast %c16_i32_14 : i32 to vector<1x256xi32>
    %58 = arith.cmpi slt, %54, %57 : vector<1x256xi32>
    %59 = arith.andi %56, %58 : vector<1x256xi1>
    %60 = arith.extui %59 : vector<1x256xi1> to vector<1x256xi32>
    %61 = arith.sitofp %60 : vector<1x256xi32> to vector<1x256xf32>
    %c2_i32 = arith.constant 2 : i32
    %62 = vector.broadcast %c2_i32 : i32 to vector<1x256xi32>
    %63 = arith.addi %16, %62 : vector<1x256xi32>
    %c0_i32_15 = arith.constant 0 : i32
    %64 = vector.broadcast %c0_i32_15 : i32 to vector<1x256xi32>
    %65 = arith.cmpi sge, %63, %64 : vector<1x256xi32>
    %c16_i32_16 = arith.constant 16 : i32
    %66 = vector.broadcast %c16_i32_16 : i32 to vector<1x256xi32>
    %67 = arith.cmpi slt, %63, %66 : vector<1x256xi32>
    %68 = arith.andi %65, %67 : vector<1x256xi1>
    %69 = arith.extui %68 : vector<1x256xi1> to vector<1x256xi32>
    %70 = arith.sitofp %69 : vector<1x256xi32> to vector<1x256xf32>
    %c3_i32 = arith.constant 3 : i32
    %71 = vector.broadcast %c3_i32 : i32 to vector<1x256xi32>
    %72 = arith.addi %16, %71 : vector<1x256xi32>
    %c0_i32_17 = arith.constant 0 : i32
    %73 = vector.broadcast %c0_i32_17 : i32 to vector<1x256xi32>
    %74 = arith.cmpi sge, %72, %73 : vector<1x256xi32>
    %c16_i32_18 = arith.constant 16 : i32
    %75 = vector.broadcast %c16_i32_18 : i32 to vector<1x256xi32>
    %76 = arith.cmpi slt, %72, %75 : vector<1x256xi32>
    %77 = arith.andi %74, %76 : vector<1x256xi1>
    %78 = arith.extui %77 : vector<1x256xi1> to vector<1x256xi32>
    %79 = arith.sitofp %78 : vector<1x256xi32> to vector<1x256xf32>
    %c0 = arith.constant 0 : index
    %80 = memref.load %arg3[%c0] : memref<1xf32, #tpu.memory_space<smem>>
    %c0_19 = arith.constant 0 : index
    %c0_20 = arith.constant 0 : index
    %c0_21 = arith.constant 0 : index
    %81 = vector.load %arg1[%c0_19, %c0_20, %c0_21] : memref<1x4x256xf32, #tpu.memory_space<vmem>>, vector<1x4x256xf32>
    %cst = arith.constant dense<0xFF800000> : vector<1x256xf32>
    %82 = vector.multi_reduction <maximumf>, %81, %cst [1] : vector<1x4x256xf32> to vector<1x256xf32>
    %cst_22 = arith.constant dense<0.000000e+00> : vector<1x256xf32>
    %83 = vector.multi_reduction <add>, %81, %cst_22 [1] : vector<1x4x256xf32> to vector<1x256xf32>
    %cst_23 = arith.constant 2.500000e-01 : f32
    %84 = vector.broadcast %cst_23 : f32 to vector<1x256xf32>
    %85 = arith.mulf %83, %84 : vector<1x256xf32>
    %cst_24 = arith.constant 0.000000e+00 : f32
    %86 = vector.broadcast %cst_24 : f32 to vector<1x128xf32>
    %87 = tpu.concatenate %86, %82, %86 in 1 : vector<1x128xf32>, vector<1x256xf32>, vector<1x128xf32> -> vector<1x512xf32>
    %88 = tpu.concatenate %86, %85, %86 in 1 : vector<1x128xf32>, vector<1x256xf32>, vector<1x128xf32> -> vector<1x512xf32>
    %cst_25 = arith.constant 0.000000e+00 : f32
    %89 = vector.broadcast %cst_25 : f32 to vector<1x262xf32>
    %cst_26 = arith.constant 0.000000e+00 : f32
    %90 = vector.broadcast %cst_26 : f32 to vector<1x262xf32>
    %cst_27 = arith.constant 0.000000e+00 : f32
    %91 = vector.broadcast %cst_27 : f32 to vector<1x262xf32>
    %cst_28 = arith.constant 0.000000e+00 : f32
    %92 = vector.broadcast %cst_28 : f32 to vector<1x262xf32>
    %cst_29 = arith.constant 0.000000e+00 : f32
    %93 = vector.broadcast %cst_29 : f32 to vector<1x262xf32>
    %cst_30 = arith.constant 0.000000e+00 : f32
    %94 = vector.broadcast %cst_30 : f32 to vector<1x262xf32>
    %cst_31 = arith.constant 0.000000e+00 : f32
    %95 = vector.broadcast %cst_31 : f32 to vector<1x262xf32>
    %96 = vector.extract_strided_slice %87 {offsets = [0, 77], sizes = [1, 262], strides = [1, 1]} : vector<1x512xf32> to vector<1x262xf32>
    %c0_32 = arith.constant 0 : index
    %97 = memref.load %arg2[%c0_32] : memref<98xf32, #tpu.memory_space<smem>>
    %98 = vector.broadcast %97 : f32 to vector<1x262xf32>
    %99 = arith.mulf %98, %96 : vector<1x262xf32>
    %100 = arith.addf %89, %99 : vector<1x262xf32>
    %c1 = arith.constant 1 : index
    %101 = memref.load %arg2[%c1] : memref<98xf32, #tpu.memory_space<smem>>
    %102 = vector.broadcast %101 : f32 to vector<1x262xf32>
    %103 = arith.mulf %102, %96 : vector<1x262xf32>
    %104 = arith.addf %90, %103 : vector<1x262xf32>
    %c2 = arith.constant 2 : index
    %105 = memref.load %arg2[%c2] : memref<98xf32, #tpu.memory_space<smem>>
    %106 = vector.broadcast %105 : f32 to vector<1x262xf32>
    %107 = arith.mulf %106, %96 : vector<1x262xf32>
    %108 = arith.addf %91, %107 : vector<1x262xf32>
    %c3 = arith.constant 3 : index
    %109 = memref.load %arg2[%c3] : memref<98xf32, #tpu.memory_space<smem>>
    %110 = vector.broadcast %109 : f32 to vector<1x262xf32>
    %111 = arith.mulf %110, %96 : vector<1x262xf32>
    %112 = arith.addf %92, %111 : vector<1x262xf32>
    %c4 = arith.constant 4 : index
    %113 = memref.load %arg2[%c4] : memref<98xf32, #tpu.memory_space<smem>>
    %114 = vector.broadcast %113 : f32 to vector<1x262xf32>
    %115 = arith.mulf %114, %96 : vector<1x262xf32>
    %116 = arith.addf %93, %115 : vector<1x262xf32>
    %c5 = arith.constant 5 : index
    %117 = memref.load %arg2[%c5] : memref<98xf32, #tpu.memory_space<smem>>
    %118 = vector.broadcast %117 : f32 to vector<1x262xf32>
    %119 = arith.mulf %118, %96 : vector<1x262xf32>
    %120 = arith.addf %94, %119 : vector<1x262xf32>
    %c6 = arith.constant 6 : index
    %121 = memref.load %arg2[%c6] : memref<98xf32, #tpu.memory_space<smem>>
    %122 = vector.broadcast %121 : f32 to vector<1x262xf32>
    %123 = arith.mulf %122, %96 : vector<1x262xf32>
    %124 = arith.addf %95, %123 : vector<1x262xf32>
    %125 = vector.extract_strided_slice %87 {offsets = [0, 93], sizes = [1, 262], strides = [1, 1]} : vector<1x512xf32> to vector<1x262xf32>
    %c7 = arith.constant 7 : index
    %126 = memref.load %arg2[%c7] : memref<98xf32, #tpu.memory_space<smem>>
    %127 = vector.broadcast %126 : f32 to vector<1x262xf32>
    %128 = arith.mulf %127, %125 : vector<1x262xf32>
    %129 = arith.addf %100, %128 : vector<1x262xf32>
    %c8 = arith.constant 8 : index
    %130 = memref.load %arg2[%c8] : memref<98xf32, #tpu.memory_space<smem>>
    %131 = vector.broadcast %130 : f32 to vector<1x262xf32>
    %132 = arith.mulf %131, %125 : vector<1x262xf32>
    %133 = arith.addf %104, %132 : vector<1x262xf32>
    %c9 = arith.constant 9 : index
    %134 = memref.load %arg2[%c9] : memref<98xf32, #tpu.memory_space<smem>>
    %135 = vector.broadcast %134 : f32 to vector<1x262xf32>
    %136 = arith.mulf %135, %125 : vector<1x262xf32>
    %137 = arith.addf %108, %136 : vector<1x262xf32>
    %c10 = arith.constant 10 : index
    %138 = memref.load %arg2[%c10] : memref<98xf32, #tpu.memory_space<smem>>
    %139 = vector.broadcast %138 : f32 to vector<1x262xf32>
    %140 = arith.mulf %139, %125 : vector<1x262xf32>
    %141 = arith.addf %112, %140 : vector<1x262xf32>
    %c11 = arith.constant 11 : index
    %142 = memref.load %arg2[%c11] : memref<98xf32, #tpu.memory_space<smem>>
    %143 = vector.broadcast %142 : f32 to vector<1x262xf32>
    %144 = arith.mulf %143, %125 : vector<1x262xf32>
    %145 = arith.addf %116, %144 : vector<1x262xf32>
    %c12 = arith.constant 12 : index
    %146 = memref.load %arg2[%c12] : memref<98xf32, #tpu.memory_space<smem>>
    %147 = vector.broadcast %146 : f32 to vector<1x262xf32>
    %148 = arith.mulf %147, %125 : vector<1x262xf32>
    %149 = arith.addf %120, %148 : vector<1x262xf32>
    %c13 = arith.constant 13 : index
    %150 = memref.load %arg2[%c13] : memref<98xf32, #tpu.memory_space<smem>>
    %151 = vector.broadcast %150 : f32 to vector<1x262xf32>
    %152 = arith.mulf %151, %125 : vector<1x262xf32>
    %153 = arith.addf %124, %152 : vector<1x262xf32>
    %154 = vector.extract_strided_slice %87 {offsets = [0, 109], sizes = [1, 262], strides = [1, 1]} : vector<1x512xf32> to vector<1x262xf32>
    %c14 = arith.constant 14 : index
    %155 = memref.load %arg2[%c14] : memref<98xf32, #tpu.memory_space<smem>>
    %156 = vector.broadcast %155 : f32 to vector<1x262xf32>
    %157 = arith.mulf %156, %154 : vector<1x262xf32>
    %158 = arith.addf %129, %157 : vector<1x262xf32>
    %c15 = arith.constant 15 : index
    %159 = memref.load %arg2[%c15] : memref<98xf32, #tpu.memory_space<smem>>
    %160 = vector.broadcast %159 : f32 to vector<1x262xf32>
    %161 = arith.mulf %160, %154 : vector<1x262xf32>
    %162 = arith.addf %133, %161 : vector<1x262xf32>
    %c16 = arith.constant 16 : index
    %163 = memref.load %arg2[%c16] : memref<98xf32, #tpu.memory_space<smem>>
    %164 = vector.broadcast %163 : f32 to vector<1x262xf32>
    %165 = arith.mulf %164, %154 : vector<1x262xf32>
    %166 = arith.addf %137, %165 : vector<1x262xf32>
    %c17 = arith.constant 17 : index
    %167 = memref.load %arg2[%c17] : memref<98xf32, #tpu.memory_space<smem>>
    %168 = vector.broadcast %167 : f32 to vector<1x262xf32>
    %169 = arith.mulf %168, %154 : vector<1x262xf32>
    %170 = arith.addf %141, %169 : vector<1x262xf32>
    %c18 = arith.constant 18 : index
    %171 = memref.load %arg2[%c18] : memref<98xf32, #tpu.memory_space<smem>>
    %172 = vector.broadcast %171 : f32 to vector<1x262xf32>
    %173 = arith.mulf %172, %154 : vector<1x262xf32>
    %174 = arith.addf %145, %173 : vector<1x262xf32>
    %c19 = arith.constant 19 : index
    %175 = memref.load %arg2[%c19] : memref<98xf32, #tpu.memory_space<smem>>
    %176 = vector.broadcast %175 : f32 to vector<1x262xf32>
    %177 = arith.mulf %176, %154 : vector<1x262xf32>
    %178 = arith.addf %149, %177 : vector<1x262xf32>
    %c20 = arith.constant 20 : index
    %179 = memref.load %arg2[%c20] : memref<98xf32, #tpu.memory_space<smem>>
    %180 = vector.broadcast %179 : f32 to vector<1x262xf32>
    %181 = arith.mulf %180, %154 : vector<1x262xf32>
    %182 = arith.addf %153, %181 : vector<1x262xf32>
    %183 = vector.extract_strided_slice %87 {offsets = [0, 125], sizes = [1, 262], strides = [1, 1]} : vector<1x512xf32> to vector<1x262xf32>
    %c21 = arith.constant 21 : index
    %184 = memref.load %arg2[%c21] : memref<98xf32, #tpu.memory_space<smem>>
    %185 = vector.broadcast %184 : f32 to vector<1x262xf32>
    %186 = arith.mulf %185, %183 : vector<1x262xf32>
    %187 = arith.addf %158, %186 : vector<1x262xf32>
    %c22 = arith.constant 22 : index
    %188 = memref.load %arg2[%c22] : memref<98xf32, #tpu.memory_space<smem>>
    %189 = vector.broadcast %188 : f32 to vector<1x262xf32>
    %190 = arith.mulf %189, %183 : vector<1x262xf32>
    %191 = arith.addf %162, %190 : vector<1x262xf32>
    %c23 = arith.constant 23 : index
    %192 = memref.load %arg2[%c23] : memref<98xf32, #tpu.memory_space<smem>>
    %193 = vector.broadcast %192 : f32 to vector<1x262xf32>
    %194 = arith.mulf %193, %183 : vector<1x262xf32>
    %195 = arith.addf %166, %194 : vector<1x262xf32>
    %c24 = arith.constant 24 : index
    %196 = memref.load %arg2[%c24] : memref<98xf32, #tpu.memory_space<smem>>
    %197 = vector.broadcast %196 : f32 to vector<1x262xf32>
    %198 = arith.mulf %197, %183 : vector<1x262xf32>
    %199 = arith.addf %170, %198 : vector<1x262xf32>
    %c25 = arith.constant 25 : index
    %200 = memref.load %arg2[%c25] : memref<98xf32, #tpu.memory_space<smem>>
    %201 = vector.broadcast %200 : f32 to vector<1x262xf32>
    %202 = arith.mulf %201, %183 : vector<1x262xf32>
    %203 = arith.addf %174, %202 : vector<1x262xf32>
    %c26 = arith.constant 26 : index
    %204 = memref.load %arg2[%c26] : memref<98xf32, #tpu.memory_space<smem>>
    %205 = vector.broadcast %204 : f32 to vector<1x262xf32>
    %206 = arith.mulf %205, %183 : vector<1x262xf32>
    %207 = arith.addf %178, %206 : vector<1x262xf32>
    %c27 = arith.constant 27 : index
    %208 = memref.load %arg2[%c27] : memref<98xf32, #tpu.memory_space<smem>>
    %209 = vector.broadcast %208 : f32 to vector<1x262xf32>
    %210 = arith.mulf %209, %183 : vector<1x262xf32>
    %211 = arith.addf %182, %210 : vector<1x262xf32>
    %212 = vector.extract_strided_slice %87 {offsets = [0, 141], sizes = [1, 262], strides = [1, 1]} : vector<1x512xf32> to vector<1x262xf32>
    %c28 = arith.constant 28 : index
    %213 = memref.load %arg2[%c28] : memref<98xf32, #tpu.memory_space<smem>>
    %214 = vector.broadcast %213 : f32 to vector<1x262xf32>
    %215 = arith.mulf %214, %212 : vector<1x262xf32>
    %216 = arith.addf %187, %215 : vector<1x262xf32>
    %c29 = arith.constant 29 : index
    %217 = memref.load %arg2[%c29] : memref<98xf32, #tpu.memory_space<smem>>
    %218 = vector.broadcast %217 : f32 to vector<1x262xf32>
    %219 = arith.mulf %218, %212 : vector<1x262xf32>
    %220 = arith.addf %191, %219 : vector<1x262xf32>
    %c30 = arith.constant 30 : index
    %221 = memref.load %arg2[%c30] : memref<98xf32, #tpu.memory_space<smem>>
    %222 = vector.broadcast %221 : f32 to vector<1x262xf32>
    %223 = arith.mulf %222, %212 : vector<1x262xf32>
    %224 = arith.addf %195, %223 : vector<1x262xf32>
    %c31 = arith.constant 31 : index
    %225 = memref.load %arg2[%c31] : memref<98xf32, #tpu.memory_space<smem>>
    %226 = vector.broadcast %225 : f32 to vector<1x262xf32>
    %227 = arith.mulf %226, %212 : vector<1x262xf32>
    %228 = arith.addf %199, %227 : vector<1x262xf32>
    %c32 = arith.constant 32 : index
    %229 = memref.load %arg2[%c32] : memref<98xf32, #tpu.memory_space<smem>>
    %230 = vector.broadcast %229 : f32 to vector<1x262xf32>
    %231 = arith.mulf %230, %212 : vector<1x262xf32>
    %232 = arith.addf %203, %231 : vector<1x262xf32>
    %c33 = arith.constant 33 : index
    %233 = memref.load %arg2[%c33] : memref<98xf32, #tpu.memory_space<smem>>
    %234 = vector.broadcast %233 : f32 to vector<1x262xf32>
    %235 = arith.mulf %234, %212 : vector<1x262xf32>
    %236 = arith.addf %207, %235 : vector<1x262xf32>
    %c34 = arith.constant 34 : index
    %237 = memref.load %arg2[%c34] : memref<98xf32, #tpu.memory_space<smem>>
    %238 = vector.broadcast %237 : f32 to vector<1x262xf32>
    %239 = arith.mulf %238, %212 : vector<1x262xf32>
    %240 = arith.addf %211, %239 : vector<1x262xf32>
    %241 = vector.extract_strided_slice %87 {offsets = [0, 157], sizes = [1, 262], strides = [1, 1]} : vector<1x512xf32> to vector<1x262xf32>
    %c35 = arith.constant 35 : index
    %242 = memref.load %arg2[%c35] : memref<98xf32, #tpu.memory_space<smem>>
    %243 = vector.broadcast %242 : f32 to vector<1x262xf32>
    %244 = arith.mulf %243, %241 : vector<1x262xf32>
    %245 = arith.addf %216, %244 : vector<1x262xf32>
    %c36 = arith.constant 36 : index
    %246 = memref.load %arg2[%c36] : memref<98xf32, #tpu.memory_space<smem>>
    %247 = vector.broadcast %246 : f32 to vector<1x262xf32>
    %248 = arith.mulf %247, %241 : vector<1x262xf32>
    %249 = arith.addf %220, %248 : vector<1x262xf32>
    %c37 = arith.constant 37 : index
    %250 = memref.load %arg2[%c37] : memref<98xf32, #tpu.memory_space<smem>>
    %251 = vector.broadcast %250 : f32 to vector<1x262xf32>
    %252 = arith.mulf %251, %241 : vector<1x262xf32>
    %253 = arith.addf %224, %252 : vector<1x262xf32>
    %c38 = arith.constant 38 : index
    %254 = memref.load %arg2[%c38] : memref<98xf32, #tpu.memory_space<smem>>
    %255 = vector.broadcast %254 : f32 to vector<1x262xf32>
    %256 = arith.mulf %255, %241 : vector<1x262xf32>
    %257 = arith.addf %228, %256 : vector<1x262xf32>
    %c39 = arith.constant 39 : index
    %258 = memref.load %arg2[%c39] : memref<98xf32, #tpu.memory_space<smem>>
    %259 = vector.broadcast %258 : f32 to vector<1x262xf32>
    %260 = arith.mulf %259, %241 : vector<1x262xf32>
    %261 = arith.addf %232, %260 : vector<1x262xf32>
    %c40 = arith.constant 40 : index
    %262 = memref.load %arg2[%c40] : memref<98xf32, #tpu.memory_space<smem>>
    %263 = vector.broadcast %262 : f32 to vector<1x262xf32>
    %264 = arith.mulf %263, %241 : vector<1x262xf32>
    %265 = arith.addf %236, %264 : vector<1x262xf32>
    %c41 = arith.constant 41 : index
    %266 = memref.load %arg2[%c41] : memref<98xf32, #tpu.memory_space<smem>>
    %267 = vector.broadcast %266 : f32 to vector<1x262xf32>
    %268 = arith.mulf %267, %241 : vector<1x262xf32>
    %269 = arith.addf %240, %268 : vector<1x262xf32>
    %270 = vector.extract_strided_slice %87 {offsets = [0, 173], sizes = [1, 262], strides = [1, 1]} : vector<1x512xf32> to vector<1x262xf32>
    %c42 = arith.constant 42 : index
    %271 = memref.load %arg2[%c42] : memref<98xf32, #tpu.memory_space<smem>>
    %272 = vector.broadcast %271 : f32 to vector<1x262xf32>
    %273 = arith.mulf %272, %270 : vector<1x262xf32>
    %274 = arith.addf %245, %273 : vector<1x262xf32>
    %c43 = arith.constant 43 : index
    %275 = memref.load %arg2[%c43] : memref<98xf32, #tpu.memory_space<smem>>
    %276 = vector.broadcast %275 : f32 to vector<1x262xf32>
    %277 = arith.mulf %276, %270 : vector<1x262xf32>
    %278 = arith.addf %249, %277 : vector<1x262xf32>
    %c44 = arith.constant 44 : index
    %279 = memref.load %arg2[%c44] : memref<98xf32, #tpu.memory_space<smem>>
    %280 = vector.broadcast %279 : f32 to vector<1x262xf32>
    %281 = arith.mulf %280, %270 : vector<1x262xf32>
    %282 = arith.addf %253, %281 : vector<1x262xf32>
    %c45 = arith.constant 45 : index
    %283 = memref.load %arg2[%c45] : memref<98xf32, #tpu.memory_space<smem>>
    %284 = vector.broadcast %283 : f32 to vector<1x262xf32>
    %285 = arith.mulf %284, %270 : vector<1x262xf32>
    %286 = arith.addf %257, %285 : vector<1x262xf32>
    %c46 = arith.constant 46 : index
    %287 = memref.load %arg2[%c46] : memref<98xf32, #tpu.memory_space<smem>>
    %288 = vector.broadcast %287 : f32 to vector<1x262xf32>
    %289 = arith.mulf %288, %270 : vector<1x262xf32>
    %290 = arith.addf %261, %289 : vector<1x262xf32>
    %c47 = arith.constant 47 : index
    %291 = memref.load %arg2[%c47] : memref<98xf32, #tpu.memory_space<smem>>
    %292 = vector.broadcast %291 : f32 to vector<1x262xf32>
    %293 = arith.mulf %292, %270 : vector<1x262xf32>
    %294 = arith.addf %265, %293 : vector<1x262xf32>
    %c48 = arith.constant 48 : index
    %295 = memref.load %arg2[%c48] : memref<98xf32, #tpu.memory_space<smem>>
    %296 = vector.broadcast %295 : f32 to vector<1x262xf32>
    %297 = arith.mulf %296, %270 : vector<1x262xf32>
    %298 = arith.addf %269, %297 : vector<1x262xf32>
    %299 = vector.extract_strided_slice %88 {offsets = [0, 77], sizes = [1, 262], strides = [1, 1]} : vector<1x512xf32> to vector<1x262xf32>
    %c49 = arith.constant 49 : index
    %300 = memref.load %arg2[%c49] : memref<98xf32, #tpu.memory_space<smem>>
    %301 = vector.broadcast %300 : f32 to vector<1x262xf32>
    %302 = arith.mulf %301, %299 : vector<1x262xf32>
    %303 = arith.addf %274, %302 : vector<1x262xf32>
    %c50 = arith.constant 50 : index
    %304 = memref.load %arg2[%c50] : memref<98xf32, #tpu.memory_space<smem>>
    %305 = vector.broadcast %304 : f32 to vector<1x262xf32>
    %306 = arith.mulf %305, %299 : vector<1x262xf32>
    %307 = arith.addf %278, %306 : vector<1x262xf32>
    %c51 = arith.constant 51 : index
    %308 = memref.load %arg2[%c51] : memref<98xf32, #tpu.memory_space<smem>>
    %309 = vector.broadcast %308 : f32 to vector<1x262xf32>
    %310 = arith.mulf %309, %299 : vector<1x262xf32>
    %311 = arith.addf %282, %310 : vector<1x262xf32>
    %c52 = arith.constant 52 : index
    %312 = memref.load %arg2[%c52] : memref<98xf32, #tpu.memory_space<smem>>
    %313 = vector.broadcast %312 : f32 to vector<1x262xf32>
    %314 = arith.mulf %313, %299 : vector<1x262xf32>
    %315 = arith.addf %286, %314 : vector<1x262xf32>
    %c53 = arith.constant 53 : index
    %316 = memref.load %arg2[%c53] : memref<98xf32, #tpu.memory_space<smem>>
    %317 = vector.broadcast %316 : f32 to vector<1x262xf32>
    %318 = arith.mulf %317, %299 : vector<1x262xf32>
    %319 = arith.addf %290, %318 : vector<1x262xf32>
    %c54 = arith.constant 54 : index
    %320 = memref.load %arg2[%c54] : memref<98xf32, #tpu.memory_space<smem>>
    %321 = vector.broadcast %320 : f32 to vector<1x262xf32>
    %322 = arith.mulf %321, %299 : vector<1x262xf32>
    %323 = arith.addf %294, %322 : vector<1x262xf32>
    %c55 = arith.constant 55 : index
    %324 = memref.load %arg2[%c55] : memref<98xf32, #tpu.memory_space<smem>>
    %325 = vector.broadcast %324 : f32 to vector<1x262xf32>
    %326 = arith.mulf %325, %299 : vector<1x262xf32>
    %327 = arith.addf %298, %326 : vector<1x262xf32>
    %328 = vector.extract_strided_slice %88 {offsets = [0, 93], sizes = [1, 262], strides = [1, 1]} : vector<1x512xf32> to vector<1x262xf32>
    %c56 = arith.constant 56 : index
    %329 = memref.load %arg2[%c56] : memref<98xf32, #tpu.memory_space<smem>>
    %330 = vector.broadcast %329 : f32 to vector<1x262xf32>
    %331 = arith.mulf %330, %328 : vector<1x262xf32>
    %332 = arith.addf %303, %331 : vector<1x262xf32>
    %c57 = arith.constant 57 : index
    %333 = memref.load %arg2[%c57] : memref<98xf32, #tpu.memory_space<smem>>
    %334 = vector.broadcast %333 : f32 to vector<1x262xf32>
    %335 = arith.mulf %334, %328 : vector<1x262xf32>
    %336 = arith.addf %307, %335 : vector<1x262xf32>
    %c58 = arith.constant 58 : index
    %337 = memref.load %arg2[%c58] : memref<98xf32, #tpu.memory_space<smem>>
    %338 = vector.broadcast %337 : f32 to vector<1x262xf32>
    %339 = arith.mulf %338, %328 : vector<1x262xf32>
    %340 = arith.addf %311, %339 : vector<1x262xf32>
    %c59 = arith.constant 59 : index
    %341 = memref.load %arg2[%c59] : memref<98xf32, #tpu.memory_space<smem>>
    %342 = vector.broadcast %341 : f32 to vector<1x262xf32>
    %343 = arith.mulf %342, %328 : vector<1x262xf32>
    %344 = arith.addf %315, %343 : vector<1x262xf32>
    %c60 = arith.constant 60 : index
    %345 = memref.load %arg2[%c60] : memref<98xf32, #tpu.memory_space<smem>>
    %346 = vector.broadcast %345 : f32 to vector<1x262xf32>
    %347 = arith.mulf %346, %328 : vector<1x262xf32>
    %348 = arith.addf %319, %347 : vector<1x262xf32>
    %c61 = arith.constant 61 : index
    %349 = memref.load %arg2[%c61] : memref<98xf32, #tpu.memory_space<smem>>
    %350 = vector.broadcast %349 : f32 to vector<1x262xf32>
    %351 = arith.mulf %350, %328 : vector<1x262xf32>
    %352 = arith.addf %323, %351 : vector<1x262xf32>
    %c62 = arith.constant 62 : index
    %353 = memref.load %arg2[%c62] : memref<98xf32, #tpu.memory_space<smem>>
    %354 = vector.broadcast %353 : f32 to vector<1x262xf32>
    %355 = arith.mulf %354, %328 : vector<1x262xf32>
    %356 = arith.addf %327, %355 : vector<1x262xf32>
    %357 = vector.extract_strided_slice %88 {offsets = [0, 109], sizes = [1, 262], strides = [1, 1]} : vector<1x512xf32> to vector<1x262xf32>
    %c63 = arith.constant 63 : index
    %358 = memref.load %arg2[%c63] : memref<98xf32, #tpu.memory_space<smem>>
    %359 = vector.broadcast %358 : f32 to vector<1x262xf32>
    %360 = arith.mulf %359, %357 : vector<1x262xf32>
    %361 = arith.addf %332, %360 : vector<1x262xf32>
    %c64 = arith.constant 64 : index
    %362 = memref.load %arg2[%c64] : memref<98xf32, #tpu.memory_space<smem>>
    %363 = vector.broadcast %362 : f32 to vector<1x262xf32>
    %364 = arith.mulf %363, %357 : vector<1x262xf32>
    %365 = arith.addf %336, %364 : vector<1x262xf32>
    %c65 = arith.constant 65 : index
    %366 = memref.load %arg2[%c65] : memref<98xf32, #tpu.memory_space<smem>>
    %367 = vector.broadcast %366 : f32 to vector<1x262xf32>
    %368 = arith.mulf %367, %357 : vector<1x262xf32>
    %369 = arith.addf %340, %368 : vector<1x262xf32>
    %c66 = arith.constant 66 : index
    %370 = memref.load %arg2[%c66] : memref<98xf32, #tpu.memory_space<smem>>
    %371 = vector.broadcast %370 : f32 to vector<1x262xf32>
    %372 = arith.mulf %371, %357 : vector<1x262xf32>
    %373 = arith.addf %344, %372 : vector<1x262xf32>
    %c67 = arith.constant 67 : index
    %374 = memref.load %arg2[%c67] : memref<98xf32, #tpu.memory_space<smem>>
    %375 = vector.broadcast %374 : f32 to vector<1x262xf32>
    %376 = arith.mulf %375, %357 : vector<1x262xf32>
    %377 = arith.addf %348, %376 : vector<1x262xf32>
    %c68 = arith.constant 68 : index
    %378 = memref.load %arg2[%c68] : memref<98xf32, #tpu.memory_space<smem>>
    %379 = vector.broadcast %378 : f32 to vector<1x262xf32>
    %380 = arith.mulf %379, %357 : vector<1x262xf32>
    %381 = arith.addf %352, %380 : vector<1x262xf32>
    %c69 = arith.constant 69 : index
    %382 = memref.load %arg2[%c69] : memref<98xf32, #tpu.memory_space<smem>>
    %383 = vector.broadcast %382 : f32 to vector<1x262xf32>
    %384 = arith.mulf %383, %357 : vector<1x262xf32>
    %385 = arith.addf %356, %384 : vector<1x262xf32>
    %386 = vector.extract_strided_slice %88 {offsets = [0, 125], sizes = [1, 262], strides = [1, 1]} : vector<1x512xf32> to vector<1x262xf32>
    %c70 = arith.constant 70 : index
    %387 = memref.load %arg2[%c70] : memref<98xf32, #tpu.memory_space<smem>>
    %388 = vector.broadcast %387 : f32 to vector<1x262xf32>
    %389 = arith.mulf %388, %386 : vector<1x262xf32>
    %390 = arith.addf %361, %389 : vector<1x262xf32>
    %c71 = arith.constant 71 : index
    %391 = memref.load %arg2[%c71] : memref<98xf32, #tpu.memory_space<smem>>
    %392 = vector.broadcast %391 : f32 to vector<1x262xf32>
    %393 = arith.mulf %392, %386 : vector<1x262xf32>
    %394 = arith.addf %365, %393 : vector<1x262xf32>
    %c72 = arith.constant 72 : index
    %395 = memref.load %arg2[%c72] : memref<98xf32, #tpu.memory_space<smem>>
    %396 = vector.broadcast %395 : f32 to vector<1x262xf32>
    %397 = arith.mulf %396, %386 : vector<1x262xf32>
    %398 = arith.addf %369, %397 : vector<1x262xf32>
    %c73 = arith.constant 73 : index
    %399 = memref.load %arg2[%c73] : memref<98xf32, #tpu.memory_space<smem>>
    %400 = vector.broadcast %399 : f32 to vector<1x262xf32>
    %401 = arith.mulf %400, %386 : vector<1x262xf32>
    %402 = arith.addf %373, %401 : vector<1x262xf32>
    %c74 = arith.constant 74 : index
    %403 = memref.load %arg2[%c74] : memref<98xf32, #tpu.memory_space<smem>>
    %404 = vector.broadcast %403 : f32 to vector<1x262xf32>
    %405 = arith.mulf %404, %386 : vector<1x262xf32>
    %406 = arith.addf %377, %405 : vector<1x262xf32>
    %c75 = arith.constant 75 : index
    %407 = memref.load %arg2[%c75] : memref<98xf32, #tpu.memory_space<smem>>
    %408 = vector.broadcast %407 : f32 to vector<1x262xf32>
    %409 = arith.mulf %408, %386 : vector<1x262xf32>
    %410 = arith.addf %381, %409 : vector<1x262xf32>
    %c76 = arith.constant 76 : index
    %411 = memref.load %arg2[%c76] : memref<98xf32, #tpu.memory_space<smem>>
    %412 = vector.broadcast %411 : f32 to vector<1x262xf32>
    %413 = arith.mulf %412, %386 : vector<1x262xf32>
    %414 = arith.addf %385, %413 : vector<1x262xf32>
    %415 = vector.extract_strided_slice %88 {offsets = [0, 141], sizes = [1, 262], strides = [1, 1]} : vector<1x512xf32> to vector<1x262xf32>
    %c77 = arith.constant 77 : index
    %416 = memref.load %arg2[%c77] : memref<98xf32, #tpu.memory_space<smem>>
    %417 = vector.broadcast %416 : f32 to vector<1x262xf32>
    %418 = arith.mulf %417, %415 : vector<1x262xf32>
    %419 = arith.addf %390, %418 : vector<1x262xf32>
    %c78 = arith.constant 78 : index
    %420 = memref.load %arg2[%c78] : memref<98xf32, #tpu.memory_space<smem>>
    %421 = vector.broadcast %420 : f32 to vector<1x262xf32>
    %422 = arith.mulf %421, %415 : vector<1x262xf32>
    %423 = arith.addf %394, %422 : vector<1x262xf32>
    %c79 = arith.constant 79 : index
    %424 = memref.load %arg2[%c79] : memref<98xf32, #tpu.memory_space<smem>>
    %425 = vector.broadcast %424 : f32 to vector<1x262xf32>
    %426 = arith.mulf %425, %415 : vector<1x262xf32>
    %427 = arith.addf %398, %426 : vector<1x262xf32>
    %c80 = arith.constant 80 : index
    %428 = memref.load %arg2[%c80] : memref<98xf32, #tpu.memory_space<smem>>
    %429 = vector.broadcast %428 : f32 to vector<1x262xf32>
    %430 = arith.mulf %429, %415 : vector<1x262xf32>
    %431 = arith.addf %402, %430 : vector<1x262xf32>
    %c81 = arith.constant 81 : index
    %432 = memref.load %arg2[%c81] : memref<98xf32, #tpu.memory_space<smem>>
    %433 = vector.broadcast %432 : f32 to vector<1x262xf32>
    %434 = arith.mulf %433, %415 : vector<1x262xf32>
    %435 = arith.addf %406, %434 : vector<1x262xf32>
    %c82 = arith.constant 82 : index
    %436 = memref.load %arg2[%c82] : memref<98xf32, #tpu.memory_space<smem>>
    %437 = vector.broadcast %436 : f32 to vector<1x262xf32>
    %438 = arith.mulf %437, %415 : vector<1x262xf32>
    %439 = arith.addf %410, %438 : vector<1x262xf32>
    %c83 = arith.constant 83 : index
    %440 = memref.load %arg2[%c83] : memref<98xf32, #tpu.memory_space<smem>>
    %441 = vector.broadcast %440 : f32 to vector<1x262xf32>
    %442 = arith.mulf %441, %415 : vector<1x262xf32>
    %443 = arith.addf %414, %442 : vector<1x262xf32>
    %444 = vector.extract_strided_slice %88 {offsets = [0, 157], sizes = [1, 262], strides = [1, 1]} : vector<1x512xf32> to vector<1x262xf32>
    %c84 = arith.constant 84 : index
    %445 = memref.load %arg2[%c84] : memref<98xf32, #tpu.memory_space<smem>>
    %446 = vector.broadcast %445 : f32 to vector<1x262xf32>
    %447 = arith.mulf %446, %444 : vector<1x262xf32>
    %448 = arith.addf %419, %447 : vector<1x262xf32>
    %c85 = arith.constant 85 : index
    %449 = memref.load %arg2[%c85] : memref<98xf32, #tpu.memory_space<smem>>
    %450 = vector.broadcast %449 : f32 to vector<1x262xf32>
    %451 = arith.mulf %450, %444 : vector<1x262xf32>
    %452 = arith.addf %423, %451 : vector<1x262xf32>
    %c86 = arith.constant 86 : index
    %453 = memref.load %arg2[%c86] : memref<98xf32, #tpu.memory_space<smem>>
    %454 = vector.broadcast %453 : f32 to vector<1x262xf32>
    %455 = arith.mulf %454, %444 : vector<1x262xf32>
    %456 = arith.addf %427, %455 : vector<1x262xf32>
    %c87 = arith.constant 87 : index
    %457 = memref.load %arg2[%c87] : memref<98xf32, #tpu.memory_space<smem>>
    %458 = vector.broadcast %457 : f32 to vector<1x262xf32>
    %459 = arith.mulf %458, %444 : vector<1x262xf32>
    %460 = arith.addf %431, %459 : vector<1x262xf32>
    %c88 = arith.constant 88 : index
    %461 = memref.load %arg2[%c88] : memref<98xf32, #tpu.memory_space<smem>>
    %462 = vector.broadcast %461 : f32 to vector<1x262xf32>
    %463 = arith.mulf %462, %444 : vector<1x262xf32>
    %464 = arith.addf %435, %463 : vector<1x262xf32>
    %c89 = arith.constant 89 : index
    %465 = memref.load %arg2[%c89] : memref<98xf32, #tpu.memory_space<smem>>
    %466 = vector.broadcast %465 : f32 to vector<1x262xf32>
    %467 = arith.mulf %466, %444 : vector<1x262xf32>
    %468 = arith.addf %439, %467 : vector<1x262xf32>
    %c90 = arith.constant 90 : index
    %469 = memref.load %arg2[%c90] : memref<98xf32, #tpu.memory_space<smem>>
    %470 = vector.broadcast %469 : f32 to vector<1x262xf32>
    %471 = arith.mulf %470, %444 : vector<1x262xf32>
    %472 = arith.addf %443, %471 : vector<1x262xf32>
    %473 = vector.extract_strided_slice %88 {offsets = [0, 173], sizes = [1, 262], strides = [1, 1]} : vector<1x512xf32> to vector<1x262xf32>
    %c91 = arith.constant 91 : index
    %474 = memref.load %arg2[%c91] : memref<98xf32, #tpu.memory_space<smem>>
    %475 = vector.broadcast %474 : f32 to vector<1x262xf32>
    %476 = arith.mulf %475, %473 : vector<1x262xf32>
    %477 = arith.addf %448, %476 : vector<1x262xf32>
    %c92 = arith.constant 92 : index
    %478 = memref.load %arg2[%c92] : memref<98xf32, #tpu.memory_space<smem>>
    %479 = vector.broadcast %478 : f32 to vector<1x262xf32>
    %480 = arith.mulf %479, %473 : vector<1x262xf32>
    %481 = arith.addf %452, %480 : vector<1x262xf32>
    %c93 = arith.constant 93 : index
    %482 = memref.load %arg2[%c93] : memref<98xf32, #tpu.memory_space<smem>>
    %483 = vector.broadcast %482 : f32 to vector<1x262xf32>
    %484 = arith.mulf %483, %473 : vector<1x262xf32>
    %485 = arith.addf %456, %484 : vector<1x262xf32>
    %c94 = arith.constant 94 : index
    %486 = memref.load %arg2[%c94] : memref<98xf32, #tpu.memory_space<smem>>
    %487 = vector.broadcast %486 : f32 to vector<1x262xf32>
    %488 = arith.mulf %487, %473 : vector<1x262xf32>
    %489 = arith.addf %460, %488 : vector<1x262xf32>
    %c95 = arith.constant 95 : index
    %490 = memref.load %arg2[%c95] : memref<98xf32, #tpu.memory_space<smem>>
    %491 = vector.broadcast %490 : f32 to vector<1x262xf32>
    %492 = arith.mulf %491, %473 : vector<1x262xf32>
    %493 = arith.addf %464, %492 : vector<1x262xf32>
    %c96 = arith.constant 96 : index
    %494 = memref.load %arg2[%c96] : memref<98xf32, #tpu.memory_space<smem>>
    %495 = vector.broadcast %494 : f32 to vector<1x262xf32>
    %496 = arith.mulf %495, %473 : vector<1x262xf32>
    %497 = arith.addf %468, %496 : vector<1x262xf32>
    %c97 = arith.constant 97 : index
    %498 = memref.load %arg2[%c97] : memref<98xf32, #tpu.memory_space<smem>>
    %499 = vector.broadcast %498 : f32 to vector<1x262xf32>
    %500 = arith.mulf %499, %473 : vector<1x262xf32>
    %501 = arith.addf %472, %500 : vector<1x262xf32>
    %cst_33 = arith.constant 0.000000e+00 : f32
    %502 = vector.broadcast %cst_33 : f32 to vector<1x256xf32>
    %503 = vector.broadcast %80 : f32 to vector<1x256xf32>
    %504 = arith.addf %502, %503 : vector<1x256xf32>
    %505 = vector.extract_strided_slice %477 {offsets = [0, 0], sizes = [1, 256], strides = [1, 1]} : vector<1x262xf32> to vector<1x256xf32>
    %506 = arith.mulf %25, %505 : vector<1x256xf32>
    %507 = arith.addf %504, %506 : vector<1x256xf32>
    %508 = vector.extract_strided_slice %481 {offsets = [0, 1], sizes = [1, 256], strides = [1, 1]} : vector<1x262xf32> to vector<1x256xf32>
    %509 = arith.mulf %34, %508 : vector<1x256xf32>
    %510 = arith.addf %507, %509 : vector<1x256xf32>
    %511 = vector.extract_strided_slice %485 {offsets = [0, 2], sizes = [1, 256], strides = [1, 1]} : vector<1x262xf32> to vector<1x256xf32>
    %512 = arith.mulf %43, %511 : vector<1x256xf32>
    %513 = arith.addf %510, %512 : vector<1x256xf32>
    %514 = vector.extract_strided_slice %489 {offsets = [0, 3], sizes = [1, 256], strides = [1, 1]} : vector<1x262xf32> to vector<1x256xf32>
    %515 = arith.mulf %52, %514 : vector<1x256xf32>
    %516 = arith.addf %513, %515 : vector<1x256xf32>
    %517 = vector.extract_strided_slice %493 {offsets = [0, 4], sizes = [1, 256], strides = [1, 1]} : vector<1x262xf32> to vector<1x256xf32>
    %518 = arith.mulf %61, %517 : vector<1x256xf32>
    %519 = arith.addf %516, %518 : vector<1x256xf32>
    %520 = vector.extract_strided_slice %497 {offsets = [0, 5], sizes = [1, 256], strides = [1, 1]} : vector<1x262xf32> to vector<1x256xf32>
    %521 = arith.mulf %70, %520 : vector<1x256xf32>
    %522 = arith.addf %519, %521 : vector<1x256xf32>
    %523 = vector.extract_strided_slice %501 {offsets = [0, 6], sizes = [1, 256], strides = [1, 1]} : vector<1x262xf32> to vector<1x256xf32>
    %524 = arith.mulf %79, %523 : vector<1x256xf32>
    %525 = arith.addf %522, %524 : vector<1x256xf32>
    %cst_34 = arith.constant 0.000000e+00 : f32
    %526 = vector.broadcast %cst_34 : f32 to vector<1x256xf32>
    %527 = arith.subf %526, %525 : vector<1x256xf32>
    %528 = math.exp %527 : vector<1x256xf32>
    %cst_35 = arith.constant 1.000000e+00 : f32
    %529 = vector.broadcast %cst_35 : f32 to vector<1x256xf32>
    %530 = arith.addf %529, %528 : vector<1x256xf32>
    %cst_36 = arith.constant 1.000000e+00 : f32
    %531 = vector.broadcast %cst_36 : f32 to vector<1x256xf32>
    %532 = arith.divf %531, %530 : vector<1x256xf32>
    %c0_37 = arith.constant 0 : index
    %c0_38 = arith.constant 0 : index
    %c0_39 = arith.constant 0 : index
    %533 = vector.load %arg1[%c0_37, %c0_38, %c0_39] : memref<1x4x256xf32, #tpu.memory_space<vmem>>, vector<1x4x256xf32>
    %534 = vector.shape_cast %532 : vector<1x256xf32> to vector<1x1x256xf32>
    %535 = vector.broadcast %534 : vector<1x1x256xf32> to vector<1x4x256xf32>
    %536 = arith.mulf %533, %535 : vector<1x4x256xf32>
    %c0_40 = arith.constant 0 : index
    %c0_41 = arith.constant 0 : index
    %c0_42 = arith.constant 0 : index
    %537 = vector.load %arg4[%c0_40, %c0_41, %c0_42] : memref<1x4x256xf32, #tpu.memory_space<vmem>>, vector<1x4x256xf32>
    tpu.vector_store %arg4[%c0_40, %c0_41, %c0_42], %536 {strides = array<i32>} : memref<1x4x256xf32, #tpu.memory_space<vmem>>, vector<1x4x256xf32>,
    return
  }
  func.func @transform_0(%arg0: i32) -> (i32, i32, i32) {
    %c0_i32 = arith.constant 0 : i32
    %c0_i32_0 = arith.constant 0 : i32
    %c0_i32_1 = arith.constant 0 : i32
    return %arg0, %c0_i32, %c0_i32_0 : i32, i32, i32
  }
  func.func @transform_1(%arg0: i32) -> i32 {
    %c0_i32 = arith.constant 0 : i32
    %c0_i32_0 = arith.constant 0 : i32
    return %c0_i32 : i32
  }
  func.func @transform_2(%arg0: i32) -> i32 {
    %c0_i32 = arith.constant 0 : i32
    %c0_i32_0 = arith.constant 0 : i32
    return %c0_i32 : i32
  }
  func.func @transform_3(%arg0: i32) -> (i32, i32, i32) {
    %c0_i32 = arith.constant 0 : i32
    %c0_i32_0 = arith.constant 0 : i32
    %c0_i32_1 = arith.constant 0 : i32
    return %arg0, %c0_i32, %c0_i32_0 : i32, i32, i32
  }
}

</mosaic_0001>

<bundles_post_ra>
// kernel: tpu_custom_call.1
= control target key start
LH: loop header
LB: loop body
LE: loop exit
PB: predicated region body
PF: predicated region fallthrough
CT: control target
= control target key end

     0   :  { %s4883_s0 = inlined_call_operand.hbm [shape: f32[2,4,256], index: 0, kind: input, shape index: {}]   ;;  %s4884_s1 = inlined_call_operand.vmem [shape: f32[98], index: 1, kind: input, shape index: {}]   ;;  %s4885_s2 = inlined_call_operand.<no memory space> [shape: f32[1], index: 2, kind: input, shape index: {}]   ;;  %s4886_s3 = inlined_call_operand.hbm [shape: f32[2,4,256], index: 3, kind: output, shape index: {}]  }
   0x1   :  { %8 = sst [smem:[#allocation2]] %s4885_s2 }
   0x2   :  { %9 = vsyncpa [#allocation4], 0 }
   0x3   :  { %11 = vsyncpa [#allocation4 + $0x1], 0 }
   0x4   :  { %12 = vsyncpa [#allocation6], 0 }
   0x5   :  { %13 = vsyncpa [#allocation5], 0 }
   0x6   :  { %15 = vsyncpa [#allocation5 + $0x1], 0  ;;  %s2969_s14 = smov 0   ;;  %s2971_s15 = smov 0  }
   0x7   :  { %s2973_s16 = smov 0   ;;  %s2975_s17 = smov 0  }
   0x8 LB: > { %s2990_s2 = sadd.s32 4294967295, %s2930_s17   ;;  %s2610_s18 = sadd.s32 4294967294, %s2930_s17   ;;  %s2930_s17 = sphi %s2975_s17, %s5206_s17   ;;  %s2926_s16 = sphi %s2973_s16, %s5205_s16   ;;  %s2922_s15 = sphi %s2971_s15, %s5204_s15   ;;  %s2918_s14 = sphi %s2969_s14, %s5203_s14  }
   0x9   : > { %p41_p0 = scmp.ne.s32.totalorder %s2922_s15, %s2918_s14  ;;  %p42_p1 = scmp.eq.s32.totalorder %s2990_s2, 0 }
   0xa   : > { %p107_p2 = scmp.eq.s32.totalorder %s2990_s2, 1  ;;  %p113_p3 = scmp.eq.s32.totalorder %s2610_s18, 1 }
   0xb   : > { %p2999_p4 = por %p42_p1, %p41_p0  ;;  %p2611_p5 = scmp.ge.s32.totalorder %s2930_s17, 1 }
   0xc   : > { %p3004_p6 = por %p113_p3, %p41_p0  ;;  %p120_p7 = scmp.lt.s32.totalorder %s2930_s17, 3 }
   0xd   : > { %s132_s23 = sshll.u32 %s4884_s1, 4  ;;  %s3020_s25 = sadd.s32 1, %s2930_s17   ;;  %s133_s23 = int_to_ptr.vmem [resolvable:$true] %s132_s23 }
   0xe   : > { %p3012_p8 = pnand %p2611_p5, %p120_p7  ;;  %s25_s26 = ssub.s32 %s2930_s17, %s3020_s25 }
   0xf   : > { %p26_p12 = scmp.eq.s32.totalorder %s25_s26, 0  ;;  %s28_s27 = sadd.s32 1, %s2926_s16 }
  0x10   : > { %p2745_p10 = pneg %p3012_p8  ;;  %p35_p13 = scmp.ne.s32.totalorder %s2926_s16, %s2922_s15 }
  0x11   : > { %s2932_s28 = smov [#allocation7]   ;;  %p36_p0 = scmp.eq.s32.totalorder %s2930_s17, 0 }
  0x12   : > { %p2746_p11 = pnand %p2745_p10, %p42_p1  ;;  %p3035_p3 = por %p107_p2, %p35_p13 }
  0x13   : > { %s3030_s29 = scalar_select %p26_p12, %s2926_s16, %s28_s27  }
  0x14   : > { %2748 = dma.vmem_to_smem (!%p2746_p11), %s133_s23, 16, %s2932_s28, [#allocation6]  }
  0x15   : > { %s146_s4 = sand.u32 1, %s2926_s16   ;;  %p37_p5 = por %p36_p0, %p35_p13 }
  0x16   : > { %p2758_p7 = scmp.lt.s32.totalorder %s2930_s17, 2  ;;  %s2614_s5 = sshll.u32 %s146_s4, 3 }
  0x17   : > { %s2735_s6 = sshll.u32 %s2930_s17, 3  ;;  %s150_s11 = scalar_lea.vmem [#allocation3], %s2614_s5 }
  0x18   : > { %s155_s9 = scalar_lea.hbm %s4883_s0, %s2735_s6  ;;  %s159_s12 = sshll.u32 %s150_s11, 4  ;;  %s160_s12 = int_to_ptr.vmem [resolvable:$true] %s159_s12 }
  0x19   : > { %s157_s10 = sshll.u32 %s155_s9, 4  ;;  %p3045_p10 = pnand %p2758_p7, %p37_p5  ;;  %s158_s10 = int_to_ptr.hbm [resolvable:$true] %s157_s10 }
  0x1a   : > { %s147_s18 = scalar_lea.sflag [#allocation4], %s146_s4  ;;  %s2830_s21 = sshra.s32 %s158_s10, 4  ;;  %s2831_s21 = int_to_ptr.hbm [resolvable:$true] %s2830_s21 }
  0x1b   : > { %s2832_s22 = scalar_lea.hbm %s2831_s21, 8  ;;  %p2834_p11 = pneg %p3045_p10 }
  0x1c   : > { %p2833_p2 = scmp.ne.s32.totalorder %s2831_s21, %s2832_s22  ;;  %s2837_s27 = scalar_lea.hbm %s4883_s0, 16 }
  0x1d   : > { %p2838_p0 = scmp.lt.s32.totalorder %s2831_s21, %s4883_s0  ;;  %p2839_p5 = scmp.lt.s32.totalorder %s2837_s27, %s2832_s22 }
  0x1e   : > { %p2835_p12 = pnand %p2834_p11, %p2833_p2 }
  0x1f   : > { %p2840_p7 = por %p2839_p5, %p2838_p0 }
  0x20   : > { %p2836_p13 = pneg %p2835_p12 }
  0x22   : > { %p2841_p9 = pnand %p2840_p7, %p2836_p13 }
  0x24   : > { %2844 = shalt.err (!%p2841_p9)
}
  0x25   : > { %2752 = dma.hbm_to_vmem [thread:$0]  (!%p3045_p10), %s158_s10, 128, %s160_s12, %s147_s18  }
  0x26   : > { %168 = sbr.rel (%p3012_p8) target bundleno = 1012 (0x3f4), region = 32 }
  0x2b   : > { %s3062_s4 = sand.u32 1, %s2922_s15  }
  0x2c   : > { %s2618_s6 = sshll.u32 %s3062_s4, 3  ;;  %s171_s7 = scalar_lea.sflag [#allocation4], %s3062_s4 }
  0x2d   : > { %s174_s8 = scalar_lea.vmem [#allocation3], %s2618_s6 }
  0x2e   : > { %2905 = dma.done.wait (%p2999_p4), %s171_s7, 128  }
  0x2f   : > { %2907 = vsyncadd (%p2999_p4), %s171_s7, 4294967168 }
  0x30   : > { %2909 = dma.done.wait (%p42_p1), [#allocation6], 16  }
  0x31   : > { %2911 = vsyncadd (%p42_p1), [#allocation6], 4294967280 }
  0x32   : > { %185 = sfence }
  0x33   : > { %s2639_s24 = sld [smem:[#allocation7 + $0x7]]  ;;  %v3076_v0 = vld [vmem:[%s174_s8] sm:$0xff]  ;;  %vm321_vm0 = vcmask 1043456   ;;  %s2933_s19 = smov 112   ;;  %vm427_vm1 = vcmask 916480   ;;  %vm582_vm2 = vcmask 785408  }
  0x34   : > { %4968 = vst [vmem:[#allocation12_spill] sm:$0xff] %v3076_v0  ;;  %s2640_s9 = sld [smem:[#allocation7 + $0x8]]  ;;  %s2934_s23 = smov 96   ;;  %vm737_vm3 = vcmask 654336   ;;  %vm899_vm4 = vcmask 523264   ;;  %vm1054_vm5 = vcmask 392192  }
  0x35   : > { %316 = vst [vmem:[#allocation1] ss:$2 sm:$0xff] %v3076_v0  ;;  %s2641_s10 = sld [smem:[#allocation7 + $0x9]]  ;;  %vm1209_vm6 = vcmask 261120   ;;  %vm2348_vm7 = vcmask 416768   ;;  %vm2366_vm11 = vcmask 408576  }
  0x36   : > { %s2642_s11 = sld [smem:[#allocation7 + $0xa]]  ;;  %vm2384_vm14 = vcmask 400384  }
  0x37   : > { %s2643_s12 = sld [smem:[#allocation7 + $0xb]] }
  0x38   : > { %s2644_s13 = sld [smem:[#allocation7 + $0xc]] }
  0x39   : > { %v414_v1 = vstv %s2639_s24  ;;  %s2645_s18 = sld [smem:[#allocation7 + $0xd]] }
  0x3a   : > { %v415_v2 = vmul.f32 0.0, %v414_v1  ;;  %v437_v3 = vstv %s2640_s9  ;;  %s2646_s21 = sld [smem:[#allocation7 + $0xe]]  ;;  %s2935_s9 = smov 80  }
  0x3b   : > { %v438_v4 = vmul.f32 0.0, %v437_v3  ;;  %v459_v8 = vstv %s2641_s10  ;;  %s2647_s22 = sld [smem:[#allocation7 + $0xf]] }
  0x3c   : > { %v318_v5 = vld.sshfl [vmem:[#allocation1 + $0x8] sm:$0xff pattern:$0x75316420]  ;;  %421 = vrot.lane.b32.xlu0 %v415_v2, %s2933_s19  ;;  %v317_v7 = vld.sshfl [vmem:[#allocation1] sm:$0xff pattern:$0x75316420]  ;;  %v481_v20 = vstv %s2642_s11 }
  0x3d   : > { %v329_v6 = vsel %vm321_vm0, %v318_v5, -inf  ;;  %444 = vrot.lane.b32.xlu1 %v438_v4, %s2933_s19  ;;  %v322_v10 = vsel %vm321_vm0, %v317_v7, -inf  ;;  %336 = vst [vmem:[#allocation1] ss:$2 sm:$0xff] %v3076_v0  ;;  %v460_v13 = vmul.f32 0.0, %v459_v8  ;;  %v482_v24 = vmul.f32 0.0, %v481_v20 }
  0x3e   : > { %v330_v9 = vrot.slane %v329_v6, 4  ;;  %v323_v11 = vrot.slane %v322_v10, 4  ;;  %v503_v30 = vstv %s2643_s12  ;;  %v525_v34 = vstv %s2644_s13  ;;  %s2648_s26 = sld [smem:[#allocation7 + $0x10]] }
  0x3f   : > { %v504_v33 = vmul.f32 0.0, %v503_v30  ;;  %v526_v37 = vmul.f32 0.0, %v525_v34  ;;  %v547_v38 = vstv %s2645_s18  ;;  %s2649_s27 = sld [smem:[#allocation7 + $0x11]] }
  0x40   : > { %v331_v12 = vmax.f32 %v329_v6, %v330_v9  ;;  %v324_v14 = vmax.f32 %v322_v10, %v323_v11  ;;  %v548_v41 = vmul.f32 0.0, %v547_v38  ;;  %v569_v42 = vstv %s2646_s21  ;;  %s2650_s28 = sld [smem:[#allocation7 + $0x12]] }
  0x41   : > { %v570_v45 = vmul.f32 0.0, %v569_v42  ;;  %v592_v46 = vstv %s2647_s22  ;;  %s2651_s5 = sld [smem:[#allocation7 + $0x13]] }
  0x42   : > { %v332_v15 = vrot.slane %v331_v12, 2  ;;  %v325_v16 = vrot.slane %v324_v14, 2  ;;  %v593_v49 = vmul.f32 0.0, %v592_v46  ;;  %s2652_s7 = sld [smem:[#allocation7 + $0x14]] }
  0x43   : > { %s2653_s8 = sld [smem:[#allocation7 + $0x15]] }
  0x44   : > { %v333_v17 = vmax.f32 %v331_v12, %v332_v15  ;;  %466 = vrot.lane.b32.xlu0 %v460_v13, %s2933_s19  ;;  %v326_v18 = vmax.f32 %v324_v14, %v325_v16  ;;  %v614_v50 = vstv %s2648_s26  ;;  %s2654_s24 = sld [smem:[#allocation7 + $0x16]]  ;;  %s2936_s26 = smov 64  }
  0x45   : > { %v615_v53 = vmul.f32 0.0, %v614_v50  ;;  %v636_v54 = vstv %s2649_s27  ;;  %s2655_s10 = sld [smem:[#allocation7 + $0x17]] }
  0x46   : > { %v334_v19 = vrot.slane %v333_v17, 1  ;;  %v327_v21 = vrot.slane %v326_v18, 1  ;;  %v637_v57 = vmul.f32 0.0, %v636_v54  ;;  %v658_v58 = vstv %s2650_s28  ;;  %s2656_s11 = sld [smem:[#allocation7 + $0x18]] }
  0x47   : > { %v659_v61 = vmul.f32 0.0, %v658_v58  ;;  %v680_v62 = vstv %s2651_s5  ;;  %s2657_s12 = sld [smem:[#allocation7 + $0x19]] }
  0x48   : > { %v3085_v22 = vmax.f32 %v333_v17, %v334_v19  ;;  %v3087_v23 = vmax.f32 %v326_v18, %v327_v21  ;;  %v681_v2 = vmul.f32 0.0, %v680_v62  ;;  %s2658_s13 = sld [smem:[#allocation7 + $0x1a]] }
  0x49   : > { %v724_v7 = vstv %s2653_s8  ;;  %s2659_s18 = sld [smem:[#allocation7 + $0x1b]] }
  0x4a   : > { %v417_v25 = vmul.f32 %v414_v1, %v3085_v22  ;;  %v439_v26 = vmul.f32 %v437_v3, %v3087_v23  ;;  %v461_v27 = vmul.f32 %v459_v8, %v3087_v23  ;;  %v440_v28 = vmul.f32 %v437_v3, %v3085_v22  ;;  %s2660_s21 = sld [smem:[#allocation7 + $0x1c]] }
  0x4b   : > { %v416_v29 = vmul.f32 %v414_v1, %v3087_v23  ;;  %v483_v31 = vmul.f32 %v481_v20, %v3087_v23  ;;  %v462_v32 = vmul.f32 %v459_v8, %v3085_v22  ;;  %v505_v35 = vmul.f32 %v503_v30, %v3087_v23  ;;  %s2661_s22 = sld [smem:[#allocation7 + $0x1d]] }
  0x4c   : > { %425 = vrot.lane.b32.xlu1 %v417_v25, %s2933_s19  ;;  %446 = vrot.lane.b32.xlu2 %v439_v26, %s2933_s19  ;;  %v484_v36 = vmul.f32 %v481_v20, %v3085_v22  ;;  %v527_v39 = vmul.f32 %v525_v34, %v3087_v23  ;;  %v506_v40 = vmul.f32 %v503_v30, %v3085_v22  ;;  %v702_v3 = vstv %s2652_s7  ;;  %s2662_s27 = sld [smem:[#allocation7 + $0x1e]] }
  0x4d   : > { %488 = vrot.lane.b32.xlu0 %v482_v24, %s2933_s19  ;;  %v549_v43 = vmul.f32 %v547_v38, %v3087_v23  ;;  %v528_v44 = vmul.f32 %v525_v34, %v3085_v22  ;;  %v571_v47 = vmul.f32 %v569_v42, %v3087_v23  ;;  %v550_v48 = vmul.f32 %v547_v38, %v3085_v22  ;;  %s2663_s28 = sld [smem:[#allocation7 + $0x1f]] }
  0x4e   : > { %v594_v51 = vmul.f32 %v592_v46, %v3087_v23  ;;  %v572_v52 = vmul.f32 %v569_v42, %v3085_v22  ;;  %v616_v55 = vmul.f32 %v614_v50, %v3087_v23  ;;  %v595_v56 = vmul.f32 %v592_v46, %v3085_v22  ;;  %s2664_s5 = sld [smem:[#allocation7 + $0x20]] }
  0x4f   : > { %v638_v59 = vmul.f32 %v636_v54, %v3087_v23  ;;  %v617_v60 = vmul.f32 %v614_v50, %v3085_v22  ;;  %v660_v63 = vmul.f32 %v658_v58, %v3087_v23  ;;  %v639_v1 = vmul.f32 %v636_v54, %v3085_v22  ;;  %s2665_s7 = sld [smem:[#allocation7 + $0x21]] }
  0x50   : > { %v682_v4 = vmul.f32 %v680_v62, %v3087_v23  ;;  %v661_v5 = vmul.f32 %v658_v58, %v3085_v22  ;;  %v703_v6 = vmul.f32 0.0, %v702_v3  ;;  %v704_v9 = vmul.f32 %v702_v3, %v3087_v23  ;;  %s2666_s8 = sld [smem:[#allocation7 + $0x22]] }
  0x51   : > { %v683_v10 = vmul.f32 %v680_v62, %v3085_v22  ;;  %v725_v11 = vmul.f32 0.0, %v724_v7  ;;  %v748_v12 = vstv %s2654_s24  ;;  %v726_v15 = vmul.f32 %v724_v7, %v3087_v23  ;;  %s2667_s24 = sld [smem:[#allocation7 + $0x23]] }
  0x52   : > { %v705_v16 = vmul.f32 %v702_v3, %v3085_v22  ;;  %v749_v17 = vmul.f32 0.0, %v748_v12  ;;  %v771_v19 = vstv %s2655_s10  ;;  %v750_v24 = vmul.f32 %v748_v12, %v3087_v23  ;;  %s2668_s10 = sld [smem:[#allocation7 + $0x24]] }
  0x53   : > { %v727_v25 = vmul.f32 %v724_v7, %v3085_v22  ;;  %v772_v26 = vmul.f32 0.0, %v771_v19  ;;  %v840_v42 = vstv %s2658_s13  ;;  %v931_v7 = vstv %s2662_s27  ;;  %s2670_s13 = sld [smem:[#allocation7 + $0x26]] }
  0x54   : > { %468 = vrot.lane.b32.xlu1 %v461_v27, %s2933_s19  ;;  %448 = vrot.lane.b32.xlu2 %v440_v28, %s2933_s19  ;;  %v794_v28 = vstv %s2656_s11  ;;  %s2937_s11 = smov 48   ;;  %s2674_s27 = sld [smem:[#allocation7 + $0x2a]] }
  0x55   : > { %423 = vrot.lane.b32.xlu0 %v416_v29, %s2933_s19  ;;  %v796_v38 = vmul.f32 %v794_v28, %v3087_v23  ;;  %v797_v46 = vmul.f32 %v794_v28, %v3085_v22 }
  0x5c   : > { %490 = vrot.lane.b32.xlu1 %v483_v31, %s2933_s19  ;;  %470 = vrot.lane.b32.xlu2 %v462_v32, %s2933_s19  ;;  %v773_v31 = vmul.f32 %v771_v19, %v3087_v23  ;;  %v751_v32 = vmul.f32 %v748_v12, %v3085_v22 }
  0x5d   : > { %510 = vrot.lane.b32.xlu0 %v504_v33, %s2933_s19  ;;  %v795_v33 = vmul.f32 0.0, %v794_v28 }
  0x64   : > { %512 = vrot.lane.b32.xlu1 %v505_v35, %s2933_s19  ;;  %492 = vrot.lane.b32.xlu2 %v484_v36, %s2933_s19  ;;  %v817_v35 = vstv %s2657_s12  ;;  %s2669_s12 = sld [smem:[#allocation7 + $0x25]] }
  0x65   : > { %532 = vrot.lane.b32.xlu0 %v526_v37, %s2933_s19 }
  0x6c   : > { %534 = vrot.lane.b32.xlu1 %v527_v39, %s2933_s19  ;;  %514 = vrot.lane.b32.xlu2 %v506_v40, %s2933_s19  ;;  %v774_v39 = vmul.f32 %v771_v19, %v3085_v22  ;;  %v818_v40 = vmul.f32 0.0, %v817_v35 }
  0x6d   : > { %554 = vrot.lane.b32.xlu0 %v548_v41, %s2933_s19 }
  0x74   : > { %556 = vrot.lane.b32.xlu1 %v549_v43, %s2933_s19  ;;  %536 = vrot.lane.b32.xlu2 %v528_v44, %s2933_s19 }
  0x75   : > { %576 = vrot.lane.b32.xlu0 %v570_v45, %s2934_s23  ;;  %v819_v45 = vmul.f32 %v817_v35, %v3087_v23 }
  0x7c   : > { %578 = vrot.lane.b32.xlu1 %v571_v47, %s2934_s23  ;;  %558 = vrot.lane.b32.xlu2 %v550_v48, %s2933_s19  ;;  %v841_v47 = vmul.f32 0.0, %v840_v42 }
  0x7d   : > { %599 = vrot.lane.b32.xlu0 %v593_v49, %s2934_s23  ;;  %v863_v49 = vstv %s2659_s18  ;;  %s2671_s18 = sld [smem:[#allocation7 + $0x27]] }
  0x7e   : > { %v864_v54 = vmul.f32 0.0, %v863_v49 }
  0x84   : > { %601 = vrot.lane.b32.xlu1 %v594_v51, %s2934_s23  ;;  %580 = vrot.lane.b32.xlu2 %v572_v52, %s2934_s23  ;;  %v842_v52 = vmul.f32 %v840_v42, %v3087_v23 }
  0x85   : > { %621 = vrot.lane.b32.xlu0 %v615_v53, %s2934_s23  ;;  %v820_v53 = vmul.f32 %v817_v35, %v3085_v22 }
  0x8c   : > { %623 = vrot.lane.b32.xlu1 %v616_v55, %s2934_s23  ;;  %603 = vrot.lane.b32.xlu2 %v595_v56, %s2934_s23  ;;  %v886_v56 = vstv %s2660_s21  ;;  %s2672_s21 = sld [smem:[#allocation7 + $0x28]] }
  0x8d   : > { %643 = vrot.lane.b32.xlu0 %v637_v57, %s2934_s23  ;;  %v888_v3 = vmul.f32 %v886_v56, %v3085_v22  ;;  %v889_v12 = vmul.f32 0.0, %v886_v56 }
  0x94   : > { %645 = vrot.lane.b32.xlu1 %v638_v59, %s2934_s23  ;;  %625 = vrot.lane.b32.xlu2 %v617_v60, %s2934_s23  ;;  %v865_v59 = vmul.f32 %v863_v49, %v3087_v23  ;;  %v843_v60 = vmul.f32 %v840_v42, %v3085_v22 }
  0x95   : > { %665 = vrot.lane.b32.xlu0 %v659_v61, %s2934_s23  ;;  %v887_v61 = vmul.f32 %v886_v56, %v3087_v23  ;;  %v1019_v56 = vstv %s2666_s8  ;;  %s2677_s8 = sld [smem:[#allocation7 + $0x2d]] }
  0x9c   : > { %667 = vrot.lane.b32.xlu1 %v660_v63, %s2934_s23  ;;  %647 = vrot.lane.b32.xlu2 %v639_v1, %s2934_s23  ;;  %v909_v63 = vstv %s2661_s22  ;;  %s2673_s22 = sld [smem:[#allocation7 + $0x29]] }
  0x9d   : > { %687 = vrot.lane.b32.xlu0 %v681_v2, %s2934_s23 }
  0xa4   : > { %689 = vrot.lane.b32.xlu1 %v682_v4, %s2934_s23  ;;  %669 = vrot.lane.b32.xlu2 %v661_v5, %s2934_s23  ;;  %v866_v4 = vmul.f32 %v863_v49, %v3085_v22  ;;  %v910_v5 = vmul.f32 %v909_v63, %v3087_v23 }
  0xa5   : > { %709 = vrot.lane.b32.xlu0 %v703_v6, %s2934_s23 }
  0xa6   : > { %v3150_v8 = vpop.permute.xlu2 %446 }
  0xac   : > { %711 = vrot.lane.b32.xlu1 %v704_v9, %s2934_s23  ;;  %691 = vrot.lane.b32.xlu2 %v683_v10, %s2934_s23 }
  0xad   : > { %731 = vrot.lane.b32.xlu0 %v725_v11, %s2935_s9  ;;  %v911_v11 = vmul.f32 %v909_v63, %v3085_v22 }
  0xae   : > { %v3157_v13 = vpop.permute.xlu2 %448  ;;  %v3159_v14 = vpop.permute.xlu0 %421 }
  0xaf   : > { %v3164_v18 = vpop.permute.xlu1 %444 }
  0xb4   : > { %733 = vrot.lane.b32.xlu1 %v726_v15, %s2935_s9  ;;  %713 = vrot.lane.b32.xlu2 %v705_v16, %s2934_s23  ;;  %v932_v15 = vmul.f32 %v931_v7, %v3087_v23 }
  0xb5   : > { %755 = vrot.lane.b32.xlu0 %v749_v17, %s2935_s9  ;;  %v953_v17 = vstv %s2663_s28  ;;  %s2675_s28 = sld [smem:[#allocation7 + $0x2b]] }
  0xb6   : > { %v3168_v20 = vpop.permute.xlu2 %470  ;;  %v3170_v21 = vpop.permute.xlu0 %466  ;;  %v954_v28 = vmul.f32 %v953_v17, %v3087_v23 }
  0xbc   : > { %757 = vrot.lane.b32.xlu1 %v750_v24, %s2935_s9  ;;  %735 = vrot.lane.b32.xlu2 %v727_v25, %s2935_s9  ;;  %v933_v25 = vmul.f32 %v931_v7, %v3085_v22 }
  0xbd   : > { %778 = vrot.lane.b32.xlu0 %v772_v26, %s2935_s9  ;;  %v912_v26 = vmul.f32 0.0, %v909_v63 }
  0xbe   : > { %v3177_v27 = vpop.permute.xlu1 %425  ;;  %v3179_v29 = vpop.permute.xlu2 %492 }
  0xbf   : > { %v3181_v30 = vpop.permute.xlu0 %488 }
  0xc4   : > { %780 = vrot.lane.b32.xlu1 %v773_v31, %s2935_s9  ;;  %759 = vrot.lane.b32.xlu2 %v751_v32, %s2935_s9  ;;  %v975_v32 = vstv %s2664_s5  ;;  %s2938_s5 = smov 32  }
  0xc5   : > { %801 = vrot.lane.b32.xlu0 %v795_v33, %s2935_s9  ;;  %v977_v49 = vmul.f32 %v975_v32, %v3085_v22  ;;  %v978_v63 = vmul.f32 0.0, %v975_v32 }
  0xc6   : > { %v3188_v34 = vpop.permute.xlu1 %468  ;;  %v3190_v36 = vpop.permute.xlu2 %514 }
  0xc7   : > { %v3192_v37 = vpop.permute.xlu0 %423 }
  0xcc   : > { %803 = vrot.lane.b32.xlu1 %v796_v38, %s2935_s9  ;;  %782 = vrot.lane.b32.xlu2 %v774_v39, %s2935_s9  ;;  %v955_v38 = vmul.f32 %v953_v17, %v3085_v22  ;;  %v934_v39 = vmul.f32 0.0, %v931_v7 }
  0xcd   : > { %824 = vrot.lane.b32.xlu0 %v818_v40, %s2935_s9  ;;  %v976_v40 = vmul.f32 %v975_v32, %v3087_v23 }
  0xce   : > { %v3199_v41 = vpop.permute.xlu1 %490  ;;  %v3201_v43 = vpop.permute.xlu2 %536 }
  0xcf   : > { %v3203_v44 = vpop.permute.xlu0 %510 }
  0xd4   : > { %826 = vrot.lane.b32.xlu1 %v819_v45, %s2935_s9  ;;  %805 = vrot.lane.b32.xlu2 %v797_v46, %s2935_s9  ;;  %v997_v45 = vstv %s2665_s7  ;;  %s2676_s7 = sld [smem:[#allocation7 + $0x2c]] }
  0xd5   : > { %847 = vrot.lane.b32.xlu0 %v841_v47, %s2935_s9 }
  0xd6   : > { %v3210_v48 = vpop.permute.xlu1 %512  ;;  %v3212_v50 = vpop.permute.xlu2 %558 }
  0xd7   : > { %v3214_v51 = vpop.permute.xlu0 %532 }
  0xdc   : > { %849 = vrot.lane.b32.xlu1 %v842_v52, %s2935_s9  ;;  %828 = vrot.lane.b32.xlu2 %v820_v53, %s2935_s9  ;;  %v956_v52 = vmul.f32 0.0, %v953_v17  ;;  %v998_v53 = vmul.f32 %v997_v45, %v3087_v23 }
  0xdd   : > { %870 = vrot.lane.b32.xlu0 %v864_v54, %s2935_s9 }
  0xde   : > { %v3221_v55 = vpop.permute.xlu1 %534  ;;  %v3223_v57 = vpop.permute.xlu2 %580 }
  0xdf   : > { %v3225_v58 = vpop.permute.xlu0 %554 }
  0xe4   : > { %872 = vrot.lane.b32.xlu1 %v865_v59, %s2935_s9  ;;  %851 = vrot.lane.b32.xlu2 %v843_v60, %s2935_s9 }
  0xe5   : > { %893 = vrot.lane.b32.xlu0 %v887_v61, %s2936_s26  ;;  %v999_v61 = vmul.f32 %v997_v45, %v3085_v22 }
  0xe6   : > { %v3233_v62 = vpop.permute.xlu1 %556  ;;  %v3235_v1 = vpop.permute.xlu2 %603 }
  0xe7   : > { %v3237_v2 = vpop.permute.xlu0 %576 }
  0xec   : > { %895 = vrot.lane.b32.xlu1 %v888_v3, %s2936_s26  ;;  %874 = vrot.lane.b32.xlu2 %v866_v4, %s2935_s9  ;;  %v1020_v3 = vmul.f32 %v1019_v56, %v3087_v23 }
  0xed   : > { %916 = vrot.lane.b32.xlu0 %v910_v5, %s2936_s26  ;;  %v1041_v5 = vstv %s2667_s24  ;;  %s2678_s24 = sld [smem:[#allocation7 + $0x2e]] }
  0xee   : > { %v3245_v6 = vpop.permute.xlu1 %578  ;;  %v3247_v9 = vpop.permute.xlu2 %625  ;;  %v1042_v17 = vmul.f32 %v1041_v5, %v3087_v23 }
  0xef   : > { %4969 = vst [vmem:[#allocation13_spill] sm:$0xff] %v3247_v9  ;;  %v3249_v10 = vpop.permute.xlu0 %599 }
  0xf4   : > { %918 = vrot.lane.b32.xlu1 %v911_v11, %s2936_s26  ;;  %897 = vrot.lane.b32.xlu2 %v889_v12, %s2936_s26  ;;  %v1021_v12 = vmul.f32 %v1019_v56, %v3085_v22 }
  0xf5   : > { %938 = vrot.lane.b32.xlu0 %v932_v15, %s2936_s26  ;;  %v1000_v15 = vmul.f32 0.0, %v997_v45 }
  0xf6   : > { %v3256_v16 = vpop.permute.xlu1 %601  ;;  %v3258_v19 = vpop.permute.xlu2 %647 }
  0xf7   : > { %4970 = vst [vmem:[#allocation14_spill] sm:$0xff] %v3258_v19  ;;  %v3260_v24 = vpop.permute.xlu0 %621 }
  0xfc   : > { %940 = vrot.lane.b32.xlu1 %v933_v25, %s2936_s26  ;;  %920 = vrot.lane.b32.xlu2 %v912_v26, %s2936_s26  ;;  %v1064_v26 = vstv %s2668_s10  ;;  %s2679_s10 = sld [smem:[#allocation7 + $0x2f]] }
  0xfd   : > { %960 = vrot.lane.b32.xlu0 %v954_v28, %s2936_s26 }
  0xfe   : > { %v3267_v31 = vpop.permute.xlu1 %623  ;;  %v3269_v33 = vpop.permute.xlu2 %669 }
  0xff   : > { %4971 = vst [vmem:[#allocation15_spill] sm:$0xff] %v3269_v33  ;;  %v3271_v35 = vpop.permute.xlu0 %643 }
 0x100   : > { %4972 = vst [vmem:[#allocation16_spill] sm:$0xff] %v3271_v35 }
 0x104   : > { %962 = vrot.lane.b32.xlu1 %v955_v38, %s2936_s26  ;;  %942 = vrot.lane.b32.xlu2 %v934_v39, %s2936_s26  ;;  %v1043_v38 = vmul.f32 %v1041_v5, %v3085_v22  ;;  %v1022_v39 = vmul.f32 0.0, %v1019_v56 }
 0x105   : > { %982 = vrot.lane.b32.xlu0 %v976_v40, %s2936_s26  ;;  %v1065_v40 = vmul.f32 %v1064_v26, %v3087_v23 }
 0x106   : > { %v3278_v42 = vpop.permute.xlu1 %645  ;;  %v3280_v46 = vpop.permute.xlu2 %691 }
 0x107   : > { %4973 = vst [vmem:[#allocation17_spill] sm:$0xff] %v3278_v42  ;;  %v3282_v47 = vpop.permute.xlu0 %665 }
 0x108   : > { %4974 = vst [vmem:[#allocation18_spill] sm:$0xff] %v3280_v46 }
 0x109   : > { %4975 = vst [vmem:[#allocation19_spill] sm:$0xff] %v3282_v47 }
 0x10c   : > { %984 = vrot.lane.b32.xlu1 %v977_v49, %s2936_s26  ;;  %964 = vrot.lane.b32.xlu2 %v956_v52, %s2936_s26  ;;  %v1086_v49 = vstv %s2669_s12  ;;  %s2680_s12 = sld [smem:[#allocation7 + $0x30]] }
 0x10d   : > { %1004 = vrot.lane.b32.xlu0 %v998_v53, %s2936_s26  ;;  %v1087_v56 = vmul.f32 %v1086_v49, %v3087_v23 }
 0x10e   : > { %v3289_v54 = vpop.permute.xlu1 %667  ;;  %v3291_v59 = vpop.permute.xlu2 %713 }
 0x10f   : > { %4976 = vst [vmem:[#allocation20_spill] sm:$0xff] %v3289_v54  ;;  %v3293_v60 = vpop.permute.xlu0 %687 }
 0x110   : > { %4977 = vst [vmem:[#allocation21_spill] sm:$0xff] %v3291_v59 }
 0x111   : > { %4978 = vst [vmem:[#allocation22_spill] sm:$0xff] %v3293_v60 }
 0x114   : > { %1006 = vrot.lane.b32.xlu1 %v999_v61, %s2936_s26  ;;  %986 = vrot.lane.b32.xlu2 %v978_v63, %s2936_s26  ;;  %v1066_v61 = vmul.f32 %v1064_v26, %v3085_v22  ;;  %v1044_v63 = vmul.f32 0.0, %v1041_v5 }
 0x115   : > { %1026 = vrot.lane.b32.xlu0 %v1020_v3, %s2936_s26 }
 0x116   : > { %v3300_v4 = vpop.permute.xlu1 %689  ;;  %v3302_v7 = vpop.permute.xlu2 %735 }
 0x117   : > { %4979 = vst [vmem:[#allocation23_spill] sm:$0xff] %v3300_v4  ;;  %v3304_v11 = vpop.permute.xlu0 %709 }
 0x118   : > { %4980 = vst [vmem:[#allocation24_spill] sm:$0xff] %v3302_v7 }
 0x119   : > { %4981 = vst [vmem:[#allocation25_spill] sm:$0xff] %v3304_v11 }
 0x11c   : > { %1028 = vrot.lane.b32.xlu1 %v1021_v12, %s2936_s26  ;;  %1008 = vrot.lane.b32.xlu2 %v1000_v15, %s2936_s26  ;;  %v1108_v12 = vstv %s2670_s13  ;;  %s2688_s13 = sld [smem:[#allocation7 + $0x38]] }
 0x11d   : > { %1048 = vrot.lane.b32.xlu0 %v1042_v17, %s2937_s11  ;;  %v1109_v5 = vmul.f32 %v1108_v12, %v3087_v23  ;;  %v1110_v0 = vmul.f32 %v1108_v12, %v3085_v22 }
 0x11e   : > { %v3311_v25 = vpop.permute.xlu1 %711  ;;  %v3313_v28 = vpop.permute.xlu2 %759 }
 0x11f   : > { %4982 = vst [vmem:[#allocation26_spill] sm:$0xff] %v3311_v25  ;;  %v3315_v32 = vpop.permute.xlu0 %731 }
 0x120   : > { %4983 = vst [vmem:[#allocation27_spill] sm:$0xff] %v3313_v28 }
 0x121   : > { %4984 = vst [vmem:[#allocation28_spill] sm:$0xff] %v3315_v32  ;;  %v451_v32 = vsel %vm427_vm1, %v3150_v8, %v3157_v13 }
 0x124   : > { %1050 = vrot.lane.b32.xlu1 %v1043_v38, %s2937_s11  ;;  %1030 = vrot.lane.b32.xlu2 %v1022_v39, %s2936_s26  ;;  %v1088_v38 = vmul.f32 %v1086_v49, %v3085_v22  ;;  %v1067_v39 = vmul.f32 0.0, %v1064_v26 }
 0x125   : > { %1071 = vrot.lane.b32.xlu0 %v1065_v40, %s2937_s11 }
 0x126   : > { %v3322_v45 = vpop.permute.xlu1 %733  ;;  %v3324_v52 = vpop.permute.xlu2 %782 }
 0x127   : > { %4985 = vst [vmem:[#allocation29_spill] sm:$0xff] %v3322_v45  ;;  %v3326_v53 = vpop.permute.xlu0 %755 }
 0x128   : > { %4986 = vst [vmem:[#allocation30_spill] sm:$0xff] %v3324_v52 }
 0x129   : > { %4987 = vst [vmem:[#allocation31_spill] sm:$0xff] %v3326_v53 }
 0x12c   : > { %1073 = vrot.lane.b32.xlu1 %v1066_v61, %s2937_s11  ;;  %1052 = vrot.lane.b32.xlu2 %v1044_v63, %s2937_s11  ;;  %v1130_v61 = vstv %s2671_s18  ;;  %s2689_s18 = sld [smem:[#allocation7 + $0x39]] }
 0x12d   : > { %1093 = vrot.lane.b32.xlu0 %v1087_v56, %s2937_s11  ;;  %v1131_v26 = vmul.f32 %v1130_v61, %v3087_v23 }
 0x12e   : > { %v3333_v3 = vpop.permute.xlu1 %757  ;;  %v3335_v15 = vpop.permute.xlu2 %805 }
 0x12f   : > { %4988 = vst [vmem:[#allocation32_spill] sm:$0xff] %v3333_v3  ;;  %v3337_v17 = vpop.permute.xlu0 %778 }
 0x130   : > { %4989 = vst [vmem:[#allocation33_spill] sm:$0xff] %v3335_v15  ;;  %v1089_v15 = vmul.f32 0.0, %v1086_v49 }
 0x131   : > { %4990 = vst [vmem:[#allocation34_spill] sm:$0xff] %v3337_v17 }
 0x134   : > { %1095 = vrot.lane.b32.xlu1 %v1088_v38, %s2937_s11  ;;  %1075 = vrot.lane.b32.xlu2 %v1067_v39, %s2937_s11  ;;  %v1152_v39 = vstv %s2672_s21  ;;  %s2690_s21 = sld [smem:[#allocation7 + $0x3a]] }
 0x135   : > { %1115 = vrot.lane.b32.xlu0 %v1109_v5, %s2937_s11  ;;  %v1153_v49 = vmul.f32 %v1152_v39, %v3087_v23 }
 0x136   : > { %v3344_v40 = vpop.permute.xlu1 %780  ;;  %v3346_v63 = vpop.permute.xlu2 %828 }
 0x137   : > { %4991 = vst [vmem:[#allocation35_spill] sm:$0xff] %v3344_v40  ;;  %v3348_v56 = vpop.permute.xlu0 %801  ;;  %v1111_v40 = vmul.f32 0.0, %v1108_v12 }
 0x138   : > { %4992 = vst [vmem:[#allocation36_spill] sm:$0xff] %v3346_v63 }
 0x139   : > { %4993 = vst [vmem:[#allocation37_spill] sm:$0xff] %v3348_v56  ;;  %v1132_v56 = vmul.f32 %v1130_v61, %v3085_v22 }
 0x13c   : > { %1117 = vrot.lane.b32.xlu1 %v1110_v0, %s2937_s11  ;;  %1097 = vrot.lane.b32.xlu2 %v1089_v15, %s2937_s11  ;;  %v1174_v15 = vstv %s2673_s22  ;;  %s2691_s22 = sld [smem:[#allocation7 + $0x3b]] }
 0x13d   : > { %1137 = vrot.lane.b32.xlu0 %v1131_v26, %s2937_s11  ;;  %v1175_v12 = vmul.f32 %v1174_v15, %v3087_v23 }
 0x13e   : > { %v3355_v38 = vpop.permute.xlu1 %803  ;;  %v3357_v5 = vpop.permute.xlu2 %851 }
 0x13f   : > { %4994 = vst [vmem:[#allocation38_spill] sm:$0xff] %v3355_v38  ;;  %v3359_v63 = vpop.permute.xlu0 %824  ;;  %v1133_v38 = vmul.f32 0.0, %v1130_v61 }
 0x140   : > { %4995 = vst [vmem:[#allocation39_spill] sm:$0xff] %v3357_v5 }
 0x141   : > { %4996 = vst [vmem:[#allocation40_spill] sm:$0xff] %v3359_v63  ;;  %v1154_v63 = vmul.f32 %v1152_v39, %v3085_v22 }
 0x144   : > { %1139 = vrot.lane.b32.xlu1 %v1132_v56, %s2937_s11  ;;  %1119 = vrot.lane.b32.xlu2 %v1111_v40, %s2937_s11  ;;  %v1196_v56 = vstv %s2674_s27  ;;  %s2692_s27 = sld [smem:[#allocation7 + $0x3c]] }
 0x145   : > { %1159 = vrot.lane.b32.xlu0 %v1153_v49, %s2937_s11  ;;  %v1197_v61 = vmul.f32 %v1196_v56, %v3087_v23 }
 0x146   : > { %v3366_v0 = vpop.permute.xlu1 %826  ;;  %v3368_v26 = vpop.permute.xlu2 %874 }
 0x147   : > { %4997 = vst [vmem:[#allocation41_spill] sm:$0xff] %v3366_v0  ;;  %v3370_v5 = vpop.permute.xlu0 %847  ;;  %v1155_v0 = vmul.f32 0.0, %v1152_v39  ;;  %v1177_v39 = vmul.f32 0.0, %v1174_v15 }
 0x148   : > { %4998 = vst [vmem:[#allocation42_spill] sm:$0xff] %v3368_v26 }
 0x149   : > { %4999 = vst [vmem:[#allocation43_spill] sm:$0xff] %v3370_v5  ;;  %v1176_v5 = vmul.f32 %v1174_v15, %v3085_v22 }
 0x14c   : > { %1161 = vrot.lane.b32.xlu1 %v1154_v63, %s2937_s11  ;;  %1141 = vrot.lane.b32.xlu2 %v1133_v38, %s2937_s11  ;;  %v1219_v38 = vstv %s2675_s28  ;;  %s2693_s28 = sld [smem:[#allocation7 + $0x3d]] }
 0x14d   : > { %1181 = vrot.lane.b32.xlu0 %v1175_v12, %s2937_s11 }
 0x14e   : > { %v3377_v40 = vpop.permute.xlu1 %849  ;;  %v3379_v49 = vpop.permute.xlu2 %897 }
 0x14f   : > { %5000 = vst [vmem:[#allocation44_spill] sm:$0xff] %v3377_v40  ;;  %v3381_v26 = vpop.permute.xlu0 %870 }
 0x150   : > { %5001 = vst [vmem:[#allocation45_spill] sm:$0xff] %v3379_v49  ;;  %v1220_v49 = vmul.f32 %v1219_v38, %v3087_v23 }
 0x151   : > { %5002 = vst [vmem:[#allocation46_spill] sm:$0xff] %v3381_v26  ;;  %v1198_v26 = vmul.f32 %v1196_v56, %v3085_v22 }
 0x154   : > { %1183 = vrot.lane.b32.xlu1 %v1176_v5, %s2937_s11  ;;  %1163 = vrot.lane.b32.xlu2 %v1155_v0, %s2937_s11  ;;  %v1241_v0 = vstv %s2676_s7  ;;  %s2694_s7 = sld [smem:[#allocation7 + $0x3e]] }
 0x155   : > { %1203 = vrot.lane.b32.xlu0 %v1197_v61, %s2938_s5  ;;  %v1242_v15 = vmul.f32 %v1241_v0, %v3087_v23 }
 0x156   : > { %v3388_v63 = vpop.permute.xlu1 %872  ;;  %v3390_v12 = vpop.permute.xlu2 %920 }
 0x157   : > { %5003 = vst [vmem:[#allocation47_spill] sm:$0xff] %v3388_v63  ;;  %v3392_v40 = vpop.permute.xlu0 %893 }
 0x158   : > { %5004 = vst [vmem:[#allocation48_spill] sm:$0xff] %v3390_v12  ;;  %v1221_v12 = vmul.f32 %v1219_v38, %v3085_v22 }
 0x159   : > { %5005 = vst [vmem:[#allocation49_spill] sm:$0xff] %v3392_v40  ;;  %v1199_v40 = vmul.f32 0.0, %v1196_v56 }
 0x15c   : > { %1205 = vrot.lane.b32.xlu1 %v1198_v26, %s2938_s5  ;;  %1185 = vrot.lane.b32.xlu2 %v1177_v39, %s2937_s11 }
 0x15d   : > { %1226 = vrot.lane.b32.xlu0 %v1220_v49, %s2938_s5  ;;  %v1263_v49 = vstv %s2677_s8  ;;  %s2695_s8 = sld [smem:[#allocation7 + $0x3f]] }
 0x15e   : > { %v3399_v5 = vpop.permute.xlu1 %895  ;;  %v3401_v61 = vpop.permute.xlu2 %942  ;;  %v1264_v56 = vmul.f32 %v1263_v49, %v3087_v23 }
 0x15f   : > { %5006 = vst [vmem:[#allocation50_spill] sm:$0xff] %v3399_v5  ;;  %v3403_v63 = vpop.permute.xlu0 %916  ;;  %v1222_v5 = vmul.f32 0.0, %v1219_v38  ;;  %v1244_v38 = vmul.f32 0.0, %v1241_v0 }
 0x160   : > { %5007 = vst [vmem:[#allocation51_spill] sm:$0xff] %v3401_v61 }
 0x161   : > { %5008 = vst [vmem:[#allocation52_spill] sm:$0xff] %v3403_v63  ;;  %v1243_v63 = vmul.f32 %v1241_v0, %v3085_v22  ;;  %v338_v0 = vld.sshfl [vmem:[#allocation1 + $0x8] sm:$0xff pattern:$0x75316420] }
 0x162   : > { %v348_v28 = vsel %vm321_vm0, %v338_v0, 0.0 }
 0x164   : > { %1228 = vrot.lane.b32.xlu1 %v1221_v12, %s2938_s5  ;;  %1207 = vrot.lane.b32.xlu2 %v1199_v40, %s2938_s5  ;;  %v1285_v12 = vstv %s2678_s24  ;;  %s2696_s24 = sld [smem:[#allocation7 + $0x40]] }
 0x165   : > { %1248 = vrot.lane.b32.xlu0 %v1242_v15, %s2938_s5  ;;  %v337_v15 = vld.sshfl [vmem:[#allocation1] sm:$0xff pattern:$0x75316420]  ;;  %v1286_v52 = vmul.f32 %v1285_v12, %v3087_v23  ;;  %v1287_v17 = vmul.f32 %v1285_v12, %v3085_v22  ;;  %v1288_v0 = vmul.f32 0.0, %v1285_v12 }
 0x166   : > { %v3410_v26 = vpop.permute.xlu1 %918  ;;  %v3412_v39 = vpop.permute.xlu2 %964 }
 0x167   : > { %5009 = vst [vmem:[#allocation53_spill] sm:$0xff] %v3410_v26  ;;  %v3414_v61 = vpop.permute.xlu0 %938 }
 0x168   : > { %5010 = vst [vmem:[#allocation54_spill] sm:$0xff] %v3412_v39 }
 0x169   : > { %5011 = vst [vmem:[#allocation55_spill] sm:$0xff] %v3414_v61  ;;  %v1265_v61 = vmul.f32 %v1263_v49, %v3085_v22 }
 0x16c   : > { %1250 = vrot.lane.b32.xlu1 %v1243_v63, %s2938_s5  ;;  %1230 = vrot.lane.b32.xlu2 %v1222_v5, %s2938_s5  ;;  %v341_v63 = vsel %vm321_vm0, %v337_v15, 0.0  ;;  %v1266_v15 = vmul.f32 0.0, %v1263_v49 }
 0x16d   : > { %1270 = vrot.lane.b32.xlu0 %v1264_v56, %s2938_s5  ;;  %v342_v5 = vrot.slane %v341_v63, 4 }
 0x16e   : > { %v3421_v40 = vpop.permute.xlu1 %940  ;;  %v3423_v26 = vpop.permute.xlu2 %986 }
 0x16f   : > { %5012 = vst [vmem:[#allocation56_spill] sm:$0xff] %v3421_v40  ;;  %v3425_v39 = vpop.permute.xlu0 %960  ;;  %v1307_v40 = vstv %s2679_s10  ;;  %v343_v3 = vadd.f32 %v342_v5, %v341_v63  ;;  %s2697_s10 = sld [smem:[#allocation7 + $0x41]] }
 0x170   : > { %5013 = vst [vmem:[#allocation57_spill] sm:$0xff] %v3423_v26  ;;  %v1309_v49 = vmul.f32 %v1307_v40, %v3085_v22 }
 0x171   : > { %5014 = vst [vmem:[#allocation58_spill] sm:$0xff] %v3425_v39 }
 0x174   : > { %1272 = vrot.lane.b32.xlu1 %v1265_v61, %s2938_s5  ;;  %1252 = vrot.lane.b32.xlu2 %v1244_v38, %s2938_s5  ;;  %v1308_v61 = vmul.f32 %v1307_v40, %v3087_v23  ;;  %v349_v38 = vrot.slane %v348_v28, 4 }
 0x175   : > { %1292 = vrot.lane.b32.xlu0 %v1286_v52, %s2938_s5  ;;  %v344_v52 = vrot.slane %v343_v3, 2 }
 0x176   : > { %v3433_v56 = vpop.permute.xlu1 %962  ;;  %v3435_v26 = vpop.permute.xlu2 %1008  ;;  %v350_v53 = vadd.f32 %v349_v38, %v348_v28  ;;  %v1310_v28 = vmul.f32 0.0, %v1307_v40 }
 0x177   : > { %5015 = vst [vmem:[#allocation59_spill] sm:$0xff] %v3433_v56  ;;  %v3437_v39 = vpop.permute.xlu0 %982  ;;  %v345_v5 = vadd.f32 %v344_v52, %v343_v3 }
 0x178   : > { %5016 = vst [vmem:[#allocation60_spill] sm:$0xff] %v3435_v26 }
 0x179   : > { %5017 = vst [vmem:[#allocation61_spill] sm:$0xff] %v3437_v39  ;;  %v1329_v39 = vstv %s2680_s12  ;;  %s2698_s12 = sld [smem:[#allocation7 + $0x42]] }
 0x17a   : > { %v1331_v3 = vmul.f32 %v1329_v39, %v3085_v22 }
 0x17c   : > { %1294 = vrot.lane.b32.xlu1 %v1287_v17, %s2938_s5  ;;  %1274 = vrot.lane.b32.xlu2 %v1266_v15, %s2938_s5  ;;  %v1330_v17 = vmul.f32 %v1329_v39, %v3087_v23  ;;  %v346_v15 = vrot.slane %v345_v5, 1 }
 0x17d   : > { %1314 = vrot.lane.b32.xlu0 %v1308_v61, %s2938_s5  ;;  %v351_v61 = vrot.slane %v350_v53, 2 }
 0x17e   : > { %v3445_v26 = vpop.permute.xlu1 %984  ;;  %v3447_v56 = vpop.permute.xlu2 %1030  ;;  %v347_v12 = vadd.f32 %v346_v15, %v345_v5 }
 0x17f   : > { %5018 = vst [vmem:[#allocation62_spill] sm:$0xff] %v3445_v26  ;;  %v3449_v63 = vpop.permute.xlu0 %1004  ;;  %v352_v38 = vadd.f32 %v351_v61, %v350_v53  ;;  %v1332_v53 = vmul.f32 0.0, %v1329_v39 }
 0x180   : > { %5019 = vst [vmem:[#allocation63_spill] sm:$0xff] %v3447_v56  ;;  %v1407_v56 = vstv %s2688_s13  ;;  %s2700_s13 = sld [smem:[#allocation7 + $0x44]] }
 0x181   : > { %5020 = vst [vmem:[#allocation64_spill] sm:$0xff] %v3449_v63  ;;  %v1408_v52 = vmul.f32 0.0, %v1407_v56 }
 0x184   : > { %1316 = vrot.lane.b32.xlu1 %v1309_v49, %s2938_s5  ;;  %1296 = vrot.lane.b32.xlu2 %v1288_v0, %s2938_s5  ;;  %v3464_v49 = vmul.f32 0.25, %v347_v12  ;;  %v353_v0 = vrot.slane %v352_v38, 1  ;;  %v1451_v12 = vstv %s2690_s21  ;;  %s2702_s21 = sld [smem:[#allocation7 + $0x46]] }
 0x185   : > { %1336 = vrot.lane.b32.xlu0 %v1330_v17, %s2938_s5 }
 0x186   : > { %v3456_v26 = vpop.permute.xlu1 %1006  ;;  %v3458_v63 = vpop.permute.xlu2 %1052  ;;  %v1409_v40 = vmul.f32 %v1407_v56, %v3464_v49  ;;  %v354_v15 = vadd.f32 %v353_v0, %v352_v38  ;;  %v1452_v0 = vmul.f32 0.0, %v1451_v12 }
 0x187   : > { %5021 = vst [vmem:[#allocation65_spill] sm:$0xff] %v3456_v26  ;;  %v3460_v11 = vpop.permute.xlu0 %1026  ;;  %v1429_v26 = vstv %s2689_s18  ;;  %s2701_s18 = sld [smem:[#allocation7 + $0x45]] }
 0x188   : > { %5022 = vst [vmem:[#allocation66_spill] sm:$0xff] %v3458_v63  ;;  %v1430_v5 = vmul.f32 0.0, %v1429_v26  ;;  %v3478_v61 = vmul.f32 0.25, %v354_v15  ;;  %v1431_v39 = vmul.f32 %v1429_v26, %v3464_v49 }
 0x189   : > { %5023 = vst [vmem:[#allocation67_spill] sm:$0xff] %v3460_v11 }
 0x18a   : > { %v1410_v38 = vmul.f32 %v1407_v56, %v3478_v61 }
 0x18c   : > { %1338 = vrot.lane.b32.xlu1 %v1331_v3, %s2938_s5  ;;  %1318 = vrot.lane.b32.xlu2 %v1310_v28, %s2938_s5 }
 0x18d   : > { %1414 = vrot.lane.b32.xlu0 %v1408_v52, %s2933_s19 }
 0x18e   : > { %v3468_v17 = vpop.permute.xlu1 %1028  ;;  %v3470_v11 = vpop.permute.xlu2 %1075 }
 0x18f   : > { %5024 = vst [vmem:[#allocation68_spill] sm:$0xff] %v3468_v17  ;;  %v3472_v63 = vpop.permute.xlu0 %1048  ;;  %v1453_v17 = vmul.f32 %v1451_v12, %v3464_v49 }
 0x190   : > { %5025 = vst [vmem:[#allocation69_spill] sm:$0xff] %v3470_v11 }
 0x191   : > { %5026 = vst [vmem:[#allocation70_spill] sm:$0xff] %v3472_v63 }
 0x194   : > { %1416 = vrot.lane.b32.xlu1 %v1409_v40, %s2933_s19  ;;  %1340 = vrot.lane.b32.xlu2 %v1332_v53, %s2938_s5  ;;  %v1473_v53 = vstv %s2691_s22  ;;  %s2633_s22 = sld [smem:[#allocation7 + $0x1]] }
 0x195   : > { %1436 = vrot.lane.b32.xlu0 %v1430_v5, %s2933_s19  ;;  %v1474_v56 = vmul.f32 0.0, %v1473_v53 }
 0x196   : > { %v3480_v3 = vpop.permute.xlu1 %1050  ;;  %v3482_v28 = vpop.permute.xlu2 %1097 }
 0x197   : > { %5027 = vst [vmem:[#allocation71_spill] sm:$0xff] %v3480_v3  ;;  %v3484_v52 = vpop.permute.xlu0 %1071 }
 0x198   : > { %5028 = vst [vmem:[#allocation72_spill] sm:$0xff] %v3482_v28  ;;  %v1454_v28 = vmul.f32 %v1451_v12, %v3478_v61 }
 0x199   : > { %5029 = vst [vmem:[#allocation73_spill] sm:$0xff] %v3484_v52  ;;  %v1432_v52 = vmul.f32 %v1429_v26, %v3478_v61 }
 0x19c   : > { %1438 = vrot.lane.b32.xlu1 %v1431_v39, %s2933_s19  ;;  %1418 = vrot.lane.b32.xlu2 %v1410_v38, %s2933_s19  ;;  %v1495_v38 = vstv %s2692_s27  ;;  %s2634_s27 = sld [smem:[#allocation7 + $0x2]] }
 0x19d   : > { %1458 = vrot.lane.b32.xlu0 %v1452_v0, %s2933_s19  ;;  %v1496_v26 = vmul.f32 0.0, %v1495_v38 }
 0x19e   : > { %v3491_v40 = vpop.permute.xlu1 %1073  ;;  %v3493_v5 = vpop.permute.xlu2 %1119 }
 0x19f   : > { %5030 = vst [vmem:[#allocation74_spill] sm:$0xff] %v3491_v40  ;;  %v3495_v15 = vpop.permute.xlu0 %1093 }
 0x1a0   : > { %5031 = vst [vmem:[#allocation75_spill] sm:$0xff] %v3493_v5 }
 0x1a1   : > { %5032 = vst [vmem:[#allocation76_spill] sm:$0xff] %v3495_v15  ;;  %v1475_v15 = vmul.f32 %v1473_v53, %v3464_v49 }
 0x1a4   : > { %1460 = vrot.lane.b32.xlu1 %v1453_v17, %s2933_s19  ;;  %1440 = vrot.lane.b32.xlu2 %v1432_v52, %s2933_s19  ;;  %v1517_v52 = vstv %s2693_s28  ;;  %s357_s28 = sld [smem:[#allocation7]] }
 0x1a5   : > { %1480 = vrot.lane.b32.xlu0 %v1474_v56, %s2933_s19  ;;  %v1518_v12 = vmul.f32 0.0, %v1517_v52 }
 0x1a6   : > { %v3502_v39 = vpop.permute.xlu1 %1095  ;;  %v3504_v0 = vpop.permute.xlu2 %1141 }
 0x1a7   : > { %5033 = vst [vmem:[#allocation77_spill] sm:$0xff] %v3502_v39  ;;  %v3506_v5 = vpop.permute.xlu0 %1115  ;;  %v1476_v39 = vmul.f32 %v1473_v53, %v3478_v61 }
 0x1a8   : > { %5034 = vst [vmem:[#allocation78_spill] sm:$0xff] %v3504_v0 }
 0x1a9   : > { %5035 = vst [vmem:[#allocation79_spill] sm:$0xff] %v3506_v5  ;;  %v1497_v5 = vmul.f32 %v1495_v38, %v3464_v49 }
 0x1ac   : > { %1482 = vrot.lane.b32.xlu1 %v1475_v15, %s2933_s19  ;;  %1462 = vrot.lane.b32.xlu2 %v1454_v28, %s2933_s19  ;;  %v1539_v15 = vstv %s2694_s7  ;;  %s2635_s7 = sld [smem:[#allocation7 + $0x3]] }
 0x1ad   : > { %1502 = vrot.lane.b32.xlu0 %v1496_v26, %s2933_s19  ;;  %v1540_v53 = vmul.f32 0.0, %v1539_v15  ;;  %v1542_v63 = vmul.f32 %v1539_v15, %v3478_v61 }
 0x1ae   : > { %v3513_v17 = vpop.permute.xlu1 %1117  ;;  %v3515_v56 = vpop.permute.xlu2 %1163 }
 0x1af   : > { %5036 = vst [vmem:[#allocation80_spill] sm:$0xff] %v3513_v17  ;;  %v3517_v0 = vpop.permute.xlu0 %1137  ;;  %v1498_v17 = vmul.f32 %v1495_v38, %v3478_v61 }
 0x1b0   : > { %5037 = vst [vmem:[#allocation81_spill] sm:$0xff] %v3515_v56 }
 0x1b1   : > { %5038 = vst [vmem:[#allocation82_spill] sm:$0xff] %v3517_v0  ;;  %v1519_v0 = vmul.f32 %v1517_v52, %v3464_v49 }
 0x1b4   : > { %1504 = vrot.lane.b32.xlu1 %v1497_v5, %s2933_s19  ;;  %1484 = vrot.lane.b32.xlu2 %v1476_v39, %s2933_s19  ;;  %v1561_v39 = vstv %s2695_s8  ;;  %s2703_s8 = sld [smem:[#allocation7 + $0x47]] }
 0x1b5   : > { %1524 = vrot.lane.b32.xlu0 %v1518_v12, %s2933_s19  ;;  %v1562_v38 = vmul.f32 0.0, %v1561_v39 }
 0x1b6   : > { %v3524_v28 = vpop.permute.xlu1 %1139  ;;  %v3526_v26 = vpop.permute.xlu2 %1185 }
 0x1b7   : > { %5039 = vst [vmem:[#allocation83_spill] sm:$0xff] %v3524_v28  ;;  %v3528_v56 = vpop.permute.xlu0 %1159  ;;  %v1520_v28 = vmul.f32 %v1517_v52, %v3478_v61 }
 0x1b8   : > { %5040 = vst [vmem:[#allocation84_spill] sm:$0xff] %v3526_v26 }
 0x1b9   : > { %5041 = vst [vmem:[#allocation85_spill] sm:$0xff] %v3528_v56  ;;  %v1541_v56 = vmul.f32 %v1539_v15, %v3464_v49 }
 0x1ba   : > { %v3630_v11 = vstv %s2703_s8  ;;  %s4066_s8 = sld [smem:[#allocation7 + $0x4e]] }
 0x1bb   : > { %v1739_v7 = vmul.f32 0.0, %v3630_v11 }
 0x1bc   : > { %1526 = vrot.lane.b32.xlu1 %v1519_v0, %s2933_s19  ;;  %1506 = vrot.lane.b32.xlu2 %v1498_v17, %s2933_s19  ;;  %v1583_v17 = vstv %s2696_s24  ;;  %s2636_s24 = sld [smem:[#allocation7 + $0x4]] }
 0x1bd   : > { %1546 = vrot.lane.b32.xlu0 %v1540_v53, %s2933_s19  ;;  %v1584_v52 = vmul.f32 0.0, %v1583_v17  ;;  %v1586_v40 = vmul.f32 %v1583_v17, %v3478_v61 }
 0x1be   : > { %v3535_v5 = vpop.permute.xlu1 %1161  ;;  %v3537_v12 = vpop.permute.xlu2 %1207 }
 0x1bf   : > { %5042 = vst [vmem:[#allocation86_spill] sm:$0xff] %v3535_v5  ;;  %v3539_v26 = vpop.permute.xlu0 %1181 }
 0x1c0   : > { %5043 = vst [vmem:[#allocation87_spill] sm:$0xff] %v3537_v12 }
 0x1c1   : > { %5044 = vst [vmem:[#allocation88_spill] sm:$0xff] %v3539_v26  ;;  %v1563_v26 = vmul.f32 %v1561_v39, %v3464_v49 }
 0x1c2   : > { %v390_v59 = vstv %s2636_s24  ;;  %s4119_s24 = sld [smem:[#allocation7 + $0x34]] }
 0x1c3   : > { %v393_v35 = vmul.f32 %v390_v59, %v3085_v22  ;;  %v391_v9 = vmul.f32 0.0, %v390_v59 }
 0x1c4   : > { %1548 = vrot.lane.b32.xlu1 %v1541_v56, %s2933_s19  ;;  %1528 = vrot.lane.b32.xlu2 %v1520_v28, %s2933_s19  ;;  %v1605_v28 = vstv %s2697_s10  ;;  %s2637_s10 = sld [smem:[#allocation7 + $0x5]] }
 0x1c5   : > { %1568 = vrot.lane.b32.xlu0 %v1562_v38, %s2934_s23  ;;  %v1606_v15 = vmul.f32 0.0, %v1605_v28 }
 0x1c6   : > { %v3546_v0 = vpop.permute.xlu1 %1183  ;;  %v3548_v53 = vpop.permute.xlu2 %1230 }
 0x1c7   : > { %5045 = vst [vmem:[#allocation89_spill] sm:$0xff] %v3546_v0  ;;  %v3550_v5 = vpop.permute.xlu0 %1203 }
 0x1c8   : > { %5046 = vst [vmem:[#allocation90_spill] sm:$0xff] %v3548_v53  ;;  %v1564_v53 = vmul.f32 %v1561_v39, %v3478_v61 }
 0x1c9   : > { %5047 = vst [vmem:[#allocation91_spill] sm:$0xff] %v3550_v5  ;;  %v1585_v5 = vmul.f32 %v1583_v17, %v3464_v49 }
 0x1ca   : > { %v398_v60 = vstv %s2637_s10  ;;  %s4146_s10 = sld [smem:[#allocation7 + $0x4f]] }
 0x1cc   : > { %1570 = vrot.lane.b32.xlu1 %v1563_v26, %s2934_s23  ;;  %1550 = vrot.lane.b32.xlu2 %v1542_v63, %s2933_s19  ;;  %v1627_v26 = vstv %s2698_s12  ;;  %s2699_s19 = sld [smem:[#allocation7 + $0x43]] }
 0x1cd   : > { %1590 = vrot.lane.b32.xlu0 %v1584_v52, %s2934_s23  ;;  %v1628_v39 = vmul.f32 0.0, %v1627_v26  ;;  %s3623_s12 = sld [smem:[#allocation7 + $0x6]] }
 0x1ce   : > { %v3557_v56 = vpop.permute.xlu1 %1205  ;;  %v3559_v38 = vpop.permute.xlu2 %1252 }
 0x1cf   : > { %5048 = vst [vmem:[#allocation92_spill] sm:$0xff] %v3557_v56  ;;  %v3561_v0 = vpop.permute.xlu0 %1226 }
 0x1d0   : > { %5049 = vst [vmem:[#allocation93_spill] sm:$0xff] %v3559_v38 }
 0x1d1   : > { %5050 = vst [vmem:[#allocation94_spill] sm:$0xff] %v3561_v0  ;;  %v1607_v0 = vmul.f32 %v1605_v28, %v3464_v49 }
 0x1d3   : > { %v406_v33 = vstv %s3623_s12  ;;  %s4187_s12 = sld [smem:[#allocation7 + $0x35]] }
 0x1d4   : > { %1592 = vrot.lane.b32.xlu1 %v1585_v5, %s2934_s23  ;;  %1572 = vrot.lane.b32.xlu2 %v1564_v53, %s2934_s23  ;;  %v1649_v53 = vstv %s2699_s19  ;;  %s3632_s19 = sld [smem:[#allocation7 + $0x48]] }
 0x1d5   : > { %1612 = vrot.lane.b32.xlu0 %v1606_v15, %s2934_s23  ;;  %v1650_v17 = vmul.f32 0.0, %v1649_v53 }
 0x1d6   : > { %v3568_v63 = vpop.permute.xlu1 %1228  ;;  %v3570_v52 = vpop.permute.xlu2 %1274 }
 0x1d7   : > { %5051 = vst [vmem:[#allocation95_spill] sm:$0xff] %v3568_v63  ;;  %v3572_v38 = vpop.permute.xlu0 %1248  ;;  %v1608_v63 = vmul.f32 %v1605_v28, %v3478_v61 }
 0x1d8   : > { %5052 = vst [vmem:[#allocation96_spill] sm:$0xff] %v3570_v52 }
 0x1d9   : > { %5053 = vst [vmem:[#allocation97_spill] sm:$0xff] %v3572_v38  ;;  %v1629_v38 = vmul.f32 %v1627_v26, %v3464_v49 }
 0x1dc   : > { %1614 = vrot.lane.b32.xlu1 %v1607_v0, %s2934_s23  ;;  %1594 = vrot.lane.b32.xlu2 %v1586_v40, %s2934_s23  ;;  %v1671_v0 = vstv %s2700_s13  ;;  %s3675_s13 = sld [smem:[#allocation7 + $0x49]] }
 0x1dd   : > { %1634 = vrot.lane.b32.xlu0 %v1628_v39, %s2934_s23  ;;  %v1672_v28 = vmul.f32 0.0, %v1671_v0 }
 0x1de   : > { %v3579_v5 = vpop.permute.xlu1 %1250  ;;  %v3581_v15 = vpop.permute.xlu2 %1296 }
 0x1df   : > { %5054 = vst [vmem:[#allocation98_spill] sm:$0xff] %v3579_v5  ;;  %v3583_v52 = vpop.permute.xlu0 %1270  ;;  %v1630_v5 = vmul.f32 %v1627_v26, %v3478_v61 }
 0x1e0   : > { %5055 = vst [vmem:[#allocation99_spill] sm:$0xff] %v3581_v15 }
 0x1e1   : > { %5056 = vst [vmem:[#allocation100_spill] sm:$0xff] %v3583_v52  ;;  %v1651_v52 = vmul.f32 %v1649_v53, %v3464_v49 }
 0x1e4   : > { %1636 = vrot.lane.b32.xlu1 %v1629_v38, %s2934_s23  ;;  %1616 = vrot.lane.b32.xlu2 %v1608_v63, %s2934_s23  ;;  %v1693_v63 = vstv %s2701_s18  ;;  %s3814_s18 = sld [smem:[#allocation7 + $0x4b]] }
 0x1e5   : > { %1656 = vrot.lane.b32.xlu0 %v1650_v17, %s2934_s23  ;;  %v1694_v26 = vmul.f32 0.0, %v1693_v63  ;;  %v1696_v45 = vmul.f32 %v1693_v63, %v3478_v61 }
 0x1e6   : > { %v3590_v40 = vpop.permute.xlu1 %1272  ;;  %v3592_v39 = vpop.permute.xlu2 %1318 }
 0x1e7   : > { %5057 = vst [vmem:[#allocation101_spill] sm:$0xff] %v3590_v40  ;;  %v3594_v15 = vpop.permute.xlu0 %1292  ;;  %v1652_v40 = vmul.f32 %v1649_v53, %v3478_v61  ;;  %v1695_v53 = vmul.f32 %v1693_v63, %v3464_v49 }
 0x1e8   : > { %5058 = vst [vmem:[#allocation102_spill] sm:$0xff] %v3592_v39 }
 0x1e9   : > { %5059 = vst [vmem:[#allocation103_spill] sm:$0xff] %v3594_v15  ;;  %v1673_v15 = vmul.f32 %v1671_v0, %v3464_v49 }
 0x1ec   : > { %1658 = vrot.lane.b32.xlu1 %v1651_v52, %s2934_s23  ;;  %1638 = vrot.lane.b32.xlu2 %v1630_v5, %s2934_s23  ;;  %v3614_v5 = vstv %s2702_s21  ;;  %s3905_s21 = sld [smem:[#allocation7 + $0x4c]] }
 0x1ed   : > { %1678 = vrot.lane.b32.xlu0 %v1672_v28, %s2934_s23 }
 0x1ee   : > { %v3601_v38 = vpop.permute.xlu1 %1294  ;;  %v3603_v17 = vpop.permute.xlu2 %1340 }
 0x1ef   : > { %5060 = vst [vmem:[#allocation104_spill] sm:$0xff] %v3601_v38  ;;  %v3605_v39 = vpop.permute.xlu0 %1314 }
 0x1f0   : > { %5061 = vst [vmem:[#allocation105_spill] sm:$0xff] %v3603_v17  ;;  %v1674_v17 = vmul.f32 %v1671_v0, %v3478_v61 }
 0x1f1   : > { %5062 = vst [vmem:[#allocation106_spill] sm:$0xff] %v3605_v39 }
 0x1f4   : > { %1680 = vrot.lane.b32.xlu1 %v1673_v15, %s2934_s23  ;;  %1660 = vrot.lane.b32.xlu2 %v1652_v40, %s2934_s23  ;;  %v1716_v15 = vmul.f32 0.0, %v3614_v5  ;;  %v366_v40 = vstv %s2633_s22  ;;  %s3913_s22 = sld [smem:[#allocation7 + $0x31]] }
 0x1f5   : > { %1700 = vrot.lane.b32.xlu0 %v1694_v26, %s2934_s23  ;;  %v374_v26 = vstv %s2634_s27  ;;  %v369_v0 = vmul.f32 %v366_v40, %v3085_v22  ;;  %v368_v56 = vmul.f32 %v366_v40, %v3087_v23  ;;  %v367_v3 = vmul.f32 0.0, %v366_v40  ;;  %s3986_s27 = sld [smem:[#allocation7 + $0x4d]] }
 0x1f6   : > { %v3612_v52 = vpop.permute.xlu1 %1316  ;;  %v3616_v28 = vpop.permute.xlu2 %1418  ;;  %v450_v40 = vsel %vm427_vm1, %v3164_v18, %v3150_v8  ;;  %v375_v46 = vmul.f32 0.0, %v374_v26  ;;  %v376_v4 = vmul.f32 %v374_v26, %v3087_v23 }
 0x1f7   : > { %5063 = vst [vmem:[#allocation107_spill] sm:$0xff] %v3612_v52  ;;  %v3618_v39 = vpop.permute.xlu0 %1336  ;;  %v358_v52 = vstv %s357_s28  ;;  %v3655_v63 = vadd.f32 %v3157_v13, %v369_v0  ;;  %v3660_v8 = vadd.f32 %v451_v32, %v368_v56  ;;  %v3662_v18 = vadd.f32 %v450_v40, %v367_v3  ;;  %s3994_s28 = sld [smem:[#allocation7 + $0x32]] }
 0x1f8   : > { %5064 = vst [vmem:[#allocation108_spill] sm:$0xff] %v3616_v28  ;;  %v359_v47 = vmul.f32 0.0, %v358_v52  ;;  %v360_v54 = vmul.f32 %v358_v52, %v3087_v23  ;;  %v399_v32 = vmul.f32 0.0, %v398_v60  ;;  %v400_v3 = vmul.f32 %v398_v60, %v3087_v23 }
 0x1f9   : > { %5065 = vst [vmem:[#allocation109_spill] sm:$0xff] %v3618_v39  ;;  %v382_v39 = vstv %s2635_s7  ;;  %v428_v40 = vsel %vm427_vm1, %v3159_v14, %v3192_v37  ;;  %v407_v14 = vmul.f32 0.0, %v406_v33  ;;  %s4055_s7 = sld [smem:[#allocation7 + $0x33]] }
 0x1fa   : > { %v385_v25 = vmul.f32 %v382_v39, %v3085_v22  ;;  %v383_v42 = vmul.f32 0.0, %v382_v39  ;;  %v384_v19 = vmul.f32 %v382_v39, %v3087_v23  ;;  %v409_v39 = vmul.f32 %v406_v33, %v3085_v22 }
 0x1fc   : > { %1702 = vrot.lane.b32.xlu1 %v1695_v53, %s2934_s23  ;;  %1682 = vrot.lane.b32.xlu2 %v1674_v17, %s2934_s23  ;;  %v377_v17 = vmul.f32 %v374_v26, %v3085_v22  ;;  %v401_v26 = vmul.f32 %v398_v60, %v3085_v22  ;;  %v473_v60 = vsel %vm427_vm1, %v3188_v34, %v3168_v20 }
 0x1fd   : > { %1722 = vrot.lane.b32.xlu0 %v1716_v15, %s2935_s9  ;;  %v361_v15 = vmul.f32 %v358_v52, %v3085_v22  ;;  %v392_v52 = vmul.f32 %v390_v59, %v3087_v23 }
 0x1fe   : > { %v3628_v38 = vpop.permute.xlu1 %1338  ;;  %v3636_v12 = vpop.permute.xlu2 %1440  ;;  %v3668_v13 = vadd.f32 %v3168_v20, %v377_v17  ;;  %v472_v17 = vsel %vm427_vm1, %v3170_v21, %v3188_v34  ;;  %v1718_v21 = vmul.f32 %v3614_v5, %v3478_v61  ;;  %v494_v20 = vsel %vm427_vm1, %v3181_v30, %v3199_v41 }
 0x1ff   : > { %5066 = vst [vmem:[#allocation110_spill] sm:$0xff] %v3628_v38  ;;  %v1415_v53 = vpop.permute.xlu0 %1414  ;;  %v1717_v38 = vmul.f32 %v3614_v5, %v3464_v49  ;;  %v435_v22 = vadd.f32 %v3177_v27, %v361_v15  ;;  %v495_v34 = vsel %vm427_vm1, %v3199_v41, %v3179_v29  ;;  %v478_v5 = vadd.f32 %v473_v60, %v376_v4 }
 0x200   : > { %v523_v30 = vadd.f32 %v3190_v36, %v393_v35  ;;  %v3723_v41 = vadd.f32 %v495_v34, %v384_v19  ;;  %v3734_v35 = vstv %s3675_s13  ;;  %v567_v19 = vadd.f32 %v3212_v50, %v409_v39  ;;  %s4272_s13 = sld [smem:[#allocation7 + $0x51]] }
 0x201   : > { %v560_v4 = vsel %vm427_vm1, %v3225_v58, %v3233_v62  ;;  %v1785_v39 = vmul.f32 0.0, %v3734_v35  ;;  %v1741_v58 = vmul.f32 %v3630_v11, %v3478_v61 }
 0x204   : > { %1724 = vrot.lane.b32.xlu1 %v1717_v38, %s2935_s9  ;;  %1704 = vrot.lane.b32.xlu2 %v1696_v45, %s2934_s23  ;;  %v3673_v38 = vstv %s3632_s19  ;;  %s3736_s23 = sld [smem:[#allocation7 + $0x4a]] }
 0x205   : > { %1745 = vrot.lane.b32.xlu0 %v1739_v7, %s2935_s9  ;;  %v1762_v15 = vmul.f32 0.0, %v3673_v38  ;;  %s4210_s19 = sld [smem:[#allocation7 + $0x50]] }
 0x206   : > { %v1417_v0 = vpop.permute.xlu1 %1416  ;;  %v3685_v45 = vpop.permute.xlu2 %1462 }
 0x207   : > { %v3679_v56 = vsel %vm427_vm1, %v1415_v53, %v1417_v0  ;;  %v3683_v7 = vsel %vm427_vm1, %v1417_v0, %v3616_v28  ;;  %5069 = vst [vmem:[#allocation113_spill] sm:$0xff] %v3685_v45  ;;  %v1437_v59 = vpop.permute.xlu0 %1436  ;;  %v1740_v53 = vmul.f32 %v3630_v11, %v3464_v49  ;;  %v429_v0 = vsel %vm427_vm1, %v3192_v37, %v3177_v27  ;;  %v5072_v11 = vld [vmem:[#allocation13_spill] sm:$0xff] }
 0x208   : > { %5067 = vst [vmem:[#allocation111_spill] sm:$0xff] %v3679_v56  ;;  %v477_v56 = vadd.f32 %v472_v17, %v375_v46  ;;  %v516_v27 = vsel %vm427_vm1, %v3203_v44, %v3210_v48  ;;  %v517_v37 = vsel %vm427_vm1, %v3210_v48, %v3190_v36  ;;  %v433_v28 = vadd.f32 %v428_v40, %v359_v47 }
 0x209   : > { %5068 = vst [vmem:[#allocation112_spill] sm:$0xff] %v3683_v7  ;;  %v501_v7 = vadd.f32 %v3179_v29, %v385_v25  ;;  %v408_v25 = vmul.f32 %v406_v33, %v3087_v23  ;;  %v434_v45 = vadd.f32 %v429_v0, %v360_v54  ;;  %v3721_v29 = vadd.f32 %v494_v20, %v383_v42  ;;  %v5077_v20 = vld [vmem:[#allocation15_spill] sm:$0xff] }
 0x20a   : > { %v538_v44 = vsel %vm427_vm1, %v3214_v51, %v3221_v55  ;;  %v3731_v23 = vadd.f32 %v3201_v43, %v401_v26  ;;  %v521_v36 = vadd.f32 %v516_v27, %v391_v9  ;;  %v522_v48 = vadd.f32 %v517_v37, %v392_v52  ;;  %v5079_v27 = vld [vmem:[#allocation19_spill] sm:$0xff] }
 0x20b   : > { %v539_v51 = vsel %vm427_vm1, %v3221_v55, %v3201_v43  ;;  %v543_v54 = vadd.f32 %v538_v44, %v399_v32  ;;  %v561_v26 = vsel %vm427_vm1, %v3233_v62, %v3212_v50  ;;  %v1763_v43 = vmul.f32 %v3673_v38, %v3464_v49  ;;  %v5080_v44 = vld [vmem:[#allocation23_spill] sm:$0xff] }
 0x20c   : > { %1747 = vrot.lane.b32.xlu1 %v1740_v53, %s2935_s9  ;;  %1726 = vrot.lane.b32.xlu2 %v1718_v21, %s2935_s9  ;;  %v583_v55 = vsel %vm582_vm2, %v3237_v2, %v3245_v6  ;;  %v584_v52 = vsel %vm582_vm2, %v3245_v6, %v3223_v57  ;;  %v544_v32 = vadd.f32 %v539_v51, %v400_v3 }
 0x20d   : > { %1768 = vrot.lane.b32.xlu0 %v1762_v15, %s2935_s9  ;;  %v605_v50 = vsel %vm582_vm2, %v3249_v10, %v3256_v16  ;;  %v606_v62 = vsel %vm582_vm2, %v3256_v16, %v3235_v1  ;;  %v3775_v2 = vadd.f32 %v560_v4, %v407_v14  ;;  %v3777_v17 = vadd.f32 %v561_v26, %v408_v25  ;;  %v5078_v14 = vld [vmem:[#allocation20_spill] sm:$0xff] }
 0x20e   : > { %v1439_v33 = vpop.permute.xlu1 %1438  ;;  %v3749_v9 = vpop.permute.xlu2 %1484  ;;  %v627_v6 = vsel %vm582_vm2, %v3260_v24, %v3267_v31  ;;  %v3787_v10 = vadd.f32 %v3235_v1, %v3655_v63  ;;  %v588_v3 = vadd.f32 %v583_v55, %v433_v28  ;;  %v3793_v16 = vadd.f32 %v5072_v11, %v3668_v13 }
 0x20f   : > { %v3743_v42 = vsel %vm427_vm1, %v1437_v59, %v1439_v33  ;;  %v3747_v46 = vsel %vm427_vm1, %v1439_v33, %v3636_v12  ;;  %v1459_v47 = vpop.permute.xlu0 %1458  ;;  %v590_v59 = vadd.f32 %v3223_v57, %v435_v22  ;;  %5070 = vst [vmem:[#allocation114_spill] sm:$0xff] %v3775_v2  ;;  %v628_v57 = vsel %vm582_vm2, %v3267_v31, %v5072_v11  ;;  %v5073_v31 = vld [vmem:[#allocation14_spill] sm:$0xff] }
 0x210   : > { %5071 = vst [vmem:[#allocation115_spill] sm:$0xff] %v3777_v17  ;;  %v3789_v22 = vadd.f32 %v584_v52, %v434_v45  ;;  %v3797_v24 = vadd.f32 %v605_v50, %v3662_v18  ;;  %v3800_v60 = vadd.f32 %v606_v62, %v3660_v8  ;;  %v3803_v53 = vadd.f32 %v5073_v31, %v501_v7  ;;  %v5074_v18 = vld [vmem:[#allocation17_spill] sm:$0xff]  ;;  %v5075_v8 = vld [vmem:[#allocation16_spill] sm:$0xff]  ;;  %v5081_v33 = vld [vmem:[#allocation22_spill] sm:$0xff] }
 0x211   : > { %v3807_v1 = vadd.f32 %v627_v6, %v477_v56  ;;  %v3809_v28 = vadd.f32 %v628_v57, %v478_v5  ;;  %v3812_v13 = vstv %s3736_s23  ;;  %v649_v45 = vsel %vm582_vm2, %v5075_v8, %v5074_v18  ;;  %v5076_v56 = vld [vmem:[#allocation113_spill] sm:$0xff]  ;;  %v5083_v52 = vld [vmem:[#allocation28_spill] sm:$0xff]  ;;  %s4310_s23 = sld [smem:[#allocation7 + $0x37]] }
 0x212   : > { %v650_v7 = vsel %vm582_vm2, %v5074_v18, %v5073_v31  ;;  %v3832_v34 = vadd.f32 %v5077_v20, %v523_v30  ;;  %v671_v37 = vsel %vm582_vm2, %v5079_v27, %v5078_v14  ;;  %v672_v25 = vsel %vm582_vm2, %v5078_v14, %v5077_v20  ;;  %v5085_v50 = vld [vmem:[#allocation29_spill] sm:$0xff]  ;;  %v5095_v27 = vld [vmem:[#allocation34_spill] sm:$0xff] }
 0x213   : > { %v1786_v5 = vmul.f32 %v3734_v35, %v3464_v49  ;;  %v693_v51 = vsel %vm582_vm2, %v5081_v33, %v5080_v44  ;;  %v1808_v4 = vmul.f32 0.0, %v3812_v13  ;;  %v1764_v26 = vmul.f32 %v3673_v38, %v3478_v61  ;;  %v5089_v18 = vld [vmem:[#allocation25_spill] sm:$0xff] }
 0x214   : > { %1770 = vrot.lane.b32.xlu1 %v1763_v43, %s2935_s9  ;;  %1749 = vrot.lane.b32.xlu2 %v1741_v58, %s2935_s9  ;;  %v3852_v43 = vadd.f32 %v649_v45, %v3721_v29  ;;  %v3855_v55 = vadd.f32 %v650_v7, %v3723_v41  ;;  %v738_v62 = vsel %vm737_vm3, %v5083_v52, %v5085_v50  ;;  %v5086_v29 = vld [vmem:[#allocation21_spill] sm:$0xff]  ;;  %v5094_v7 = vld [vmem:[#allocation32_spill] sm:$0xff]  ;;  %v3903_v14 = vstv %s3814_s18  ;;  %s4333_s18 = sld [smem:[#allocation7 + $0x52]] }
 0x215   : > { %1791 = vrot.lane.b32.xlu0 %v1785_v39, %s2935_s9  ;;  %v5084_v39 = vld [vmem:[#allocation24_spill] sm:$0xff]  ;;  %v3867_v11 = vadd.f32 %v671_v37, %v521_v36  ;;  %v3869_v38 = vadd.f32 %v672_v25, %v522_v48  ;;  %v3872_v41 = vadd.f32 %v5086_v29, %v567_v19  ;;  %v3874_v57 = vadd.f32 %v693_v51, %v543_v54  ;;  %v5092_v54 = vld [vmem:[#allocation31_spill] sm:$0xff]  ;;  %v5096_v37 = vld [vmem:[#allocation30_spill] sm:$0xff] }
 0x216   : > { %v1461_v63 = vpop.permute.xlu1 %1460  ;;  %v3829_v15 = vpop.permute.xlu2 %1506  ;;  %v740_v58 = vsel %vm737_vm3, %v5084_v39, %v5083_v52  ;;  %v739_v48 = vsel %vm737_vm3, %v5085_v50, %v5084_v39  ;;  %v3892_v19 = vadd.f32 %v738_v62, %v588_v3  ;;  %v761_v20 = vsel %vm737_vm3, %v5092_v54, %v5094_v7  ;;  %v5099_v52 = vld [vmem:[#allocation33_spill] sm:$0xff]  ;;  %v5101_v50 = vld [vmem:[#allocation50_spill] sm:$0xff] }
 0x217   : > { %v3823_v40 = vsel %vm427_vm1, %v1459_v47, %v1461_v63  ;;  %v3827_v0 = vsel %vm427_vm1, %v1461_v63, %v5076_v56  ;;  %v1481_v21 = vpop.permute.xlu0 %1480  ;;  %v5082_v47 = vld [vmem:[#allocation18_spill] sm:$0xff]  ;;  %v746_v36 = vadd.f32 %v740_v58, %v590_v59  ;;  %v786_v25 = vsel %vm737_vm3, %v5096_v37, %v5095_v27  ;;  %v5100_v58 = vld [vmem:[#allocation45_spill] sm:$0xff] }
 0x218   : > { %v694_v30 = vsel %vm582_vm2, %v5080_v44, %v5082_v47  ;;  %v3865_v6 = vadd.f32 %v5082_v47, %v3731_v23  ;;  %v5088_v63 = vld [vmem:[#allocation26_spill] sm:$0xff]  ;;  %v5097_v47 = vld [vmem:[#allocation35_spill] sm:$0xff]  ;;  %v901_v62 = vsel %vm899_vm4, %v5101_v50, %v5100_v58 }
 0x219   : > { %v3876_v31 = vadd.f32 %v694_v30, %v544_v32  ;;  %v3881_v8 = vsel %vm582_vm2, %v5089_v18, %v5088_v63  ;;  %v3886_v23 = vsel %vm582_vm2, %v5088_v63, %v5086_v29  ;;  %v5093_v32 = vld [vmem:[#allocation27_spill] sm:$0xff]  ;;  %v784_v30 = vsel %vm737_vm3, %v5095_v27, %v5097_v47 }
 0x21a   : > { %5090 = vst [vmem:[#allocation14_spill] sm:$0xff] %v3881_v8  ;;  %v763_v45 = vsel %vm737_vm3, %v5093_v32, %v5092_v54  ;;  %v762_v3 = vsel %vm737_vm3, %v5094_v7, %v5093_v32  ;;  %v1831_v29 = vmul.f32 0.0, %v3903_v14  ;;  %v1787_v63 = vmul.f32 %v3734_v35, %v3478_v61 }
 0x21b   : > { %5087 = vst [vmem:[#allocation13_spill] sm:$0xff] %v3876_v31  ;;  %v745_v18 = vadd.f32 %v739_v48, %v3789_v22  ;;  %v769_v54 = vadd.f32 %v763_v45, %v3787_v10  ;;  %v767_v32 = vadd.f32 %v761_v20, %v3797_v24  ;;  %v3945_v7 = vadd.f32 %v762_v3, %v3800_v60  ;;  %v5104_v24 = vld [vmem:[#allocation38_spill] sm:$0xff]  ;;  %v5105_v48 = vld [vmem:[#allocation40_spill] sm:$0xff]  ;;  %v5107_v20 = vld [vmem:[#allocation87_spill] sm:$0xff] }
 0x21c   : > { %5091 = vst [vmem:[#allocation17_spill] sm:$0xff] %v3886_v23  ;;  %1793 = vrot.lane.b32.xlu1 %v1786_v5, %s2935_s9  ;;  %1772 = vrot.lane.b32.xlu2 %v1764_v26, %s2935_s9  ;;  %v5098_v26 = vld [vmem:[#allocation37_spill] sm:$0xff]  ;;  %v3951_v27 = vadd.f32 %v784_v30, %v3807_v1  ;;  %v907_v60 = vadd.f32 %v901_v62, %v746_v36  ;;  %v5106_v45 = vld [vmem:[#allocation36_spill] sm:$0xff]  ;;  %v3992_v62 = vstv %s3913_s22  ;;  %v5137_v31 = vld [vmem:[#allocation54_spill] sm:$0xff]  ;;  %s2716_s22 = sld [smem:[#allocation7 + $0x54]] }
 0x21d   : > { %1814 = vrot.lane.b32.xlu0 %v1808_v4, %s2935_s9  ;;  %v785_v4 = vsel %vm737_vm3, %v5097_v47, %v5096_v37  ;;  %v809_v39 = vsel %vm737_vm3, %v5099_v52, %v5098_v26  ;;  %v5102_v37 = vld [vmem:[#allocation66_spill] sm:$0xff]  ;;  %v5103_v47 = vld [vmem:[#allocation71_spill] sm:$0xff]  ;;  %v808_v1 = vsel %vm737_vm3, %v5104_v24, %v5099_v52  ;;  %v5108_v3 = vld [vmem:[#allocation92_spill] sm:$0xff] }
 0x21e   : > { %v1483_v59 = vpop.permute.xlu1 %1482  ;;  %v3922_v33 = vpop.permute.xlu2 %1528  ;;  %v1056_v35 = vsel %vm1054_vm5, %v5103_v47, %v5102_v37  ;;  %v3957_v22 = vadd.f32 %v785_v4, %v3809_v28  ;;  %v3960_v10 = vadd.f32 %v809_v39, %v3803_v53  ;;  %v832_v28 = vsel %vm737_vm3, %v5106_v45, %v5105_v48  ;;  %v5110_v52 = vld [vmem:[#allocation43_spill] sm:$0xff] }
 0x21f   : > { %v3916_v5 = vsel %vm427_vm1, %v1481_v21, %v1483_v59  ;;  %v3920_v44 = vsel %vm427_vm1, %v1483_v59, %v3749_v9  ;;  %v1503_v51 = vpop.permute.xlu0 %1502  ;;  %v1809_v21 = vmul.f32 %v3812_v13, %v3464_v49  ;;  %v3948_v59 = vadd.f32 %v786_v25, %v3793_v16  ;;  %v5109_v25 = vld [vmem:[#allocation41_spill] sm:$0xff]  ;;  %v5111_v39 = vld [vmem:[#allocation39_spill] sm:$0xff] }
 0x220   : > { %v807_v16 = vsel %vm737_vm3, %v5098_v26, %v5104_v24  ;;  %v1211_v53 = vsel %vm1209_vm6, %v5108_v3, %v5107_v20  ;;  %v830_v36 = vsel %vm737_vm3, %v5105_v48, %v5109_v25  ;;  %v831_v30 = vsel %vm737_vm3, %v5109_v25, %v5106_v45  ;;  %v5115_v24 = vld [vmem:[#allocation46_spill] sm:$0xff] }
 0x221   : > { %v1062_v4 = vadd.f32 %v1056_v35, %v907_v60  ;;  %v3984_v26 = vstv %s3905_s21  ;;  %v855_v58 = vsel %vm737_vm3, %v5111_v39, %v5110_v52  ;;  %v5116_v60 = vld [vmem:[#allocation42_spill] sm:$0xff]  ;;  %v1354_v20 = vmul.f32 %v3992_v62, %v3478_v61  ;;  %s4389_s21 = sld [smem:[#allocation7 + $0x53]] }
 0x222   : > { %v878_v48 = vsel %vm737_vm3, %v5116_v60, %v5115_v24  ;;  %v1832_v25 = vmul.f32 %v3903_v14, %v3464_v49  ;;  %v1854_v17 = vmul.f32 0.0, %v3984_v26  ;;  %v1810_v60 = vmul.f32 %v3812_v13, %v3478_v61  ;;  %v5120_v13 = vld [vmem:[#allocation69_spill] sm:$0xff] }
 0x223   : > { %v1217_v45 = vadd.f32 %v1211_v53, %v1062_v4  ;;  %v813_v53 = vadd.f32 %v807_v16, %v3852_v43  ;;  %v4023_v4 = vadd.f32 %v808_v1, %v3855_v55  ;;  %v4026_v24 = vadd.f32 %v832_v28, %v3832_v34  ;;  %v5121_v43 = vld [vmem:[#allocation74_spill] sm:$0xff] }
 0x224   : > { %1816 = vrot.lane.b32.xlu1 %v1809_v21, %s2935_s9  ;;  %1795 = vrot.lane.b32.xlu2 %v1787_v63, %s2935_s9  ;;  %v4029_v8 = vadd.f32 %v830_v36, %v3867_v11  ;;  %v4038_v2 = vadd.f32 %v878_v48, %v3872_v41  ;;  %v1078_v55 = vsel %vm1054_vm5, %v5121_v43, %v5120_v13  ;;  %v5123_v28 = vld [vmem:[#allocation90_spill] sm:$0xff]  ;;  %v5124_v36 = vld [vmem:[#allocation95_spill] sm:$0xff]  ;;  %v4064_v48 = vstv %s3986_s27  ;;  %s2717_s27 = sld [smem:[#allocation7 + $0x55]] }
 0x225   : > { %1837 = vrot.lane.b32.xlu0 %v1831_v29, %s2935_s9  ;;  %v1357_v1 = vadd.f32 %v1354_v20, %v1217_v45  ;;  %v4072_v20 = vstv %s3994_s28  ;;  %s2718_s28 = sld [smem:[#allocation7 + $0x56]] }
 0x226   : > { %v1505_v21 = vpop.permute.xlu1 %1504  ;;  %v4003_v37 = vpop.permute.xlu2 %1550 }
 0x227   : > { %v3997_v29 = vsel %vm427_vm1, %v1503_v51, %v1505_v21  ;;  %v4001_v63 = vsel %vm427_vm1, %v1505_v21, %v3829_v15  ;;  %5114 = vst [vmem:[#allocation15_spill] sm:$0xff] %v4003_v37  ;;  %v1525_v35 = vpop.permute.xlu0 %1524  ;;  %v5117_v51 = vld [vmem:[#allocation49_spill] sm:$0xff]  ;;  %v5118_v21 = vld [vmem:[#allocation48_spill] sm:$0xff] }
 0x228   : > { %5112 = vst [vmem:[#allocation16_spill] sm:$0xff] %v3997_v29  ;;  %v900_v29 = vsel %vm899_vm4, %v5117_v51, %v5101_v50  ;;  %v4032_v50 = vadd.f32 %v831_v30, %v3869_v38  ;;  %v905_v34 = vadd.f32 %v5117_v51, %v3892_v19  ;;  %v5122_v38 = vld [vmem:[#allocation52_spill] sm:$0xff]  ;;  %v1233_v30 = vsel %vm1209_vm6, %v5124_v36, %v5123_v28  ;;  %v5126_v19 = vld [vmem:[#allocation55_spill] sm:$0xff] }
 0x229   : > { %5113 = vst [vmem:[#allocation113_spill] sm:$0xff] %v4001_v63  ;;  %v5119_v63 = vld [vmem:[#allocation53_spill] sm:$0xff]  ;;  %v906_v16 = vadd.f32 %v900_v29, %v745_v18  ;;  %v5133_v28 = vld [vmem:[#allocation72_spill] sm:$0xff] }
 0x22a   : > { %v923_v23 = vsel %vm899_vm4, %v5119_v63, %v5118_v21  ;;  %v4035_v21 = vadd.f32 %v855_v58, %v3865_v6  ;;  %v4047_v6 = vadd.f32 %v5122_v38, %v767_v32  ;;  %v922_v41 = vsel %vm899_vm4, %v5122_v38, %v5119_v63  ;;  %v5127_v32 = vld [vmem:[#allocation108_spill] sm:$0xff]  ;;  %v5128_v63 = vld [vmem:[#allocation51_spill] sm:$0xff] }
 0x22b   : > { %v929_v11 = vadd.f32 %v923_v23, %v769_v54  ;;  %v5125_v23 = vld [vmem:[#allocation56_spill] sm:$0xff]  ;;  %v1427_v58 = vadd.f32 %v5127_v32, %v1357_v1  ;;  %v1855_v1 = vmul.f32 %v3984_v26, %v3464_v49 }
 0x22c   : > { %1839 = vrot.lane.b32.xlu1 %v1832_v25, %s2935_s9  ;;  %1818 = vrot.lane.b32.xlu2 %v1810_v60, %s2935_s9  ;;  %v944_v18 = vsel %vm899_vm4, %v5126_v19, %v5125_v23  ;;  %v945_v45 = vsel %vm899_vm4, %v5125_v23, %v5128_v63  ;;  %v5134_v23 = vld [vmem:[#allocation77_spill] sm:$0xff] }
 0x22d   : > { %1860 = vrot.lane.b32.xlu0 %v1854_v17, %s2935_s9  ;;  %v1084_v54 = vadd.f32 %v1078_v55, %v929_v11  ;;  %v1362_v55 = vmul.f32 %v4072_v20, %v3478_v61  ;;  %v1100_v32 = vsel %vm1054_vm5, %v5134_v23, %v5133_v28  ;;  %v4106_v63 = vadd.f32 %v944_v18, %v3957_v22  ;;  %v5136_v28 = vld [vmem:[#allocation59_spill] sm:$0xff]  ;;  %v5140_v18 = vld [vmem:[#allocation80_spill] sm:$0xff] }
 0x22e   : > { %v1527_v29 = vpop.permute.xlu1 %1526  ;;  %v4081_v25 = vpop.permute.xlu2 %1572 }
 0x22f   : > { %v4075_v17 = vsel %vm427_vm1, %v1525_v35, %v1527_v29  ;;  %v4079_v60 = vsel %vm427_vm1, %v1527_v29, %v3922_v33  ;;  %v1547_v51 = vpop.permute.xlu0 %1546  ;;  %v1239_v13 = vadd.f32 %v1233_v30, %v1084_v54  ;;  %v4086_v11 = vadd.f32 %v4081_v25, %v1427_v58  ;;  %v5132_v35 = vld [vmem:[#allocation70_spill] sm:$0xff] }
 0x230   : > { %5129 = vst [vmem:[#allocation20_spill] sm:$0xff] %v4075_v17  ;;  %v1055_v38 = vsel %vm1054_vm5, %v5132_v35, %v5103_v47  ;;  %v1877_v30 = vmul.f32 %v4064_v48, %v3464_v49  ;;  %v1833_v54 = vmul.f32 %v3903_v14, %v3478_v61  ;;  %v928_v58 = vadd.f32 %v922_v41, %v3945_v7 }
 0x231   : > { %5130 = vst [vmem:[#allocation19_spill] sm:$0xff] %v4079_v60  ;;  %v4103_v29 = vadd.f32 %v5126_v19, %v3951_v27  ;;  %v951_v47 = vadd.f32 %v945_v45, %v3948_v59  ;;  %v967_v14 = vsel %vm899_vm4, %v5136_v28, %v5137_v31  ;;  %v1060_v7 = vadd.f32 %v5132_v35, %v905_v34  ;;  %v5138_v59 = vld [vmem:[#allocation73_spill] sm:$0xff]  ;;  %v5139_v19 = vld [vmem:[#allocation75_spill] sm:$0xff]  ;;  %v5143_v35 = vld [vmem:[#allocation98_spill] sm:$0xff] }
 0x232   : > { %5131 = vst [vmem:[#allocation23_spill] sm:$0xff] %v4086_v11  ;;  %v5135_v11 = vld [vmem:[#allocation58_spill] sm:$0xff]  ;;  %v1061_v27 = vadd.f32 %v1055_v38, %v906_v16  ;;  %v1077_v22 = vsel %vm1054_vm5, %v5138_v59, %v5121_v43  ;;  %v1365_v41 = vadd.f32 %v1362_v55, %v1239_v13  ;;  %v1122_v45 = vsel %vm1054_vm5, %v5140_v18, %v5139_v19  ;;  %v5141_v31 = vld [vmem:[#allocation91_spill] sm:$0xff] }
 0x233   : > { %v4110_v60 = vadd.f32 %v5135_v11, %v813_v53  ;;  %v966_v17 = vsel %vm899_vm4, %v5135_v11, %v5136_v28  ;;  %v1106_v53 = vadd.f32 %v1100_v32, %v951_v47  ;;  %v1210_v34 = vsel %vm1209_vm6, %v5141_v31, %v5108_v3  ;;  %v5142_v11 = vld [vmem:[#allocation93_spill] sm:$0xff] }
 0x234   : > { %1862 = vrot.lane.b32.xlu1 %v1855_v1, %s2935_s9  ;;  %v1255_v16 = vsel %vm1209_vm6, %v5143_v35, %v5142_v11  ;;  %v1352_v38 = vmul.f32 0.0, %v3992_v62  ;;  %1841 = vrot.lane.b32.xlu2 %v1833_v54, %s2935_s9  ;;  %v1449_v43 = vadd.f32 %v3636_v12, %v1365_v41  ;;  %v1353_v13 = vmul.f32 %v3992_v62, %v3464_v49 }
 0x235   : > { %1883 = vrot.lane.b32.xlu0 %v1877_v30, %s2936_s26  ;;  %v4141_v55 = vstv %s4055_s7  ;;  %v4144_v32 = vstv %s4066_s8  ;;  %v1215_v3 = vadd.f32 %v5141_v31, %v1060_v7  ;;  %v1216_v28 = vadd.f32 %v1210_v34, %v1061_v27  ;;  %v5148_v27 = vld [vmem:[#allocation62_spill] sm:$0xff]  ;;  %s2719_s7 = sld [smem:[#allocation7 + $0x57]] }
 0x236   : > { %v1549_v1 = vpop.permute.xlu1 %1548  ;;  %v1370_v47 = vmul.f32 %v4141_v55, %v3478_v61  ;;  %v4158_v62 = vpop.permute.xlu2 %1594  ;;  %v1261_v41 = vadd.f32 %v1255_v16, %v1106_v53  ;;  %v1878_v7 = vmul.f32 %v4064_v48, %v3478_v61  ;;  %v4166_v31 = vadd.f32 %v966_v17, %v4023_v4  ;;  %s2721_s8 = sld [smem:[#allocation7 + $0x59]] }
 0x237   : > { %v4152_v30 = vsel %vm427_vm1, %v1547_v51, %v1549_v1  ;;  %v4156_v12 = vsel %vm427_vm1, %v1549_v1, %v4003_v37  ;;  %v1569_v54 = vpop.permute.xlu0 %1568  ;;  %v4161_v19 = vadd.f32 %v4158_v62, %v1449_v43  ;;  %v973_v51 = vadd.f32 %v967_v14, %v3960_v10  ;;  %v5149_v43 = vld [vmem:[#allocation76_spill] sm:$0xff]  ;;  %v5150_v10 = vld [vmem:[#allocation78_spill] sm:$0xff]  ;;  %v5151_v14 = vld [vmem:[#allocation83_spill] sm:$0xff] }
 0x238   : > { %5144 = vst [vmem:[#allocation22_spill] sm:$0xff] %v4152_v30  ;;  %v1899_v11 = vmul.f32 %v4144_v32, %v3464_v49  ;;  %v1856_v1 = vmul.f32 %v3984_v26, %v3478_v61  ;;  %v1082_v34 = vadd.f32 %v5138_v59, %v4047_v6  ;;  %v1083_v16 = vadd.f32 %v1077_v22, %v928_v58  ;;  %v5152_v26 = vld [vmem:[#allocation94_spill] sm:$0xff]  ;;  %v5153_v58 = vld [vmem:[#allocation96_spill] sm:$0xff]  ;;  %v5154_v59 = vld [vmem:[#allocation101_spill] sm:$0xff] }
 0x239   : > { %5145 = vst [vmem:[#allocation18_spill] sm:$0xff] %v4156_v12  ;;  %v5147_v12 = vld [vmem:[#allocation57_spill] sm:$0xff]  ;;  %v1099_v4 = vsel %vm1054_vm5, %v5149_v43, %v5134_v23  ;;  %v1128_v17 = vadd.f32 %v1122_v45, %v973_v51  ;;  %v1355_v30 = vadd.f32 %v1352_v38, %v1215_v3  ;;  %v4185_v37 = vstv %s4119_s24  ;;  %s2723_s24 = sld [smem:[#allocation7 + $0x5b]] }
 0x23a   : > { %5146 = vst [vmem:[#allocation28_spill] sm:$0xff] %v4161_v19  ;;  %v989_v53 = vsel %vm899_vm4, %v5148_v27, %v5147_v12  ;;  %v1144_v19 = vsel %vm1054_vm5, %v5151_v14, %v5150_v10  ;;  %v1232_v6 = vsel %vm1209_vm6, %v5152_v26, %v5124_v36  ;;  %v1277_v22 = vsel %vm1209_vm6, %v5154_v59, %v5153_v58  ;;  %v5155_v36 = vld [vmem:[#allocation111_spill] sm:$0xff] }
 0x23b   : > { %v1356_v23 = vadd.f32 %v1353_v13, %v1216_v28  ;;  %v1373_v45 = vadd.f32 %v1370_v47, %v1261_v41  ;;  %v1237_v12 = vadd.f32 %v5152_v26, %v1082_v34  ;;  %v1360_v38 = vmul.f32 0.0, %v4072_v20  ;;  %v5156_v13 = vld [vmem:[#allocation112_spill] sm:$0xff] }
 0x23c   : > { %1885 = vrot.lane.b32.xlu1 %v1878_v7, %s2936_s26  ;;  %v1361_v3 = vmul.f32 %v4072_v20, %v3464_v49  ;;  %v1378_v51 = vmul.f32 %v4185_v37, %v3478_v61  ;;  %1864 = vrot.lane.b32.xlu2 %v1856_v1, %s2935_s9  ;;  %v1425_v10 = vadd.f32 %v5155_v36, %v1355_v30  ;;  %v4208_v7 = vstv %s4146_s10  ;;  %v5159_v36 = vld [vmem:[#allocation65_spill] sm:$0xff]  ;;  %s4249_s9 = sld [smem:[#allocation7 + $0x36]] }
 0x23d   : > { %1905 = vrot.lane.b32.xlu0 %v1899_v11, %s2936_s26  ;;  %v1426_v47 = vadd.f32 %v5156_v13, %v1356_v23  ;;  %v1471_v28 = vadd.f32 %v5076_v56, %v1373_v45  ;;  %v1238_v34 = vadd.f32 %v1232_v6, %v1083_v16  ;;  %v1283_v20 = vadd.f32 %v1277_v22, %v1128_v17  ;;  %v5157_v17 = vld [vmem:[#allocation61_spill] sm:$0xff]  ;;  %v5158_v45 = vld [vmem:[#allocation60_spill] sm:$0xff]  ;;  %s2724_s10 = sld [smem:[#allocation7 + $0x5c]] }
 0x23e   : > { %v1571_v41 = vpop.permute.xlu1 %1570  ;;  %v4215_v58 = vpop.permute.xlu2 %1616  ;;  %v1900_v16 = vmul.f32 %v4144_v32, %v3478_v61  ;;  %v1921_v6 = vmul.f32 %v4208_v7, %v3464_v49  ;;  %v1879_v22 = vmul.f32 0.0, %v4064_v48  ;;  %v1104_v13 = vadd.f32 %v5149_v43, %v4103_v29  ;;  %v5165_v43 = vld [vmem:[#allocation104_spill] sm:$0xff] }
 0x23f   : > { %v1574_v26 = vsel %vm582_vm2, %v1569_v54, %v1571_v41  ;;  %v1575_v11 = vsel %vm582_vm2, %v1571_v41, %v4081_v25  ;;  %v1591_v1 = vpop.permute.xlu0 %1590  ;;  %v4222_v56 = vadd.f32 %v4215_v58, %v1471_v28  ;;  %v4228_v54 = vadd.f32 %v5157_v17, %v4029_v8  ;;  %v5160_v28 = vld [vmem:[#allocation79_spill] sm:$0xff] }
 0x240   : > { %v4217_v30 = vadd.f32 %v1574_v26, %v1425_v10  ;;  %v4219_v23 = vadd.f32 %v1575_v11, %v1426_v47  ;;  %v995_v25 = vadd.f32 %v989_v53, %v4026_v24  ;;  %v1011_v10 = vsel %vm899_vm4, %v5159_v36, %v5158_v45  ;;  %v5161_v24 = vld [vmem:[#allocation81_spill] sm:$0xff]  ;;  %v5162_v53 = vld [vmem:[#allocation86_spill] sm:$0xff] }
 0x241   : > { %v1105_v47 = vadd.f32 %v1099_v4, %v4106_v63  ;;  %v1121_v8 = vsel %vm1054_vm5, %v5160_v28, %v5140_v18  ;;  %v1166_v26 = vsel %vm1054_vm5, %v5162_v53, %v5161_v24  ;;  %v1363_v11 = vadd.f32 %v1360_v38, %v1237_v12  ;;  %v5163_v45 = vld [vmem:[#allocation97_spill] sm:$0xff]  ;;  %v5164_v63 = vld [vmem:[#allocation99_spill] sm:$0xff] }
 0x242   : > { %v1150_v41 = vadd.f32 %v1144_v19, %v995_v25  ;;  %v4247_v48 = vstv %s4187_s12  ;;  %v1254_v29 = vsel %vm1209_vm6, %v5163_v45, %v5143_v35  ;;  %v1299_v4 = vsel %vm1209_vm6, %v5165_v43, %v5164_v63  ;;  %v5167_v63 = vld [vmem:[#allocation68_spill] sm:$0xff]  ;;  %s2725_s12 = sld [smem:[#allocation7 + $0x5d]] }
 0x243   : > { %v1364_v18 = vadd.f32 %v1361_v3, %v1238_v34  ;;  %v1381_v19 = vadd.f32 %v1378_v51, %v1283_v20  ;;  %v1259_v25 = vadd.f32 %v5163_v45, %v1104_v13  ;;  %v1368_v12 = vmul.f32 0.0, %v4141_v55 }
 0x244   : > { %1907 = vrot.lane.b32.xlu1 %v1900_v16, %s2936_s26  ;;  %v1369_v38 = vmul.f32 %v4141_v55, %v3464_v49  ;;  %v1386_v24 = vmul.f32 %v4247_v48, %v3478_v61  ;;  %1887 = vrot.lane.b32.xlu2 %v1879_v22, %s2936_s26  ;;  %v1447_v35 = vadd.f32 %v3743_v42, %v1363_v11  ;;  %v4270_v20 = vstv %s4210_s19  ;;  %s2726_s19 = sld [smem:[#allocation7 + $0x5e]] }
 0x245   : > { %1927 = vrot.lane.b32.xlu0 %v1921_v6, %s2936_s26  ;;  %v1448_v3 = vadd.f32 %v3747_v46, %v1364_v18  ;;  %v1493_v51 = vadd.f32 %v3749_v9, %v1381_v19  ;;  %v1260_v16 = vadd.f32 %v1254_v29, %v1105_v47  ;;  %v1305_v55 = vadd.f32 %v1299_v4, %v1150_v41  ;;  %v5166_v29 = vld [vmem:[#allocation63_spill] sm:$0xff] }
 0x246   : > { %v1593_v34 = vpop.permute.xlu1 %1592  ;;  %v4277_v45 = vpop.permute.xlu2 %1638  ;;  %v1922_v47 = vmul.f32 %v4208_v7, %v3478_v61  ;;  %v1943_v41 = vmul.f32 %v4270_v20, %v3464_v49  ;;  %v1901_v11 = vmul.f32 0.0, %v4144_v32  ;;  %v1033_v4 = vsel %vm899_vm4, %v5167_v63, %v5166_v29 }
 0x247   : > { %v1596_v13 = vsel %vm582_vm2, %v1591_v1, %v1593_v34  ;;  %v1597_v6 = vsel %vm582_vm2, %v1593_v34, %v4158_v62  ;;  %v1613_v22 = vpop.permute.xlu0 %1612  ;;  %v4284_v9 = vadd.f32 %v4277_v45, %v1493_v51  ;;  %v988_v1 = vsel %vm899_vm4, %v5157_v17, %v5148_v27  ;;  %v5171_v34 = vld [vmem:[#allocation100_spill] sm:$0xff] }
 0x248   : > { %v4279_v42 = vadd.f32 %v1596_v13, %v1447_v35  ;;  %v4281_v46 = vadd.f32 %v1597_v6, %v1448_v3  ;;  %v1017_v62 = vadd.f32 %v1011_v10, %v4035_v21  ;;  %v1126_v18 = vadd.f32 %v5160_v28, %v4110_v60  ;;  %v5168_v35 = vld [vmem:[#allocation82_spill] sm:$0xff]  ;;  %v5169_v21 = vld [vmem:[#allocation84_spill] sm:$0xff]  ;;  %v5170_v10 = vld [vmem:[#allocation89_spill] sm:$0xff] }
 0x249   : > { %v1127_v19 = vadd.f32 %v1121_v8, %v4166_v31  ;;  %v1143_v27 = vsel %vm1054_vm5, %v5168_v35, %v5151_v14  ;;  %v1188_v3 = vsel %vm1054_vm5, %v5170_v10, %v5169_v21  ;;  %v1371_v51 = vadd.f32 %v1368_v12, %v1259_v25  ;;  %v5172_v31 = vld [vmem:[#allocation102_spill] sm:$0xff]  ;;  %v5173_v28 = vld [vmem:[#allocation107_spill] sm:$0xff]  ;;  %v5174_v21 = vld [vmem:[#allocation44_spill] sm:$0xff] }
 0x24a   : > { %v1172_v17 = vadd.f32 %v1166_v26, %v1017_v62  ;;  %v4308_v32 = vstv %s4249_s9  ;;  %v1276_v60 = vsel %vm1209_vm6, %v5171_v34, %v5154_v59  ;;  %v1321_v8 = vsel %vm1209_vm6, %v5173_v28, %v5172_v31  ;;  %s2727_s9 = sld [smem:[#allocation7 + $0x5f]] }
 0x24b   : > { %v1372_v14 = vadd.f32 %v1369_v38, %v1260_v16  ;;  %v1389_v26 = vadd.f32 %v1386_v24, %v1305_v55  ;;  %v1281_v13 = vadd.f32 %v5171_v34, %v1126_v18  ;;  %v1376_v25 = vmul.f32 0.0, %v4185_v37 }
 0x24c   : > { %1929 = vrot.lane.b32.xlu1 %v1922_v47, %s2936_s26  ;;  %v1377_v12 = vmul.f32 %v4185_v37, %v3464_v49  ;;  %v1394_v6 = vmul.f32 %v4308_v32, %v3478_v61  ;;  %1909 = vrot.lane.b32.xlu2 %v1901_v11, %s2936_s26  ;;  %v1469_v59 = vadd.f32 %v3823_v40, %v1371_v51  ;;  %v4331_v55 = vstv %s4272_s13  ;;  %s2722_s13 = sld [smem:[#allocation7 + $0x5a]] }
 0x24d   : > { %1949 = vrot.lane.b32.xlu0 %v1943_v41, %s2936_s26  ;;  %v1470_v38 = vadd.f32 %v3827_v0, %v1372_v14  ;;  %v1515_v24 = vadd.f32 %v3829_v15, %v1389_v26  ;;  %v1282_v47 = vadd.f32 %v1276_v60, %v1127_v19  ;;  %v1327_v37 = vadd.f32 %v1321_v8, %v1172_v17  ;;  %v5175_v60 = vld [vmem:[#allocation64_spill] sm:$0xff]  ;;  %v5177_v14 = vld [vmem:[#allocation105_spill] sm:$0xff]  ;;  %v5178_v26 = vld [vmem:[#allocation110_spill] sm:$0xff] }
 0x24e   : > { %v1615_v16 = vpop.permute.xlu1 %1614  ;;  %v4338_v29 = vpop.permute.xlu2 %1660  ;;  %v1944_v18 = vmul.f32 %v4270_v20, %v3478_v61  ;;  %v994_v19 = vadd.f32 %v988_v1, %v4032_v50  ;;  %v1923_v17 = vmul.f32 0.0, %v4208_v7  ;;  %v853_v51 = vsel %vm737_vm3, %v5110_v52, %v5174_v21  ;;  %v5176_v7 = vld [vmem:[#allocation103_spill] sm:$0xff] }
 0x24f   : > { %v1618_v62 = vsel %vm582_vm2, %v1613_v22, %v1615_v16  ;;  %v1619_v41 = vsel %vm582_vm2, %v1615_v16, %v4215_v58  ;;  %v1635_v11 = vpop.permute.xlu0 %1634  ;;  %v4345_v15 = vadd.f32 %v4338_v29, %v1515_v24  ;;  %v1039_v22 = vadd.f32 %v1033_v4, %v4038_v2 }
 0x250   : > { %v4340_v40 = vadd.f32 %v1618_v62, %v1469_v59  ;;  %v4342_v0 = vadd.f32 %v1619_v41, %v1470_v38  ;;  %v1965_v58 = vmul.f32 %v4331_v55, %v3464_v49  ;;  %v854_v34 = vsel %vm737_vm3, %v5174_v21, %v5111_v39  ;;  %v5182_v21 = vld [vmem:[#allocation115_spill] sm:$0xff] }
 0x251   : > { %v1010_v31 = vsel %vm899_vm4, %v5175_v60, %v5159_v36  ;;  %v1148_v2 = vadd.f32 %v5168_v35, %v4228_v54  ;;  %v1149_v50 = vadd.f32 %v1143_v27, %v994_v19  ;;  %v1194_v1 = vadd.f32 %v1188_v3, %v1039_v22  ;;  %v5180_v22 = vld [vmem:[#allocation114_spill] sm:$0xff] }
 0x252   : > { %v1379_v4 = vadd.f32 %v1376_v25, %v1281_v13  ;;  %v4366_v8 = vstv %s4310_s23  ;;  %v1298_v52 = vsel %vm1209_vm6, %v5176_v7, %v5165_v43  ;;  %v1343_v39 = vsel %vm1209_vm6, %v5178_v26, %v5177_v14  ;;  %s2728_s23 = sld [smem:[#allocation7 + $0x60]] }
 0x253   : > { %v1380_v59 = vadd.f32 %v1377_v12, %v1282_v47  ;;  %v1397_v38 = vadd.f32 %v1394_v6, %v1327_v37  ;;  %v1303_v54 = vadd.f32 %v5176_v7, %v1148_v2  ;;  %v1384_v36 = vmul.f32 0.0, %v4247_v48  ;;  %v5183_v2 = vld [vmem:[#allocation17_spill] sm:$0xff] }
 0x254   : > { %1951 = vrot.lane.b32.xlu1 %v1944_v18, %s2936_s26  ;;  %v1385_v35 = vmul.f32 %v4247_v48, %v3464_v49  ;;  %v1402_v27 = vmul.f32 %v4366_v8, %v3478_v61  ;;  %1931 = vrot.lane.b32.xlu2 %v1923_v17, %s2936_s26  ;;  %v1491_v43 = vadd.f32 %v3916_v5, %v1379_v4  ;;  %v4387_v12 = vstv %s4333_s18  ;;  %v5179_v18 = vld [vmem:[#allocation13_spill] sm:$0xff]  ;;  %v5185_v4 = vld [vmem:[#allocation46_spill] sm:$0xff]  ;;  %s2729_s18 = sld [smem:[#allocation7 + $0x61]] }
 0x255   : > { %1971 = vrot.lane.b32.xlu0 %v1965_v58, %s2936_s26  ;;  %v1492_v3 = vadd.f32 %v3920_v44, %v1380_v59  ;;  %v1537_v13 = vadd.f32 %v3922_v33, %v1397_v38  ;;  %v1304_v6 = vadd.f32 %v1298_v52, %v1149_v50  ;;  %v1349_v48 = vadd.f32 %v1343_v39, %v1194_v1  ;;  %v5181_v58 = vld [vmem:[#allocation14_spill] sm:$0xff]  ;;  %v5184_v1 = vld [vmem:[#allocation47_spill] sm:$0xff]  ;;  %v5186_v52 = vld [vmem:[#allocation85_spill] sm:$0xff] }
 0x256   : > { %v1637_v25 = vpop.permute.xlu1 %1636  ;;  %v4394_v47 = vpop.permute.xlu2 %1682  ;;  %v1966_v62 = vmul.f32 %v4331_v55, %v3478_v61  ;;  %v859_v41 = vadd.f32 %v853_v51, %v3874_v57  ;;  %v1945_v19 = vmul.f32 0.0, %v4270_v20  ;;  %v720_v17 = vadd.f32 %v5181_v58, %v5180_v22  ;;  %v5187_v51 = vld [vmem:[#allocation42_spill] sm:$0xff]  ;;  %v5188_v39 = vld [vmem:[#allocation67_spill] sm:$0xff] }
 0x257   : > { %v1640_v24 = vsel %vm582_vm2, %v1635_v11, %v1637_v25  ;;  %v1641_v16 = vsel %vm582_vm2, %v1637_v25, %v4277_v45  ;;  %v1657_v37 = vpop.permute.xlu0 %1656  ;;  %v4401_v33 = vadd.f32 %v4394_v47, %v1537_v13  ;;  %v860_v11 = vadd.f32 %v854_v34, %v5179_v18  ;;  %v5189_v38 = vld [vmem:[#allocation106_spill] sm:$0xff] }
 0x258   : > { %v4396_v5 = vadd.f32 %v1640_v24, %v1491_v43  ;;  %v4398_v44 = vadd.f32 %v1641_v16, %v1492_v3  ;;  %v1987_v45 = vmul.f32 %v4387_v12, %v3464_v49  ;;  %v721_v50 = vadd.f32 %v5183_v2, %v5182_v21 }
 0x259   : > { %v876_v7 = vsel %vm737_vm3, %v5185_v4, %v5184_v1  ;;  %v1165_v57 = vsel %vm1054_vm5, %v5186_v52, %v5162_v53  ;;  %v877_v34 = vsel %vm737_vm3, %v5184_v1, %v5187_v51  ;;  %v1015_v20 = vadd.f32 %v5175_v60, %v859_v41 }
 0x25a   : > { %v1016_v14 = vadd.f32 %v1010_v31, %v860_v11  ;;  %v1032_v59 = vsel %vm899_vm4, %v5188_v39, %v5167_v63  ;;  %v1320_v43 = vsel %vm1209_vm6, %v5189_v38, %v5173_v28  ;;  %v1387_v3 = vadd.f32 %v1384_v36, %v1303_v54  ;;  %v5190_v63 = vld [vmem:[#allocation16_spill] sm:$0xff]  ;;  %v5191_v28 = vld [vmem:[#allocation113_spill] sm:$0xff]  ;;  %v5192_v36 = vld [vmem:[#allocation15_spill] sm:$0xff] }
 0x25b   : > { %v1388_v13 = vadd.f32 %v1385_v35, %v1304_v6  ;;  %v1405_v25 = vadd.f32 %v1402_v27, %v1349_v48  ;;  %v1170_v53 = vadd.f32 %v5186_v52, %v1015_v20  ;;  %v1392_v60 = vmul.f32 0.0, %v4308_v32 }
 0x25c   : > { %1973 = vrot.lane.b32.xlu1 %v1966_v62, %s2936_s26  ;;  %v1171_v24 = vadd.f32 %v1165_v57, %v1016_v14  ;;  %v1393_v31 = vmul.f32 %v4308_v32, %v3464_v49  ;;  %1953 = vrot.lane.b32.xlu2 %v1945_v19, %s2936_s26  ;;  %v1513_v16 = vadd.f32 %v5190_v63, %v1387_v3  ;;  %v4441_v6 = vstv %s4389_s21  ;;  %s2940_s21 = smov 50  }
 0x25d   : > { %1993 = vrot.lane.b32.xlu0 %v1987_v45, %s2936_s26  ;;  %v1514_v54 = vadd.f32 %v5191_v28, %v1388_v13  ;;  %v1559_v35 = vadd.f32 %v5192_v36, %v1405_v25  ;;  %v1325_v48 = vadd.f32 %v5189_v38, %v1170_v53  ;;  %v1988_v58 = vmul.f32 %v4387_v12, %v3478_v61 }
 0x25e   : > { %v1659_v27 = vpop.permute.xlu1 %1658  ;;  %v1326_v62 = vadd.f32 %v1320_v43, %v1171_v24  ;;  %v1705_v18 = vpop.permute.xlu2 %1704  ;;  %v882_v21 = vadd.f32 %v876_v7, %v720_v17  ;;  %v883_v2 = vadd.f32 %v877_v34, %v721_v50  ;;  %v2009_v1 = vmul.f32 %v4441_v6, %v3464_v49  ;;  %v5194_v50 = vld [vmem:[#allocation109_spill] sm:$0xff]  ;;  %v5196_v34 = vld [vmem:[#allocation19_spill] sm:$0xff] }
 0x25f   : > { %v1662_v41 = vsel %vm582_vm2, %v1657_v37, %v1659_v27  ;;  %v1663_v32 = vsel %vm582_vm2, %v1659_v27, %v4338_v29  ;;  %v1679_v11 = vpop.permute.xlu0 %1678  ;;  %v4451_v22 = vadd.f32 %v1705_v18, %v1559_v35  ;;  %v1967_v37 = vmul.f32 0.0, %v4331_v55  ;;  %v5193_v29 = vld [vmem:[#allocation88_spill] sm:$0xff]  ;;  %v5198_v27 = vld [vmem:[#allocation18_spill] sm:$0xff] }
 0x260   : > { %v4447_v45 = vadd.f32 %v1662_v41, %v1513_v16  ;;  %v4449_v19 = vadd.f32 %v1663_v32, %v1514_v54  ;;  %v1187_v4 = vsel %vm1054_vm5, %v5193_v29, %v5170_v10  ;;  %v1037_v52 = vadd.f32 %v5188_v39, %v882_v21  ;;  %v5195_v55 = vld [vmem:[#allocation20_spill] sm:$0xff] }
 0x261   : > { %v1038_v57 = vadd.f32 %v1032_v59, %v883_v2  ;;  %v1395_v51 = vadd.f32 %v1392_v60, %v1325_v48  ;;  %v1396_v20 = vadd.f32 %v1393_v31, %v1326_v62  ;;  %v1342_v7 = vsel %vm1209_vm6, %v5194_v50, %v5178_v26 }
 0x262   : > { %v1192_v14 = vadd.f32 %v5193_v29, %v1037_v52  ;;  %v1400_v59 = vmul.f32 0.0, %v4366_v8  ;;  %v2030_v43 = vstv %s2716_s22  ;;  %v1401_v13 = vmul.f32 %v4366_v8, %v3464_v49  ;;  %v5199_v29 = vld [vmem:[#allocation23_spill] sm:$0xff]  ;;  %s2941_s22 = smov 49  }
 0x263   : > { %v1193_v17 = vadd.f32 %v1187_v4, %v1038_v57  ;;  %v1535_v10 = vadd.f32 %v5195_v55, %v1395_v51  ;;  %v1536_v39 = vadd.f32 %v5196_v34, %v1396_v20  ;;  %v2010_v16 = vmul.f32 %v4441_v6, %v3478_v61  ;;  %v5200_v34 = vld [vmem:[#allocation28_spill] sm:$0xff] }
 0x264   : > { %1995 = vrot.lane.b32.xlu1 %v1988_v58, %s2936_s26  ;;  %1975 = vrot.lane.b32.xlu2 %v1967_v37, %s2936_s26  ;;  %v1347_v3 = vadd.f32 %v5194_v50, %v1192_v14  ;;  %v2031_v28 = vmul.f32 %v2030_v43, %v3464_v49  ;;  %v1989_v54 = vmul.f32 0.0, %v4387_v12  ;;  %v2052_v41 = vstv %s2717_s27  ;;  %s2942_s27 = smov 47  }
 0x265   : > { %2015 = vrot.lane.b32.xlu0 %v2009_v1, %s2936_s26  ;;  %v1348_v60 = vadd.f32 %v1342_v7, %v1193_v17  ;;  %v2032_v37 = vmul.f32 %v2030_v43, %v3478_v61  ;;  %v2053_v52 = vmul.f32 %v2052_v41, %v3464_v49  ;;  %v2011_v57 = vmul.f32 0.0, %v4441_v6 }
 0x266   : > { %v1681_v38 = vpop.permute.xlu1 %1680  ;;  %v1727_v24 = vpop.permute.xlu2 %1726  ;;  %v1403_v8 = vadd.f32 %v1400_v59, %v1347_v3  ;;  %v2074_v51 = vstv %s2718_s28  ;;  %v2096_v3 = vstv %s2719_s7  ;;  %s2944_s28 = smov 45   ;;  %s4815_s7 = sld [smem:[#allocation2]] }
 0x267   : > { %v1684_v26 = vsel %vm582_vm2, %v1679_v11, %v1681_v38  ;;  %v1685_v25 = vsel %vm582_vm2, %v1681_v38, %v4394_v47  ;;  %v1701_v53 = vpop.permute.xlu0 %1700  ;;  %v1404_v36 = vadd.f32 %v1401_v13, %v1348_v60  ;;  %v5197_v47 = vld [vmem:[#allocation22_spill] sm:$0xff]  ;;  %v2075_v59 = vmul.f32 %v2074_v51, %v3464_v49 }
 0x268   : > { %v4478_v31 = vadd.f32 %v1684_v26, %v1535_v10  ;;  %v4480_v63 = vadd.f32 %v1685_v25, %v1536_v39  ;;  %v1557_v35 = vadd.f32 %v5197_v47, %v1403_v8  ;;  %v2054_v10 = vmul.f32 %v2052_v41, %v3478_v61 }
 0x269   : > { %v1558_v48 = vadd.f32 %v5198_v27, %v1404_v36  ;;  %v2033_v38 = vmul.f32 0.0, %v2030_v43  ;;  %v2076_v60 = vmul.f32 %v2074_v51, %v3478_v61 }
 0x26c   : > { %2017 = vrot.lane.b32.xlu1 %v2010_v16, %s2936_s26  ;;  %1997 = vrot.lane.b32.xlu2 %v1989_v54, %s2936_s26  ;;  %v2055_v54 = vmul.f32 0.0, %v2052_v41 }
 0x26d   : > { %2037 = vrot.lane.b32.xlu0 %v2031_v28, %s2937_s11  ;;  %v2097_v28 = vmul.f32 %v2096_v3, %v3464_v49 }
 0x26e   : > { %v1703_v62 = vpop.permute.xlu1 %1702  ;;  %v1750_v58 = vpop.permute.xlu2 %1749 }
 0x26f   : > { %v1706_v32 = vsel %vm582_vm2, %v1701_v53, %v1703_v62  ;;  %v1707_v11 = vsel %vm582_vm2, %v1703_v62, %v1705_v18  ;;  %v1723_v12 = vpop.permute.xlu0 %1722  ;;  %v2098_v62 = vmul.f32 %v2096_v3, %v3478_v61  ;;  %vm2419_vm2 = vcmask 384000  }
 0x270   : > { %v4493_v21 = vadd.f32 %v1706_v32, %v1557_v35  ;;  %v4495_v2 = vadd.f32 %v1707_v11, %v1558_v48  ;;  %v1730_v1 = vsel %vm737_vm3, %v1727_v24, %v1723_v12  ;;  %v2077_v11 = vmul.f32 0.0, %v2074_v51 }
 0x271   : > { %v4500_v4 = vadd.f32 %v1730_v1, %v5199_v29 }
 0x274   : > { %2039 = vrot.lane.b32.xlu1 %v2032_v37, %s2937_s11  ;;  %2019 = vrot.lane.b32.xlu2 %v2011_v57, %s2936_s26  ;;  %s2720_s26 = sld [smem:[#allocation7 + $0x58]] }
 0x275   : > { %2059 = vrot.lane.b32.xlu0 %v2053_v52, %s2937_s11 }
 0x276   : > { %v1725_v18 = vpop.permute.xlu1 %1724  ;;  %v1773_v50 = vpop.permute.xlu2 %1772 }
 0x277   : > { %v1728_v20 = vsel %vm737_vm3, %v1723_v12, %v1725_v18  ;;  %v1729_v14 = vsel %vm737_vm3, %v1725_v18, %v1727_v24  ;;  %v1746_v17 = vpop.permute.xlu0 %1745  ;;  %v2140_v12 = vstv %s2721_s8 }
 0x278   : > { %v4510_v7 = vadd.f32 %v1728_v20, %v4217_v30  ;;  %v4513_v6 = vadd.f32 %v1729_v14, %v4219_v23  ;;  %v1753_v55 = vsel %vm737_vm3, %v1750_v58, %v1746_v17  ;;  %v2141_v51 = vmul.f32 %v2140_v12, %v3464_v49 }
 0x279   : > { %v4518_v39 = vadd.f32 %v1753_v55, %v5200_v34  ;;  %v2099_v20 = vmul.f32 0.0, %v2096_v3  ;;  %v2184_v14 = vstv %s2723_s24 }
 0x27a   : > { %v2118_v8 = vstv %s2720_s26  ;;  %s2736_s26 = sshll.u32 %s2990_s2, 3  ;;  %s203_s2 = scalar_lea.vmem [#allocation8], %s2618_s6 }
 0x27b   : > { %v2119_v32 = vmul.f32 %v2118_v8, %v3464_v49  ;;  %v2120_v57 = vmul.f32 %v2118_v8, %v3478_v61  ;;  %v2121_v3 = vmul.f32 0.0, %v2118_v8  ;;  %v2143_v8 = vmul.f32 0.0, %v2140_v12  ;;  %s2880_s6 = scalar_lea.hbm %s4886_s3, 16 }
 0x27c   : > { %2061 = vrot.lane.b32.xlu1 %v2054_v10, %s2937_s11  ;;  %2041 = vrot.lane.b32.xlu2 %v2033_v38, %s2937_s11 }
 0x27d   : > { %2081 = vrot.lane.b32.xlu0 %v2075_v59, %s2937_s11  ;;  %v2142_v59 = vmul.f32 %v2140_v12, %v3478_v61 }
 0x27e   : > { %v1748_v30 = vpop.permute.xlu1 %1747  ;;  %v1796_v25 = vpop.permute.xlu2 %1795 }
 0x27f   : > { %v1751_v23 = vsel %vm737_vm3, %v1746_v17, %v1748_v30  ;;  %v1752_v13 = vsel %vm737_vm3, %v1748_v30, %v1750_v58  ;;  %v1769_v26 = vpop.permute.xlu0 %1768  ;;  %v2185_v30 = vmul.f32 %v2184_v14, %v3464_v49 }
 0x280   : > { %v4527_v53 = vadd.f32 %v1751_v23, %v4279_v42  ;;  %v4530_v43 = vadd.f32 %v1752_v13, %v4281_v46  ;;  %v1776_v24 = vsel %vm737_vm3, %v1773_v50, %v1769_v26  ;;  %v2206_v23 = vstv %s2724_s10  ;;  %s2523_s10 = scalar_lea.hbm %s4886_s3, %s2736_s26 }
 0x281   : > { %v4535_v16 = vadd.f32 %v1776_v24, %v4222_v56 }
 0x284   : > { %2083 = vrot.lane.b32.xlu1 %v2076_v60, %s2937_s11  ;;  %2063 = vrot.lane.b32.xlu2 %v2055_v54, %s2937_s11 }
 0x285   : > { %2103 = vrot.lane.b32.xlu0 %v2097_v28, %s2937_s11  ;;  %v2186_v28 = vmul.f32 %v2184_v14, %v3478_v61 }
 0x286   : > { %v1771_v42 = vpop.permute.xlu1 %1770  ;;  %v1819_v35 = vpop.permute.xlu2 %1818 }
 0x287   : > { %v1774_v46 = vsel %vm737_vm3, %v1769_v26, %v1771_v42  ;;  %v1775_v36 = vsel %vm737_vm3, %v1771_v42, %v1773_v50  ;;  %v1792_v47 = vpop.permute.xlu0 %1791  ;;  %v2207_v42 = vmul.f32 %v2206_v23, %v3464_v49 }
 0x288   : > { %v4544_v56 = vadd.f32 %v1774_v46, %v4340_v40  ;;  %v4547_v27 = vadd.f32 %v1775_v36, %v4342_v0  ;;  %v1799_v48 = vsel %vm737_vm3, %v1796_v25, %v1792_v47  ;;  %v2228_v46 = vstv %s2725_s12  ;;  %s2525_s12 = sshll.u32 %s203_s2, 4  ;;  %s2526_s12 = int_to_ptr.vmem [resolvable:$true] %s2525_s12 }
 0x289   : > { %v4552_v41 = vadd.f32 %v1799_v48, %v4284_v9 }
 0x28c   : > { %2105 = vrot.lane.b32.xlu1 %v2098_v62, %s2937_s11  ;;  %2085 = vrot.lane.b32.xlu2 %v2077_v11, %s2937_s11  ;;  %v2229_v11 = vmul.f32 %v2228_v46, %v3464_v49 }
 0x28d   : > { %2125 = vrot.lane.b32.xlu0 %v2119_v32, %s2937_s11  ;;  %v2208_v32 = vmul.f32 %v2206_v23, %v3478_v61 }
 0x28e   : > { %v1794_v40 = vpop.permute.xlu1 %1793  ;;  %v1842_v37 = vpop.permute.xlu2 %1841 }
 0x28f   : > { %v1797_v0 = vsel %vm737_vm3, %v1792_v47, %v1794_v40  ;;  %v1798_v58 = vsel %vm737_vm3, %v1794_v40, %v1796_v25  ;;  %v1815_v1 = vpop.permute.xlu0 %1814  ;;  %v2187_v40 = vmul.f32 0.0, %v2184_v14 }
 0x290   : > { %v4561_v9 = vadd.f32 %v1797_v0, %v4396_v5  ;;  %v4564_v29 = vadd.f32 %v1798_v58, %v4398_v44  ;;  %v1822_v52 = vsel %vm737_vm3, %v1819_v35, %v1815_v1 }
 0x291   : > { %v4569_v18 = vadd.f32 %v1822_v52, %v4345_v15 }
 0x294   : > { %2127 = vrot.lane.b32.xlu1 %v2120_v57, %s2937_s11  ;;  %2107 = vrot.lane.b32.xlu2 %v2099_v20, %s2937_s11  ;;  %v2230_v57 = vmul.f32 %v2228_v46, %v3478_v61  ;;  %v2209_v20 = vmul.f32 0.0, %v2206_v23 }
 0x295   : > { %2147 = vrot.lane.b32.xlu0 %v2141_v51, %s2937_s11 }
 0x296   : > { %v1817_v5 = vpop.permute.xlu1 %1816  ;;  %v1865_v55 = vpop.permute.xlu2 %1864 }
 0x297   : > { %v1820_v44 = vsel %vm737_vm3, %v1815_v1, %v1817_v5  ;;  %v1821_v17 = vsel %vm737_vm3, %v1817_v5, %v1819_v35  ;;  %v1838_v50 = vpop.permute.xlu0 %1837 }
 0x298   : > { %v4578_v15 = vadd.f32 %v1820_v44, %v4447_v45  ;;  %v4581_v10 = vadd.f32 %v1821_v17, %v4449_v19  ;;  %v1845_v34 = vsel %vm737_vm3, %v1842_v37, %v1838_v50 }
 0x299   : > { %v4586_v38 = vadd.f32 %v1845_v34, %v4401_v33 }
 0x29c   : > { %2149 = vrot.lane.b32.xlu1 %v2142_v59, %s2937_s11  ;;  %2129 = vrot.lane.b32.xlu2 %v2121_v3, %s2937_s11 }
 0x29d   : > { %2191 = vrot.lane.b32.xlu0 %v2185_v30, %s2938_s5  ;;  %v2231_v30 = vmul.f32 0.0, %v2228_v46 }
 0x29e   : > { %v1840_v45 = vpop.permute.xlu1 %1839  ;;  %v1888_v25 = vpop.permute.xlu2 %1887 }
 0x29f   : > { %v1843_v19 = vsel %vm737_vm3, %v1838_v50, %v1840_v45  ;;  %v1844_v13 = vsel %vm737_vm3, %v1840_v45, %v1842_v37  ;;  %v1861_v26 = vpop.permute.xlu0 %1860 }
 0x2a0   : > { %v4595_v33 = vadd.f32 %v1843_v19, %v4478_v31  ;;  %v4598_v24 = vadd.f32 %v1844_v13, %v4480_v63  ;;  %v1868_v60 = vsel %vm737_vm3, %v1865_v55, %v1861_v26 }
 0x2a1   : > { %v4603_v54 = vadd.f32 %v1868_v60, %v4451_v22 }
 0x2a4   : > { %2193 = vrot.lane.b32.xlu1 %v2186_v28, %s2938_s5  ;;  %2151 = vrot.lane.b32.xlu2 %v2143_v8, %s2937_s11 }
 0x2a5   : > { %2213 = vrot.lane.b32.xlu0 %v2207_v42, %s2938_s5 }
 0x2a6   : > { %v1863_v31 = vpop.permute.xlu1 %1862  ;;  %v1910_v35 = vpop.permute.xlu2 %1909 }
 0x2a7   : > { %v1866_v63 = vsel %vm737_vm3, %v1861_v26, %v1863_v31  ;;  %v1867_v36 = vsel %vm737_vm3, %v1863_v31, %v1865_v55  ;;  %v1884_v47 = vpop.permute.xlu0 %1883 }
 0x2a8   : > { %v4612_v22 = vadd.f32 %v1866_v63, %v4493_v21  ;;  %v4615_v48 = vadd.f32 %v1867_v36, %v4495_v2  ;;  %v4618_v62 = vadd.f32 %v1884_v47, %v4510_v7  ;;  %v2250_v21 = vstv %s2726_s19  ;;  %s2527_s19 = sshll.u32 %s2523_s10, 4  ;;  %s2528_s19 = int_to_ptr.hbm [resolvable:$true] %s2527_s19 }
 0x2a9   : > { %v2251_v51 = vmul.f32 %v2250_v21, %v3464_v49  ;;  %v2252_v34 = vmul.f32 %v2250_v21, %v3478_v61  ;;  %v2253_v28 = vmul.f32 0.0, %v2250_v21 }
 0x2ac   : > { %2215 = vrot.lane.b32.xlu1 %v2208_v32, %s2938_s5  ;;  %2195 = vrot.lane.b32.xlu2 %v2187_v40, %s2938_s5 }
 0x2ad   : > { %2235 = vrot.lane.b32.xlu0 %v2229_v11, %s2938_s5 }
 0x2ae   : > { %v1886_v12 = vpop.permute.xlu1 %1885  ;;  %v1932_v58 = vpop.permute.xlu2 %1931 }
 0x2af   : > { %v1889_v2 = vsel %vm899_vm4, %v1884_v47, %v1886_v12  ;;  %v1890_v0 = vsel %vm899_vm4, %v1886_v12, %v1888_v25  ;;  %v1906_v7 = vpop.permute.xlu0 %1905 }
 0x2b0   : > { %v4628_v1 = vadd.f32 %v1889_v2, %v4513_v6  ;;  %v4631_v37 = vadd.f32 %v1890_v0, %v4500_v4  ;;  %v4634_v52 = vadd.f32 %v1906_v7, %v4527_v53  ;;  %v2272_v6 = vstv %s2727_s9  ;;  %s2512_s9 = scalar_lea.sflag [#allocation5], %s3062_s4 }
 0x2b1   : > { %v2273_v59 = vmul.f32 %v2272_v6, %v3464_v49  ;;  %v2274_v25 = vmul.f32 %v2272_v6, %v3478_v61  ;;  %v2275_v32 = vmul.f32 0.0, %v2272_v6 }
 0x2b4   : > { %2237 = vrot.lane.b32.xlu1 %v2230_v57, %s2938_s5  ;;  %2217 = vrot.lane.b32.xlu2 %v2209_v20, %s2938_s5 }
 0x2b5   : > { %2257 = vrot.lane.b32.xlu0 %v2251_v51, %s2938_s5 }
 0x2b6   : > { %v1908_v5 = vpop.permute.xlu1 %1907  ;;  %v1954_v44 = vpop.permute.xlu2 %1953 }
 0x2b7   : > { %v1911_v4 = vsel %vm899_vm4, %v1906_v7, %v1908_v5  ;;  %v1912_v14 = vsel %vm899_vm4, %v1908_v5, %v1910_v35  ;;  %v1928_v53 = vpop.permute.xlu0 %1927 }
 0x2b8   : > { %v4644_v17 = vadd.f32 %v1911_v4, %v4530_v43  ;;  %v4647_v50 = vadd.f32 %v1912_v14, %v4518_v39  ;;  %v4650_v55 = vadd.f32 %v1928_v53, %v4544_v56  ;;  %v2162_v43 = vstv %s2722_s13  ;;  %s2874_s13 = sshra.s32 %s2528_s19, 4  ;;  %s2875_s13 = int_to_ptr.hbm [resolvable:$true] %s2874_s13 }
 0x2b9   : > { %v2163_v60 = vmul.f32 %v2162_v43, %v3464_v49  ;;  %v2164_v47 = vmul.f32 %v2162_v43, %v3478_v61  ;;  %v2165_v57 = vmul.f32 0.0, %v2162_v43  ;;  %p2881_p9 = scmp.lt.s32.totalorder %s2875_s13, %s4886_s3 }
 0x2bc   : > { %2259 = vrot.lane.b32.xlu1 %v2252_v34, %s2938_s5  ;;  %2239 = vrot.lane.b32.xlu2 %v2231_v30, %s2938_s5 }
 0x2bd   : > { %2279 = vrot.lane.b32.xlu0 %v2273_v59, %s2938_s5 }
 0x2be   : > { %v1930_v3 = vpop.permute.xlu1 %1929  ;;  %v1976_v23 = vpop.permute.xlu2 %1975 }
 0x2bf   : > { %v1933_v39 = vsel %vm899_vm4, %v1928_v53, %v1930_v3  ;;  %v1934_v45 = vsel %vm899_vm4, %v1930_v3, %v1932_v58  ;;  %v1950_v56 = vpop.permute.xlu0 %1949 }
 0x2c0   : > { %v4660_v19 = vadd.f32 %v1933_v39, %v4547_v27  ;;  %v4663_v13 = vadd.f32 %v1934_v45, %v4535_v16  ;;  %v4666_v26 = vadd.f32 %v1950_v56, %v4561_v9  ;;  %v2294_v27 = vstv %s2728_s23  ;;  %s2876_s23 = scalar_lea.hbm %s2875_s13, 8 }
 0x2c1   : > { %v2295_v35 = vmul.f32 %v2294_v27, %v3464_v49  ;;  %v2296_v7 = vmul.f32 %v2294_v27, %v3478_v61  ;;  %v2297_v14 = vmul.f32 0.0, %v2294_v27  ;;  %p2877_p1 = scmp.ne.s32.totalorder %s2875_s13, %s2876_s23  ;;  %p2882_p10 = scmp.lt.s32.totalorder %s2880_s6, %s2876_s23 }
 0x2c3   : > { %p2878_p4 = pnand %p2877_p1, %p3035_p3  ;;  %p2883_p2 = por %p2882_p10, %p2881_p9 }
 0x2c4   : > { %2281 = vrot.lane.b32.xlu1 %v2274_v25, %s2938_s5  ;;  %2261 = vrot.lane.b32.xlu2 %v2253_v28, %s2938_s5 }
 0x2c5   : > { %2169 = vrot.lane.b32.xlu0 %v2163_v60, %s2937_s11  ;;  %p2879_p8 = pneg %p2878_p4 }
 0x2c6   : > { %v1952_v42 = vpop.permute.xlu1 %1951  ;;  %v1998_v31 = vpop.permute.xlu2 %1997 }
 0x2c7   : > { %v1955_v16 = vsel %vm899_vm4, %v1950_v56, %v1952_v42  ;;  %v1956_v8 = vsel %vm899_vm4, %v1952_v42, %v1954_v44  ;;  %v1972_v9 = vpop.permute.xlu0 %1971  ;;  %p2884_p11 = pnand %p2883_p2, %p2879_p8 }
 0x2c8   : > { %v4676_v46 = vadd.f32 %v1955_v16, %v4564_v29  ;;  %v4679_v63 = vadd.f32 %v1956_v8, %v4552_v41  ;;  %v4682_v36 = vadd.f32 %v1972_v9, %v4578_v15  ;;  %v2316_v29 = vstv %s2729_s18 }
 0x2c9   : > { %v2317_v58 = vmul.f32 %v2316_v29, %v3464_v49  ;;  %v2318_v4 = vmul.f32 %v2316_v29, %v3478_v61  ;;  %v2319_v30 = vmul.f32 0.0, %v2316_v29 }
 0x2cc   : > { %2171 = vrot.lane.b32.xlu1 %v2164_v47, %s2937_s11  ;;  %2283 = vrot.lane.b32.xlu2 %v2275_v32, %s2938_s5 }
 0x2cd   : > { %2301 = vrot.lane.b32.xlu0 %v2295_v35, %s2938_s5 }
 0x2ce   : > { %v1974_v11 = vpop.permute.xlu1 %1973  ;;  %v2020_v15 = vpop.permute.xlu2 %2019 }
 0x2cf   : > { %v1977_v40 = vsel %vm899_vm4, %v1972_v9, %v1974_v11  ;;  %v1978_v41 = vsel %vm899_vm4, %v1974_v11, %v1976_v23  ;;  %v1994_v12 = vpop.permute.xlu0 %1993 }
 0x2d0   : > { %v4692_v21 = vadd.f32 %v1977_v40, %v4581_v10  ;;  %v4695_v2 = vadd.f32 %v1978_v41, %v4569_v18  ;;  %v4698_v0 = vadd.f32 %v1994_v12, %v4595_v33 }
 0x2d4   : > { %2303 = vrot.lane.b32.xlu1 %v2296_v7, %s2938_s5  ;;  %2173 = vrot.lane.b32.xlu2 %v2165_v57, %s2937_s11 }
 0x2d5   : > { %2323 = vrot.lane.b32.xlu0 %v2317_v58, %s2938_s5 }
 0x2d6   : > { %v1996_v51 = vpop.permute.xlu1 %1995  ;;  %v2042_v5 = vpop.permute.xlu2 %2041 }
 0x2d7   : > { %v1999_v10 = vsel %vm899_vm4, %v1994_v12, %v1996_v51  ;;  %v2000_v18 = vsel %vm899_vm4, %v1996_v51, %v1998_v31  ;;  %v2016_v20 = vpop.permute.xlu0 %2015 }
 0x2d8   : > { %v4708_v33 = vadd.f32 %v1999_v10, %v4598_v24  ;;  %v4711_v6 = vadd.f32 %v2000_v18, %v4586_v38  ;;  %v4714_v49 = vadd.f32 %v2016_v20, %v4612_v22 }
 0x2dc   : > { %2325 = vrot.lane.b32.xlu1 %v2318_v4, %s2938_s5  ;;  %2305 = vrot.lane.b32.xlu2 %v2297_v14, %s2938_s5 }
 0x2de   : > { %v2018_v53 = vpop.permute.xlu1 %2017  ;;  %v2064_v59 = vpop.permute.xlu2 %2063 }
 0x2df   : > { %v2021_v44 = vsel %vm899_vm4, %v2016_v20, %v2018_v53  ;;  %v2022_v34 = vsel %vm899_vm4, %v2018_v53, %v2020_v15  ;;  %v2038_v24 = vpop.permute.xlu0 %2037 }
 0x2e0   : > { %v4722_v38 = vadd.f32 %v2021_v44, %v4615_v48  ;;  %v4725_v22 = vadd.f32 %v2022_v34, %v4603_v54  ;;  %v2048_v8 = vadd.f32 %v2038_v24, %v4618_v62 }
 0x2e4   : > { %2327 = vrot.lane.b32.xlu2 %v2319_v30, %s2938_s5  ;;  %s2939_s5 = smov 51  }
 0x2e6   : > { %v2040_v61 = vpop.permute.xlu1 %2039  ;;  %v2086_v43 = vpop.permute.xlu2 %2085 }
 0x2e7   : > { %v2060_v3 = vpop.permute.xlu0 %2059  ;;  %v2043_v32 = vsel %vm1054_vm5, %v2038_v24, %v2040_v61  ;;  %v2044_v11 = vsel %vm1054_vm5, %v2040_v61, %v2042_v5 }
 0x2e8   : > { %v2049_v29 = vadd.f32 %v2043_v32, %v4628_v1  ;;  %v2050_v40 = vadd.f32 %v2044_v11, %v4631_v37  ;;  %v2070_v41 = vadd.f32 %v2060_v3, %v4634_v52 }
 0x2ee   : > { %v2062_v39 = vpop.permute.xlu1 %2061  ;;  %v4728_v56 = vpop.permute.xlu2 %2107 }
 0x2ef   : > { %v2082_v45 = vpop.permute.xlu0 %2081  ;;  %v2065_v18 = vsel %vm1054_vm5, %v2060_v3, %v2062_v39  ;;  %v2066_v1 = vsel %vm1054_vm5, %v2062_v39, %v2064_v59 }
 0x2f0   : > { %v2071_v37 = vadd.f32 %v2065_v18, %v4644_v17  ;;  %v2072_v52 = vadd.f32 %v2066_v1, %v4647_v50  ;;  %v2092_v20 = vadd.f32 %v2082_v45, %v4650_v55 }
 0x2f6   : > { %v2084_v23 = vpop.permute.xlu1 %2083  ;;  %v4732_v60 = vpop.permute.xlu2 %2129 }
 0x2f7   : > { %v4730_v25 = vpop.permute.xlu0 %2103  ;;  %v2087_v59 = vsel %vm1054_vm5, %v2082_v45, %v2084_v23  ;;  %v2088_v17 = vsel %vm1054_vm5, %v2084_v23, %v2086_v43 }
 0x2f8   : > { %v2093_v55 = vadd.f32 %v2087_v59, %v4660_v19  ;;  %v2094_v30 = vadd.f32 %v2088_v17, %v4663_v13 }
 0x2fe   : > { %v2106_v48 = vpop.permute.xlu1 %2105  ;;  %v4736_v54 = vpop.permute.xlu2 %2151 }
 0x2ff   : > { %v4734_v28 = vpop.permute.xlu0 %2125  ;;  %v2109_v45 = vsel %vm1054_vm5, %v4730_v25, %v2106_v48  ;;  %v2110_v43 = vsel %vm1054_vm5, %v2106_v48, %v4728_v56 }
 0x300   : > { %v2115_v19 = vadd.f32 %v2109_v45, %v4676_v46  ;;  %v2116_v13 = vadd.f32 %v2110_v43, %v4679_v63  ;;  %v2114_v63 = vadd.f32 %v4730_v25, %v4666_v26  ;;  %v2136_v26 = vadd.f32 %v4734_v28, %v4682_v36 }
 0x306   : > { %v4738_v42 = vpop.permute.xlu1 %2127  ;;  %v2196_v16 = vpop.permute.xlu2 %2195 }
 0x307   : > { %v4740_v27 = vpop.permute.xlu0 %2147  ;;  %v2131_v56 = vsel %vm1054_vm5, %v4734_v28, %v4738_v42  ;;  %v2132_v46 = vsel %vm1054_vm5, %v4738_v42, %v4732_v60 }
 0x308   : > { %v2137_v48 = vadd.f32 %v2131_v56, %v4692_v21  ;;  %v2158_v1 = vadd.f32 %v4740_v27, %v4698_v0 }
 0x30e   : > { %v4743_v9 = vpop.permute.xlu1 %2149  ;;  %v2218_v35 = vpop.permute.xlu2 %2217 }
 0x30f   : > { %v2192_v31 = vpop.permute.xlu0 %2191  ;;  %v2153_v60 = vsel %vm1054_vm5, %v4740_v27, %v4743_v9  ;;  %v2154_v42 = vsel %vm1054_vm5, %v4743_v9, %v4736_v54 }
 0x310   : > { %v2202_v47 = vadd.f32 %v2192_v31, %v2048_v8  ;;  %v2160_v36 = vadd.f32 %v2154_v42, %v4711_v6 }
 0x312   : > { %2342 = vrot.lane.b32.xlu2 %v2202_v47, %s2939_s5 }
 0x316   : > { %v2194_v12 = vpop.permute.xlu1 %2193  ;;  %v2240_v10 = vpop.permute.xlu2 %2239 }
 0x317   : > { %v2197_v62 = vsel %vm1209_vm6, %v2192_v31, %v2194_v12  ;;  %v2198_v15 = vsel %vm1209_vm6, %v2194_v12, %v2196_v16  ;;  %v2214_v7 = vpop.permute.xlu0 %2213 }
 0x318   : > { %v2203_v58 = vadd.f32 %v2197_v62, %v2049_v29  ;;  %v2204_v57 = vadd.f32 %v2198_v15, %v2050_v40  ;;  %v2224_v51 = vadd.f32 %v2214_v7, %v2070_v41  ;;  %v2138_v41 = vadd.f32 %v2132_v46, %v4695_v2 }
 0x31a   : > { %2346 = vrot.lane.b32.xlu1 %v2204_v57, %s2939_s5  ;;  %2360 = vrot.lane.b32.xlu2 %v2224_v51, %s2940_s21 }
 0x31b   : > { %2344 = vrot.lane.b32.xlu0 %v2203_v58, %s2939_s5 }
 0x31e   : > { %v2216_v5 = vpop.permute.xlu1 %2215  ;;  %v2262_v50 = vpop.permute.xlu2 %2261 }
 0x31f   : > { %v2219_v4 = vsel %vm1209_vm6, %v2214_v7, %v2216_v5  ;;  %v2220_v14 = vsel %vm1209_vm6, %v2216_v5, %v2218_v35  ;;  %v2236_v53 = vpop.permute.xlu0 %2235 }
 0x320   : > { %v2225_v44 = vadd.f32 %v2219_v4, %v2071_v37  ;;  %v2226_v34 = vadd.f32 %v2220_v14, %v2072_v52  ;;  %v2246_v24 = vadd.f32 %v2236_v53, %v2092_v20  ;;  %v2159_v37 = vadd.f32 %v2153_v60, %v4708_v33 }
 0x322   : > { %2364 = vrot.lane.b32.xlu1 %v2226_v34, %s2940_s21  ;;  %2378 = vrot.lane.b32.xlu2 %v2246_v24, %s2941_s22 }
 0x323   : > { %2362 = vrot.lane.b32.xlu0 %v2225_v44, %s2940_s21 }
 0x326   : > { %v2238_v61 = vpop.permute.xlu1 %2237  ;;  %v2284_v47 = vpop.permute.xlu2 %2283 }
 0x327   : > { %v2241_v3 = vsel %vm1209_vm6, %v2236_v53, %v2238_v61  ;;  %v2242_v39 = vsel %vm1209_vm6, %v2238_v61, %v2240_v10  ;;  %v2258_v16 = vpop.permute.xlu0 %2257 }
 0x328   : > { %v2247_v8 = vadd.f32 %v2241_v3, %v2093_v55  ;;  %v2248_v31 = vadd.f32 %v2242_v39, %v2094_v30  ;;  %v2268_v7 = vadd.f32 %v2258_v16, %v2114_v63  ;;  %v204_v39 = vlaneseq }
 0x32a   : > { %2382 = vrot.lane.b32.xlu1 %v2248_v31, %s2941_s22  ;;  %v205_v31 = vand.u32 127, %v204_v39 }
 0x32b   : > { %2380 = vrot.lane.b32.xlu0 %v2247_v8, %s2941_s22 }
 0x32c   : > { %v206_v45 = vadd.s32 128, %v205_v31 }
 0x32e   : > { %v2260_v23 = vpop.permute.xlu1 %2259  ;;  %v2174_v51 = vpop.permute.xlu2 %2173 }
 0x32f   : > { %v2263_v35 = vsel %vm1209_vm6, %v2258_v16, %v2260_v23  ;;  %v2264_v32 = vsel %vm1209_vm6, %v2260_v23, %v2262_v50  ;;  %v2280_v11 = vpop.permute.xlu0 %2279 }
 0x330   : > { %v2269_v29 = vadd.f32 %v2263_v35, %v2115_v19  ;;  %v2270_v40 = vadd.f32 %v2264_v32, %v2116_v13  ;;  %v2290_v2 = vadd.f32 %v2280_v11, %v2136_v26  ;;  %v211_v19 = vand.u32 15, %v205_v31 }
 0x331   : > { %v218_v13 = vand.u32 15, %v206_v45 }
 0x332   : > { %2400 = vrot.lane.b32.xlu1 %v2270_v40, %s2937_s11  ;;  %v231_v35 = vadd.s32 4294967293, %v211_v19  ;;  %v255_v40 = vadd.s32 4294967295, %v211_v19  ;;  %v277_v46 = vadd.s32 1, %v211_v19 }
 0x333   : > { %2398 = vrot.lane.b32.xlu0 %v2269_v29, %s2937_s11  ;;  %v232_v32 = vadd.s32 4294967293, %v218_v13  ;;  %v244_v29 = vadd.s32 4294967294, %v218_v13  ;;  %v256_v63 = vadd.s32 4294967295, %v218_v13  ;;  %v278_v60 = vadd.s32 1, %v218_v13 }
 0x334   : > { %vm233_vm8 = vcmp.ge.s32.totalorder %v231_v35, 0  ;;  %vm257_vm13 = vcmp.ge.s32.totalorder %v255_v40, 0  ;;  %vm281_vm15 = vcmp.lt.s32.totalorder %v277_v46, 16 }
 0x335   : > { %vm234_vm9 = vcmp.ge.s32.totalorder %v232_v32, 0  ;;  %vm246_vm12 = vcmp.ge.s32.totalorder %v244_v29, 0  ;;  %vm258_vm1 = vcmp.ge.s32.totalorder %v256_v63, 0  ;;  %vm282_vm3 = vcmp.lt.s32.totalorder %v278_v60, 16 }
 0x336   : > { %v2282_v12 = vpop.permute.xlu1 %2281  ;;  %v2306_v25 = vpop.permute.xlu2 %2305 }
 0x337   : > { %v2285_v62 = vsel %vm1209_vm6, %v2280_v11, %v2282_v12  ;;  %v2286_v15 = vsel %vm1209_vm6, %v2282_v12, %v2284_v47  ;;  %v2170_v10 = vpop.permute.xlu0 %2169  ;;  %v243_v11 = vadd.s32 4294967294, %v211_v19  ;;  %v2337_v12 = vstv %s4815_s7 }
 0x338   : > { %v2291_v58 = vadd.f32 %v2285_v62, %v2137_v48  ;;  %v2292_v57 = vadd.f32 %v2286_v15, %v2138_v41  ;;  %v2180_v6 = vadd.f32 %v2170_v10, %v4714_v49  ;;  %v2945_v48 = vmov 0.0  }
 0x339   : > { %vm245_vm10 = vcmp.ge.s32.totalorder %v243_v11, 0  ;;  %v2621_v41 = vsel %vm233_vm8, 1.0, %v2945_v48 }
 0x33a   : > { %2396 = vrot.lane.b32.xlu1 %v2268_v7, %s2937_s11  ;;  %2415 = vrot.lane.b32.xlu2 %v2291_v58, %s2942_s27  ;;  %s2943_s11 = smov 46   ;;  %v2622_v7 = vsel %vm234_vm9, 1.0, %v2945_v48 }
 0x33b   : > { %2417 = vrot.lane.b32.xlu0 %v2292_v57, %s2942_s27  ;;  %v2623_v57 = vsel %vm245_vm10, 1.0, %v2945_v48  ;;  %vm2455_vm10 = vcmask 367616  }
 0x33e   : > { %v2172_v21 = vpop.permute.xlu1 %2171  ;;  %v2328_v0 = vpop.permute.xlu2 %2327 }
 0x33f   : > { %v2302_v18 = vpop.permute.xlu0 %2301  ;;  %v2175_v54 = vsel %vm1054_vm5, %v2170_v10, %v2172_v21  ;;  %v2176_v9 = vsel %vm1054_vm5, %v2172_v21, %v2174_v51  ;;  %v2624_v10 = vsel %vm246_vm12, 1.0, %v2945_v48 }
 0x340   : > { %v2312_v5 = vadd.f32 %v2302_v18, %v2158_v1  ;;  %v2181_v27 = vadd.f32 %v2175_v54, %v4722_v38  ;;  %v2182_v53 = vadd.f32 %v2176_v9, %v4725_v22  ;;  %v289_v1 = vadd.s32 2, %v211_v19 }
 0x342   : > { %2413 = vrot.lane.b32.xlu2 %v2290_v2, %s2942_s27  ;;  %vm293_vm4 = vcmp.lt.s32.totalorder %v289_v1, 16 }
 0x346   : > { %v2304_v28 = vpop.permute.xlu1 %2303 }
 0x347   : > { %v2307_v52 = vsel %vm1209_vm6, %v2302_v18, %v2304_v28  ;;  %v2308_v20 = vsel %vm1209_vm6, %v2304_v28, %v2306_v25  ;;  %v2324_v33 = vpop.permute.xlu0 %2323  ;;  %v2625_v25 = vsel %vm257_vm13, 1.0, %v2945_v48  ;;  %v2626_v28 = vsel %vm258_vm1, 1.0, %v2945_v48 }
 0x348   : > { %v2313_v4 = vadd.f32 %v2307_v52, %v2159_v37  ;;  %v2314_v14 = vadd.f32 %v2308_v20, %v2160_v36  ;;  %v2334_v59 = vadd.f32 %v2324_v33, %v2180_v6  ;;  %v290_v37 = vadd.s32 2, %v218_v13 }
 0x34a   : > { %2435 = vrot.lane.b32.xlu1 %v2314_v14, %s2943_s11  ;;  %2431 = vrot.lane.b32.xlu2 %v2312_v5, %s2943_s11 }
 0x34b   : > { %2433 = vrot.lane.b32.xlu0 %v2313_v4, %s2943_s11  ;;  %v2627_v4 = vsel %vm281_vm15, 1.0, %v2945_v48 }
 0x34e   : > { %v2326_v44 = vpop.permute.xlu1 %2325 }
 0x34f   : > { %v2329_v34 = vsel %vm1209_vm6, %v2324_v33, %v2326_v44  ;;  %v2330_v24 = vsel %vm1209_vm6, %v2326_v44, %v2328_v0  ;;  %vm294_vm6 = vcmp.lt.s32.totalorder %v290_v37, 16  ;;  %v302_v44 = vadd.s32 3, %v218_v13 }
 0x350   : > { %v2335_v17 = vadd.f32 %v2329_v34, %v2181_v27  ;;  %v2336_v50 = vadd.f32 %v2330_v24, %v2182_v53  ;;  %v301_v53 = vadd.s32 3, %v211_v19 }
 0x351   : > { %vm306_vm9 = vcmp.lt.s32.totalorder %v302_v44, 16 }
 0x352   : > { %2453 = vrot.lane.b32.xlu1 %v2336_v50, %s2944_s28  ;;  %2449 = vrot.lane.b32.xlu2 %v2334_v59, %s2944_s28  ;;  %v2628_v59 = vsel %vm282_vm3, 1.0, %v2945_v48  ;;  %vm305_vm8 = vcmp.lt.s32.totalorder %v301_v53, 16  ;;  %v2632_v35 = vsel %vm306_vm9, 1.0, %v2945_v48 }
 0x353   : > { %2451 = vrot.lane.b32.xlu0 %v2335_v17, %s2944_s28  ;;  %v2631_v13 = vsel %vm305_vm8, 1.0, %v2945_v48 }
 0x36c   : > { %v2343_v55 = vpop.permute.xlu2 %2342 }
 0x374   : > { %v2361_v49 = vpop.permute.xlu2 %2360 }
 0x37c   : > { %v2379_v22 = vpop.permute.xlu2 %2378 }
 0x38c   : > { %v2347_v30 = vpop.permute.xlu1 %2346 }
 0x38d   : > { %v2345_v61 = vpop.permute.xlu0 %2344 }
 0x38e   : > { %v2349_v62 = vsel %vm2348_vm7, %v2343_v55, %v2345_v61  ;;  %v2350_v58 = vsel %vm2348_vm7, %v2345_v61, %v2347_v30  ;;  %vm2437_vm7 = vcmask 375808   ;;  %v2629_v30 = vsel %vm293_vm4, 1.0, %v2945_v48 }
 0x38f   : > { %v2353_v21 = vmul.f32 %v2621_v41, %v2349_v62  ;;  %v2354_v42 = vmul.f32 %v2622_v7, %v2350_v58  ;;  %v2630_v61 = vsel %vm294_vm6, 1.0, %v2945_v48 }
 0x391   : > { %v2355_v5 = vadd.f32 %v2353_v21, %v2337_v12  ;;  %v2356_v9 = vadd.f32 %v2354_v42, %v2337_v12 }
 0x394   : > { %v2365_v3 = vpop.permute.xlu1 %2364  ;;  %v4809_v43 = vpop.permute.xlu2 %2415 }
 0x395   : > { %v2363_v38 = vpop.permute.xlu0 %2362 }
 0x396   : > { %v2367_v26 = vsel %vm2366_vm11, %v2361_v49, %v2363_v38  ;;  %v2368_v2 = vsel %vm2366_vm11, %v2363_v38, %v2365_v3 }
 0x397   : > { %v2371_v36 = vmul.f32 %v2623_v57, %v2367_v26  ;;  %v2372_v20 = vmul.f32 %v2624_v10, %v2368_v2 }
 0x399   : > { %v2373_v6 = vadd.f32 %v2371_v36, %v2355_v5  ;;  %v2374_v34 = vadd.f32 %v2372_v20, %v2356_v9 }
 0x39c   : > { %v2383_v16 = vpop.permute.xlu1 %2382  ;;  %v2414_v56 = vpop.permute.xlu2 %2413 }
 0x39d   : > { %v2381_v8 = vpop.permute.xlu0 %2380  ;;  %v2420_v50 = vsel %vm2419_vm2, %v2414_v56, %v4809_v43 }
 0x39e   : > { %v2385_v18 = vsel %vm2384_vm14, %v2379_v22, %v2381_v8  ;;  %v2386_v52 = vsel %vm2384_vm14, %v2381_v8, %v2383_v16  ;;  %v2424_v8 = vmul.f32 %v2627_v4, %v2420_v50 }
 0x39f   : > { %v2389_v14 = vmul.f32 %v2625_v25, %v2385_v18  ;;  %v2390_v0 = vmul.f32 %v2626_v28, %v2386_v52 }
 0x3a1   : > { %v2391_v55 = vadd.f32 %v2389_v14, %v2373_v6  ;;  %v2392_v49 = vadd.f32 %v2390_v0, %v2374_v34 }
 0x3a4   : > { %v4811_v23 = vpop.permute.xlu1 %2400  ;;  %v2432_v54 = vpop.permute.xlu2 %2431 }
 0x3a5   : > { %v4813_v47 = vpop.permute.xlu0 %2398 }
 0x3a6   : > { %v2403_v3 = vsel %vm1054_vm5, %v4813_v47, %v4811_v23 }
 0x3a7   : > { %v2409_v31 = vadd.f32 %v2403_v3, %v2392_v49 }
 0x3ac   : > { %v2397_v15 = vpop.permute.xlu1 %2396  ;;  %v2450_v11 = vpop.permute.xlu2 %2449 }
 0x3ad   : > { %v2418_v51 = vpop.permute.xlu0 %2417  ;;  %v2402_v24 = vsel %vm1054_vm5, %v2397_v15, %v4813_v47 }
 0x3ae   : > { %v2421_v17 = vsel %vm2419_vm2, %v4809_v43, %v2418_v51  ;;  %v2408_v22 = vadd.f32 %v2402_v24, %v2391_v55  ;;  %v5201_v24 = vld [vmem:[#allocation12_spill] sm:$0xff] }
 0x3af   : > { %v2425_v16 = vmul.f32 %v2628_v59, %v2421_v17 }
 0x3b0   : > { %v2426_v32 = vadd.f32 %v2424_v8, %v2408_v22 }
 0x3b1   : > { %v2427_v29 = vadd.f32 %v2425_v16, %v2409_v31 }
 0x3bc   : > { %v2436_v33 = vpop.permute.xlu1 %2435 }
 0x3bd   : > { %v2434_v27 = vpop.permute.xlu0 %2433 }
 0x3be   : > { %v2438_v38 = vsel %vm2437_vm7, %v2432_v54, %v2434_v27  ;;  %v2439_v39 = vsel %vm2437_vm7, %v2434_v27, %v2436_v33 }
 0x3bf   : > { %v2442_v45 = vmul.f32 %v2629_v30, %v2438_v38  ;;  %v2443_v43 = vmul.f32 %v2630_v61, %v2439_v39 }
 0x3c1   : > { %v2444_v56 = vadd.f32 %v2442_v45, %v2426_v32  ;;  %v2445_v46 = vadd.f32 %v2443_v43, %v2427_v29 }
 0x3c4   : > { %v2454_v19 = vpop.permute.xlu1 %2453 }
 0x3c5   : > { %v2452_v23 = vpop.permute.xlu0 %2451 }
 0x3c6   : > { %v2456_v47 = vsel %vm2455_vm10, %v2450_v11, %v2452_v23  ;;  %v2457_v40 = vsel %vm2455_vm10, %v2452_v23, %v2454_v19 }
 0x3c7   : > { %v2460_v63 = vmul.f32 %v2631_v13, %v2456_v47  ;;  %v2461_v41 = vmul.f32 %v2632_v35, %v2457_v40 }
 0x3c9   : > { %v2462_v12 = vadd.f32 %v2460_v63, %v2444_v56  ;;  %v2463_v62 = vadd.f32 %v2461_v41, %v2445_v46 }
 0x3cb   : > { %v2464_v15 = vsub.f32 0.0, %v2462_v12  ;;  %v2465_v7 = vsub.f32 0.0, %v2463_v62 }
 0x3cd   : > { %v2466_v58 = vmul.f32 1.442695, %v2464_v15  ;;  %v2468_v57 = vmul.f32 1.442695, %v2465_v7 }
 0x3cf   : > { %2807 = vpow2.f32 %v2466_v58 }
 0x3d0   : > { %2809 = vpow2.f32 %v2468_v57 }
 0x3d5   : > { %v2808_v51 = vpop.eup %2807 }
 0x3d6   : > { %v2810_v48 = vpop.eup %2809  ;;  %v2470_v10 = vadd.f32 1.0, %v2808_v51 }
 0x3d7   : > { %v2471_v26 = vadd.f32 1.0, %v2810_v48 }
 0x3d8   : > { %2811 = vrcp.f32 %v2470_v10  ;;  %v2483_v37 = vand.u32 2147483648, %v2470_v10  ;;  %v2481_v28 = vand.u32 2147483647, %v2470_v10  ;;  %vm2477_vm12 = vweird.f32 %v2470_v10 }
 0x3d9   : > { %2813 = vrcp.f32 %v2471_v26  ;;  %v2498_v36 = vand.u32 2147483648, %v2471_v26  ;;  %v2496_v20 = vand.u32 2147483647, %v2471_v26  ;;  %vm2492_vm14 = vweird.f32 %v2471_v26 }
 0x3da   : > { %v2484_v54 = vor.u32 1.1754944e-38, %v2483_v37  ;;  %vm2482_vm1 = vcmp.eq.f32.partialorder %v2481_v28, 8.507059e+37 }
 0x3db   : > { %v2499_v9 = vor.u32 1.1754944e-38, %v2498_v36  ;;  %vm2497_vm2 = vcmp.eq.f32.partialorder %v2496_v20, 8.507059e+37 }
 0x3de   : > { %v2812_v21 = vpop.eup %2811 }
 0x3df   : > { %v2814_v2 = vpop.eup %2813  ;;  %v2473_v25 = vmul.f32 %v2812_v21, %v2470_v10  ;;  %vm2478_vm5 = vweird.f32 %v2812_v21 }
 0x3e0   : > { %v2488_v60 = vmul.f32 %v2814_v2, %v2471_v26  ;;  %vm2493_vm11 = vweird.f32 %v2814_v2  ;;  %vm2479_vm13 = vmor %vm2477_vm12, %vm2478_vm5 }
 0x3e1   : > { %v2474_v42 = vsub.f32 1.0, %v2473_v25  ;;  %vm2494_vm15 = vmor %vm2492_vm14, %vm2493_vm11 }
 0x3e2   : > { %v2489_v18 = vsub.f32 1.0, %v2488_v60 }
 0x3e3   : > { %v2475_v1 = vmul.f32 %v2812_v21, %v2474_v42 }
 0x3e4   : > { %v2490_v52 = vmul.f32 %v2814_v2, %v2489_v18 }
 0x3e5   : > { %v2476_v5 = vadd.f32 %v2812_v21, %v2475_v1 }
 0x3e6   : > { %v2491_v4 = vadd.f32 %v2814_v2, %v2490_v52 }
 0x3e7   : > { %v2480_v14 = vsel %vm2479_vm13, %v2812_v21, %v2476_v5 }
 0x3e8   : > { %v2495_v0 = vsel %vm2494_vm15, %v2814_v2, %v2491_v4  ;;  %v2485_v33 = vsel %vm2482_vm1, %v2484_v54, %v2480_v14 }
 0x3e9   : > { %v2500_v6 = vsel %vm2497_vm2, %v2499_v9, %v2495_v0  ;;  %v2502_v53 = vperm.slane %v2485_v33, 0 }
 0x3ea   : > { %v2503_v27 = vperm.slane %v2500_v6, 0 }
 0x3ec   : > { %v2506_v44 = vrot.slane %v2503_v27, 4 }
 0x3ee   : > { %v2507_v34 = vsel %vm321_vm0, %v2502_v53, %v2506_v44 }
 0x3ef   : > { %v2509_v59 = vmul.f32 %v2507_v34, %v5201_v24 }
 0x3f1   : > { %2510 = vst [vmem:[%s203_s2] sm:$0xff] %v2509_v59 }
 0x3f2   : > { %2887 = shalt.err (!%p2884_p11)
}
 0x3f3   : > { %2743 = dma.vmem_to_hbm [thread:$0]  (%p3035_p3), %s2526_s12, 128, %s2528_s19, %s2512_s9  }
 0x3f4 PF: > { %s2539_s4 = sand.u32 1, %s2918_s14   ;;  %p5202_p12 = scmp.ge.s32.totalorder %s2930_s17, 2 }
 0x3f5   : > { %s2540_s27 = scalar_lea.sflag [#allocation5], %s2539_s4 }
 0x3f6   : > { %p2754_p13 = pnand %p5202_p12, %p3004_p6 }
 0x3f8   : > { %p2755_p0 = pneg %p2754_p13 }
 0x3fa   : > { %2913 = dma.done.wait (%p2755_p0), %s2540_s27, 128  }
 0x3fb   : > { %2915 = vsyncadd (%p2755_p0), %s2540_s27, 4294967168  ;;  %p18_p5 = scmp.ge.s32.totalorder %s3020_s25, 4   ;;  %s5203_s14 = smov %s2922_s15 }
 0x3fc   : > { %s5204_s15 = smov %s2926_s16  ;;  %s5205_s16 = smov %s3030_s29 }
 0x3fd   : > { %s5206_s17 = smov %s3020_s25  ;;  %20 = sbr.rel (!%p18_p5) target bundleno = 8 (0x8), region = 82 }
 0x402   :  { %2546 = vsyncpa [#allocation4], 1 }
 0x403   :  { %2548 = vsyncpa [#allocation4 + $0x1], 1 }
 0x404   :  { %2549 = vsyncpa [#allocation5], 1 }
 0x405   :  { %2551 = vsyncpa [#allocation5 + $0x1], 1 }
 0x406   :  { %2552 = vsyncpa [#allocation6], 1 }
 0x407   :  { %2554 = vsyncpa [#allocation6 + $0x1], 1 }

</bundles_post_ra>
